<compile_context>
chip_gen: v7x
topology: tpu7x:2x2x1
jax: 0.10.0
libtpu: 0.0.40
codegen_flags: <defaults>
</compile_context>

<pallas_src>
import functools

import jax
import jax.numpy as jnp
from jax import lax
from jax.experimental import pallas as pl
from jax.experimental.pallas import tpu as pltpu

LANE = 128


def _round_up(x, m):
    return (x + m - 1) // m * m


# ----------------------------------------------------------------------------
# Pallas kernel: full ResidualStack forward for a batch of B images (NHWC,
# channels padded to Cp / Crhp which are multiples of 128).
# ----------------------------------------------------------------------------
def residual_stack_kernel(x_ref, w1_ref, w2_ref, o_ref, taps_ref, acc_ref, *,
                          num_layers, B, H, W, Cp, Crhp):
    # x_ref:    (B, H, W, Cp)           input images (lane-dense channels), f32
    # w1_ref:   (L, 3, 3*Cp, Crhp)      3x3 conv weights, K packed as (dj, ci)
    # w2_ref:   (L, Crhp, Cp)           1x1 conv weights
    # o_ref:    (B, H, W, Cp)           output / running activation, f32
    # taps_ref: VMEM (B, H+2, W, 3*Cp)  [w-1 | w | w+1] shifted ReLU(x), H halo
    # acc_ref:  VMEM (B*H*W, Crhp) f32  conv3x3 accumulator
    M = B * H * W
    K3 = 3 * Cp

    # Zero the two H-halo planes once per grid step; interior rows are
    # rewritten every layer and the halo is never touched again.  Done
    # unconditionally so each TensorCore's private scratch is valid when the
    # "parallel" grid axis is split across cores.
    zero_plane = jnp.zeros((B, 1, W, K3), dtype=taps_ref.dtype)
    taps_ref[:, 0:1, :, :] = zero_plane
    taps_ref[:, H + 1:H + 2, :, :] = zero_plane

    # Tiny (1, W, 1) border masks, broadcast across rows and lanes at use.
    w_iota = lax.broadcasted_iota(jnp.int32, (1, W, 1), 1)
    at_left = w_iota == 0           # column 0 has no (w-1) neighbour
    at_right = w_iota == W - 1      # column W-1 has no (w+1) neighbour

    # L is small (2-4) for VQ-VAE, so a static unroll is fine; a deep stack
    # would switch to lax.fori_loop with dynamic w1_ref indexing.
    for l in range(num_layers):
        # Running activation: layer 0 reads the input block directly (no
        # priming copy), later layers read the carry stored in o_ref.
        x = x_ref[...] if l == 0 else o_ref[...]           # (B, H, W, Cp) f32

        # ReLU and the two W-shifted copies.  W shifts are XLU rolls plus a
        # broadcast border mask (no misaligned sublane slices anywhere).
        h = jnp.maximum(x, 0.0)
        rows = h.reshape(B * H, W, Cp)
        left = jnp.where(at_left, 0.0, pltpu.roll(rows, shift=1, axis=1))
        right = jnp.where(at_right, 0.0, pltpu.roll(rows, shift=W - 1, axis=1))

        # taps lane layout:  [0:Cp]    = input pixel (w-1) -> kernel col dj=0
        #                    [Cp:2Cp]  = input pixel (w)   -> dj=1
        #                    [2Cp:3Cp] = input pixel (w+1) -> dj=2
        # All three stores are lane-aligned (offsets are multiples of 128).
        td = taps_ref.dtype
        taps_ref[:, 1:H + 1, :, 0:Cp] = left.reshape(B, H, W, Cp).astype(td)
        taps_ref[:, 1:H + 1, :, Cp:2 * Cp] = h.astype(td)
        taps_ref[:, 1:H + 1, :, 2 * Cp:3 * Cp] = right.reshape(B, H, W, Cp).astype(td)

        # Conv3x3 as three accumulated matmuls, one per kernel row di.  Each
        # LHS is a contiguous slice of taps_ref (H rows di..di+H-1 of the
        # halo'd buffer) streamed straight into the MXU — no per-tap
        # re-materialization.  The first matmul overwrites acc_ref (no
        # zero-init pass).
        acc_ref[...] = jnp.dot(
            taps_ref[:, 0:H, :, :].reshape(M, K3), w1_ref[l, 0],
            preferred_element_type=jnp.float32)
        acc_ref[...] += jnp.dot(
            taps_ref[:, 1:H + 1, :, :].reshape(M, K3), w1_ref[l, 1],
            preferred_element_type=jnp.float32)
        acc_ref[...] += jnp.dot(
            taps_ref[:, 2:H + 2, :, :].reshape(M, K3), w1_ref[l, 2],
            preferred_element_type=jnp.float32)

        # ReLU -> 1x1 conv -> residual add.  The stack's final ReLU is fused
        # into the last layer's store (no extra full-activation pass).
        h2 = jnp.maximum(acc_ref[...], 0.0).astype(w2_ref.dtype)
        z = jnp.dot(h2, w2_ref[l], preferred_element_type=jnp.float32)
        out = x + z.reshape(B, H, W, Cp)
        if l == num_layers - 1:
            out = jnp.maximum(out, 0.0)
        o_ref[...] = out


# ----------------------------------------------------------------------------
# Core Pallas path on lane-padded NHWC activations.
# ----------------------------------------------------------------------------
def residual_stack_padded_nhwc(x_p, w1_k, w2_p, *, max_images_per_block=8):
    """x_p:  (N, H, W, Cp) f32, Cp % 128 == 0, lanes [C:Cp] zero
       w1_k: (L, 3, 3*Cp, Crhp) conv3x3 weights, K packed as (dj, ci), zero-padded
       w2_p: (L, Crhp, Cp) conv1x1 weights, zero-padded
    """
    N, H, W, Cp = x_p.shape
    L = w1_k.shape[0]
    Crhp = w1_k.shape[-1]
    mm_dtype = w1_k.dtype            # f32 (exact) or bf16 (fast MXU path)
    mm_bytes = mm_dtype.itemsize

    # --- VMEM budgeting: pick B (images per grid step) and the scoped limit.
    try:
        info = pltpu.get_tpu_info()
        vmem_cap = int(getattr(info, "vmem_capacity_bytes", 64 * 1024 * 1024))
    except Exception:                 # interpret mode / older runtimes
        vmem_cap = 64 * 1024 * 1024   # v7x per-TensorCore floor
    vmem_budget = vmem_cap // 2       # leave room for compiler temporaries
    vmem_limit = (vmem_cap * 9) // 10

    w_bytes = L * (3 * 3 * Cp * Crhp + Crhp * Cp) * mm_bytes   # single-buffered

    def footprint(b):
        act = b * H * W * Cp * 4                       # one f32 activation block
        taps = b * (H + 2) * W * 3 * Cp * mm_bytes     # shifted-taps scratch
        acc = b * H * W * Crhp * 4                     # conv3x3 accumulator
        return 4 * act + taps + acc + w_bytes          # in+out double-buffered

    # Largest divisor of N that (a) fits the VMEM budget, (b) keeps the grid
    # at >= 2 steps whenever N >= 2 (two v7x TensorCores + DMA/compute
    # overlap), (c) caps M = B*H*W growth.
    b_cap = min(max_images_per_block, N if N < 2 else N // 2)
    B = 1
    for cand in range(max(b_cap, 1), 0, -1):
        if N % cand == 0 and footprint(cand) <= vmem_budget:
            B = cand
            break
    # TODO(synk): for N == 1 (grid of length 1) also split over H row-bands so
    # both v7x TensorCores are used; needs a manual halo-row async copy.

    kernel = functools.partial(
        residual_stack_kernel,
        num_layers=L, B=B, H=H, W=W, Cp=Cp, Crhp=Crhp)

    return pl.pallas_call(
        kernel,
        out_shape=jax.ShapeDtypeStruct((N, H, W, Cp), jnp.float32),
        grid_spec=pltpu.PrefetchScalarGridSpec(
            num_scalar_prefetch=0,
            grid=(N // B,),
            in_specs=[
                pl.BlockSpec((B, H, W, Cp), lambda n: (n, 0, 0, 0)),
                # Constant index maps -> fetched once; Buffered(1) drops the
                # (useless) second VMEM buffer for the resident weights.
                pl.BlockSpec((L, 3, 3 * Cp, Crhp), lambda n: (0, 0, 0, 0),
                             pipeline_mode=pl.Buffered(1)),
                pl.BlockSpec((L, Crhp, Cp), lambda n: (0, 0, 0),
                             pipeline_mode=pl.Buffered(1)),
            ],
            out_specs=pl.BlockSpec((B, H, W, Cp), lambda n: (n, 0, 0, 0)),
            scratch_shapes=[
                pltpu.VMEM((B, H + 2, W, 3 * Cp), mm_dtype),   # shifted taps
                pltpu.VMEM((B * H * W, Crhp), jnp.float32),    # conv3x3 acc
            ],
        ),
        compiler_params=pltpu.CompilerParams(
            dimension_semantics=("parallel",),
            vmem_limit_bytes=vmem_limit,
        ),
    )(x_p, w1_k, w2_p)


# ----------------------------------------------------------------------------
# PyTorch-facing wrapper: NCHW -> padded NHWC -> kernel -> un-pad -> NCHW.
# If the surrounding model can supply/consume padded NHWC, call
# residual_stack_padded_nhwc directly and skip this layout plumbing.
# ----------------------------------------------------------------------------
def residual_stack_forward(x_nchw, w1, w2, *, max_images_per_block=8,
                           use_bf16_matmul=False):
    """x_nchw: (N, C, H, W) f32
       w1:     (L, 3, 3, C, Crh) f32   (HWIO per layer)
       w2:     (L, Crh, C) f32
    """
    N, C, H, W = x_nchw.shape
    L, kh, kw, cin, Crh = w1.shape
    assert (kh, kw) == (3, 3) and cin == C
    # Residual add requires in_channels == num_hiddens.
    assert w2.shape == (L, Crh, C)

    Cp = _round_up(C, LANE)
    Crhp = _round_up(Crh, LANE)

    # NCHW -> NHWC with lane-dense channel padding (padded channels stay zero
    # through the whole stack because the padded weight rows/cols are zero).
    x_nhwc = jnp.transpose(x_nchw, (0, 2, 3, 1))
    x_p = jnp.pad(x_nhwc, ((0, 0), (0, 0), (0, 0), (0, Cp - C)))

    # Conv3x3 weights packed per kernel row di: K index = dj*Cp + ci, matching
    # the taps lane layout in the kernel.
    w1_p = jnp.pad(w1, ((0, 0), (0, 0), (0, 0), (0, Cp - C), (0, Crhp - Crh)))
    w1_k = w1_p.reshape(L, 3, 3 * Cp, Crhp)
    # Conv1x1 weights, padded.
    w2_p = jnp.pad(w2, ((0, 0), (0, Crhp - Crh), (0, Cp - C)))

    if use_bf16_matmul:
        # bf16-native MXU path: matmul inputs in bf16, f32 accumulation and
        # f32 residual carry.  Loosens parity vs the f32 reference to ~1e-2.
        w1_k = w1_k.astype(jnp.bfloat16)
        w2_p = w2_p.astype(jnp.bfloat16)

    out_p = residual_stack_padded_nhwc(
        x_p, w1_k, w2_p, max_images_per_block=max_images_per_block)

    # Drop channel padding, back to NCHW.
    return jnp.transpose(out_p[..., :C], (0, 3, 1, 2))


# ----------------------------------------------------------------------------
# Pure-JAX reference (lax conv) for correctness checking.
# ----------------------------------------------------------------------------
def residual_stack_ref(x_nchw, w1, w2):
    x = jnp.transpose(x_nchw, (0, 2, 3, 1))  # NHWC
    L = w1.shape[0]
    dn = ("NHWC", "HWIO", "NHWC")
    for l in range(L):
        h = jax.nn.relu(x)
        y = lax.conv_general_dilated(h, w1[l], (1, 1), "SAME",
                                     dimension_numbers=dn)
        y = jax.nn.relu(y)
        z = lax.conv_general_dilated(y, w2[l][None, None], (1, 1), "SAME",
                                     dimension_numbers=dn)
        x = x + z
    return jnp.transpose(jax.nn.relu(x), (0, 3, 1, 2))


if __name__ == "__main__":
    # Small, forward-consistent config (in_channels == num_hiddens so the
    # residual add is well-defined, as in VQ-VAE).
    N, H, W = 2, 16, 16
    in_channels = num_hiddens = 32
    num_residual_hiddens = 16
    num_residual_layers = 2

    key = jax.random.PRNGKey(0)
    kx, kw1, kw2 = jax.random.split(key, 3)

    # Input in PyTorch NCHW convention.
    x = jax.random.normal(kx, (N, in_channels, H, W), dtype=jnp.float32)

    # Deterministic synthetic weights.
    #   conv3x3: HWIO (3, 3, C_in, C_rh) per layer
    #   conv1x1: (C_rh, C_out) per layer
    w1 = 0.1 * jax.random.normal(
        kw1, (num_residual_layers, 3, 3, in_channels, num_residual_hiddens),
        dtype=jnp.float32)
    w2 = 0.1 * jax.random.normal(
        kw2, (num_residual_layers, num_residual_hiddens, num_hiddens),
        dtype=jnp.float32)

    out = jax.block_until_ready(residual_stack_forward(x, w1, w2))
    ref = jax.block_until_ready(residual_stack_ref(x, w1, w2))

    assert out.shape == (N, num_hiddens, H, W)
    assert jnp.allclose(out, ref, atol=1e-4, rtol=1e-4), "mismatch vs reference"

    print("KERNEL_OK")
</pallas_src>

<mosaic_0001>
module attributes {stable_mosaic.version = 11 : i64} {
  func.func @residual_stack_kernel(%arg0: i32, %arg1: memref<1x16x16x128xf32, #tpu.memory_space<vmem>>, %arg2: memref<2x3x384x128xf32, #tpu.memory_space<vmem>>, %arg3: memref<2x128x128xf32, #tpu.memory_space<vmem>>, %arg4: memref<1x16x16x128xf32, #tpu.memory_space<vmem>>, %arg5: memref<1x18x16x384xf32, #tpu.memory_space<vmem>>, %arg6: memref<256x128xf32, #tpu.memory_space<vmem>>) attributes {dimension_semantics = [#tpu.dimension_semantics<parallel>], iteration_bounds = array<i64: 2>, scalar_prefetch = 0 : i64, scratch_operands = 2 : i64, tpu.core_type = #tpu.core_type<tc>, window_params = [{transform_indices = @transform_0, window_bounds = array<i64: 1, 16, 16, 128>}, {pipeline_mode = #tpu.pipeline_mode<synchronous>, transform_indices = @transform_1, window_bounds = array<i64: 2, 3, 384, 128>}, {pipeline_mode = #tpu.pipeline_mode<synchronous>, transform_indices = @transform_2, window_bounds = array<i64: 2, 128, 128>}, {transform_indices = @transform_3, window_bounds = array<i64: 1, 16, 16, 128>}]} {
    %cst = arith.constant 0.000000e+00 : f32
    %0 = vector.broadcast %cst : f32 to vector<1x1x16x384xf32>
    %c0 = arith.constant 0 : index
    %c0_0 = arith.constant 0 : index
    %c0_1 = arith.constant 0 : index
    %c0_2 = arith.constant 0 : index
    %1 = vector.load %arg5[%c0, %c0_0, %c0_1, %c0_2] : memref<1x18x16x384xf32, #tpu.memory_space<vmem>>, vector<1x1x16x384xf32>
    tpu.vector_store %arg5[%c0, %c0_0, %c0_1, %c0_2], %0 {strides = array<i32>} : memref<1x18x16x384xf32, #tpu.memory_space<vmem>>, vector<1x1x16x384xf32>,
    %c0_3 = arith.constant 0 : index
    %c17 = arith.constant 17 : index
    %c0_4 = arith.constant 0 : index
    %c0_5 = arith.constant 0 : index
    %2 = vector.load %arg5[%c0_3, %c17, %c0_4, %c0_5] : memref<1x18x16x384xf32, #tpu.memory_space<vmem>>, vector<1x1x16x384xf32>
    tpu.vector_store %arg5[%c0_3, %c17, %c0_4, %c0_5], %0 {strides = array<i32>} : memref<1x18x16x384xf32, #tpu.memory_space<vmem>>, vector<1x1x16x384xf32>,
    %3 = tpu.iota {dimensions = array<i32: 1>} : vector<1x16x1xi32>
    %c0_i32 = arith.constant 0 : i32
    %4 = vector.broadcast %c0_i32 : i32 to vector<1x16x1xi32>
    %5 = arith.cmpi eq, %3, %4 : vector<1x16x1xi32>
    %c15_i32 = arith.constant 15 : i32
    %6 = vector.broadcast %c15_i32 : i32 to vector<1x16x1xi32>
    %7 = arith.cmpi eq, %3, %6 : vector<1x16x1xi32>
    %c0_6 = arith.constant 0 : index
    %c0_7 = arith.constant 0 : index
    %c0_8 = arith.constant 0 : index
    %c0_9 = arith.constant 0 : index
    %8 = vector.load %arg1[%c0_6, %c0_7, %c0_8, %c0_9] : memref<1x16x16x128xf32, #tpu.memory_space<vmem>>, vector<1x16x16x128xf32>
    %cst_10 = arith.constant 0.000000e+00 : f32
    %9 = vector.broadcast %cst_10 : f32 to vector<1x16x16x128xf32>
    %10 = arith.maximumf %8, %9 : vector<1x16x16x128xf32>
    %11 = vector.shape_cast %10 : vector<1x16x16x128xf32> to vector<16x16x128xf32>
    %c1_i32 = arith.constant 1 : i32
    %12 = tpu.dynamic_rotate %11 by %c1_i32 dim 1 : vector<16x16x128xf32>, i32 -> vector<16x16x128xf32>
    %cst_11 = arith.constant 0.000000e+00 : f32
    %13 = vector.shape_cast %5 : vector<1x16x1xi1> to vector<1x16x1xi1>
    %14 = vector.broadcast %13 : vector<1x16x1xi1> to vector<16x16x128xi1>
    %15 = vector.broadcast %cst_11 : f32 to vector<16x16x128xf32>
    %16 = arith.select %14, %15, %12 : vector<16x16x128xi1>, vector<16x16x128xf32>
    %c15_i32_12 = arith.constant 15 : i32
    %17 = tpu.dynamic_rotate %11 by %c15_i32_12 dim 1 : vector<16x16x128xf32>, i32 -> vector<16x16x128xf32>
    %cst_13 = arith.constant 0.000000e+00 : f32
    %18 = vector.shape_cast %7 : vector<1x16x1xi1> to vector<1x16x1xi1>
    %19 = vector.broadcast %18 : vector<1x16x1xi1> to vector<16x16x128xi1>
    %20 = vector.broadcast %cst_13 : f32 to vector<16x16x128xf32>
    %21 = arith.select %19, %20, %17 : vector<16x16x128xi1>, vector<16x16x128xf32>
    %22 = vector.shape_cast %16 : vector<16x16x128xf32> to vector<1x16x16x128xf32>
    %c0_14 = arith.constant 0 : index
    %c1 = arith.constant 1 : index
    %c0_15 = arith.constant 0 : index
    %c0_16 = arith.constant 0 : index
    %23 = vector.load %arg5[%c0_14, %c1, %c0_15, %c0_16] : memref<1x18x16x384xf32, #tpu.memory_space<vmem>>, vector<1x16x16x128xf32>
    tpu.vector_store %arg5[%c0_14, %c1, %c0_15, %c0_16], %22 {strides = array<i32>} : memref<1x18x16x384xf32, #tpu.memory_space<vmem>>, vector<1x16x16x128xf32>,
    %c0_17 = arith.constant 0 : index
    %c1_18 = arith.constant 1 : index
    %c0_19 = arith.constant 0 : index
    %c128 = arith.constant 128 : index
    %24 = vector.load %arg5[%c0_17, %c1_18, %c0_19, %c128] : memref<1x18x16x384xf32, #tpu.memory_space<vmem>>, vector<1x16x16x128xf32>
    tpu.vector_store %arg5[%c0_17, %c1_18, %c0_19, %c128], %10 {strides = array<i32>} : memref<1x18x16x384xf32, #tpu.memory_space<vmem>>, vector<1x16x16x128xf32>,
    %25 = vector.shape_cast %21 : vector<16x16x128xf32> to vector<1x16x16x128xf32>
    %c0_20 = arith.constant 0 : index
    %c1_21 = arith.constant 1 : index
    %c0_22 = arith.constant 0 : index
    %c256 = arith.constant 256 : index
    %26 = vector.load %arg5[%c0_20, %c1_21, %c0_22, %c256] : memref<1x18x16x384xf32, #tpu.memory_space<vmem>>, vector<1x16x16x128xf32>
    tpu.vector_store %arg5[%c0_20, %c1_21, %c0_22, %c256], %25 {strides = array<i32>} : memref<1x18x16x384xf32, #tpu.memory_space<vmem>>, vector<1x16x16x128xf32>,
    %c0_23 = arith.constant 0 : index
    %c0_24 = arith.constant 0 : index
    %c0_25 = arith.constant 0 : index
    %c0_26 = arith.constant 0 : index
    %27 = vector.load %arg5[%c0_23, %c0_24, %c0_25, %c0_26] : memref<1x18x16x384xf32, #tpu.memory_space<vmem>>, vector<1x16x16x384xf32>
    %28 = vector.shape_cast %27 : vector<1x16x16x384xf32> to vector<256x384xf32>
    %c0_27 = arith.constant 0 : index
    %c0_28 = arith.constant 0 : index
    %c0_29 = arith.constant 0 : index
    %c0_30 = arith.constant 0 : index
    %29 = vector.load %arg2[%c0_27, %c0_28, %c0_29, %c0_30] : memref<2x3x384x128xf32, #tpu.memory_space<vmem>>, vector<1x1x384x128xf32>
    %30 = vector.shape_cast %29 : vector<1x1x384x128xf32> to vector<384x128xf32>
    %cst_31 = arith.constant dense<0.000000e+00> : vector<256x128xf32>
    %31 = tpu.matmul %28, %30, %cst_31 {dimension_numbers = #tpu.dot_dimension_numbers<[1], [0], [0], [1], [0, 0, 1, 1], [], []>} : vector<256x384xf32>, vector<384x128xf32>, vector<256x128xf32> -> vector<256x128xf32>
    %c0_32 = arith.constant 0 : index
    %c0_33 = arith.constant 0 : index
    %32 = vector.load %arg6[%c0_32, %c0_33] : memref<256x128xf32, #tpu.memory_space<vmem>>, vector<256x128xf32>
    tpu.vector_store %arg6[%c0_32, %c0_33], %31 {strides = array<i32>} : memref<256x128xf32, #tpu.memory_space<vmem>>, vector<256x128xf32>,
    %c0_34 = arith.constant 0 : index
    %c0_35 = arith.constant 0 : index
    %33 = vector.load %arg6[%c0_34, %c0_35] : memref<256x128xf32, #tpu.memory_space<vmem>>, vector<256x128xf32>
    %c0_36 = arith.constant 0 : index
    %c1_37 = arith.constant 1 : index
    %c0_38 = arith.constant 0 : index
    %c0_39 = arith.constant 0 : index
    %34 = vector.load %arg5[%c0_36, %c1_37, %c0_38, %c0_39] : memref<1x18x16x384xf32, #tpu.memory_space<vmem>>, vector<1x16x16x384xf32>
    %35 = vector.shape_cast %34 : vector<1x16x16x384xf32> to vector<256x384xf32>
    %c0_40 = arith.constant 0 : index
    %c1_41 = arith.constant 1 : index
    %c0_42 = arith.constant 0 : index
    %c0_43 = arith.constant 0 : index
    %36 = vector.load %arg2[%c0_40, %c1_41, %c0_42, %c0_43] : memref<2x3x384x128xf32, #tpu.memory_space<vmem>>, vector<1x1x384x128xf32>
    %37 = vector.shape_cast %36 : vector<1x1x384x128xf32> to vector<384x128xf32>
    %cst_44 = arith.constant dense<0.000000e+00> : vector<256x128xf32>
    %38 = tpu.matmul %35, %37, %cst_44 {dimension_numbers = #tpu.dot_dimension_numbers<[1], [0], [0], [1], [0, 0, 1, 1], [], []>} : vector<256x384xf32>, vector<384x128xf32>, vector<256x128xf32> -> vector<256x128xf32>
    %39 = arith.addf %33, %38 : vector<256x128xf32>
    %c0_45 = arith.constant 0 : index
    %c0_46 = arith.constant 0 : index
    %40 = vector.load %arg6[%c0_45, %c0_46] : memref<256x128xf32, #tpu.memory_space<vmem>>, vector<256x128xf32>
    tpu.vector_store %arg6[%c0_45, %c0_46], %39 {strides = array<i32>} : memref<256x128xf32, #tpu.memory_space<vmem>>, vector<256x128xf32>,
    %c0_47 = arith.constant 0 : index
    %c0_48 = arith.constant 0 : index
    %41 = vector.load %arg6[%c0_47, %c0_48] : memref<256x128xf32, #tpu.memory_space<vmem>>, vector<256x128xf32>
    %c0_49 = arith.constant 0 : index
    %c2 = arith.constant 2 : index
    %c0_50 = arith.constant 0 : index
    %c0_51 = arith.constant 0 : index
    %42 = vector.load %arg5[%c0_49, %c2, %c0_50, %c0_51] : memref<1x18x16x384xf32, #tpu.memory_space<vmem>>, vector<1x16x16x384xf32>
    %43 = vector.shape_cast %42 : vector<1x16x16x384xf32> to vector<256x384xf32>
    %c0_52 = arith.constant 0 : index
    %c2_53 = arith.constant 2 : index
    %c0_54 = arith.constant 0 : index
    %c0_55 = arith.constant 0 : index
    %44 = vector.load %arg2[%c0_52, %c2_53, %c0_54, %c0_55] : memref<2x3x384x128xf32, #tpu.memory_space<vmem>>, vector<1x1x384x128xf32>
    %45 = vector.shape_cast %44 : vector<1x1x384x128xf32> to vector<384x128xf32>
    %cst_56 = arith.constant dense<0.000000e+00> : vector<256x128xf32>
    %46 = tpu.matmul %43, %45, %cst_56 {dimension_numbers = #tpu.dot_dimension_numbers<[1], [0], [0], [1], [0, 0, 1, 1], [], []>} : vector<256x384xf32>, vector<384x128xf32>, vector<256x128xf32> -> vector<256x128xf32>
    %47 = arith.addf %41, %46 : vector<256x128xf32>
    %c0_57 = arith.constant 0 : index
    %c0_58 = arith.constant 0 : index
    %48 = vector.load %arg6[%c0_57, %c0_58] : memref<256x128xf32, #tpu.memory_space<vmem>>, vector<256x128xf32>
    tpu.vector_store %arg6[%c0_57, %c0_58], %47 {strides = array<i32>} : memref<256x128xf32, #tpu.memory_space<vmem>>, vector<256x128xf32>,
    %c0_59 = arith.constant 0 : index
    %c0_60 = arith.constant 0 : index
    %49 = vector.load %arg6[%c0_59, %c0_60] : memref<256x128xf32, #tpu.memory_space<vmem>>, vector<256x128xf32>
    %cst_61 = arith.constant 0.000000e+00 : f32
    %50 = vector.broadcast %cst_61 : f32 to vector<256x128xf32>
    %51 = arith.maximumf %49, %50 : vector<256x128xf32>
    %c0_62 = arith.constant 0 : index
    %c0_63 = arith.constant 0 : index
    %c0_64 = arith.constant 0 : index
    %52 = vector.load %arg3[%c0_62, %c0_63, %c0_64] : memref<2x128x128xf32, #tpu.memory_space<vmem>>, vector<1x128x128xf32>
    %53 = vector.shape_cast %52 : vector<1x128x128xf32> to vector<128x128xf32>
    %cst_65 = arith.constant dense<0.000000e+00> : vector<256x128xf32>
    %54 = tpu.matmul %51, %53, %cst_65 {dimension_numbers = #tpu.dot_dimension_numbers<[1], [0], [0], [1], [0, 0, 1, 1], [], []>} : vector<256x128xf32>, vector<128x128xf32>, vector<256x128xf32> -> vector<256x128xf32>
    %55 = vector.shape_cast %54 : vector<256x128xf32> to vector<1x16x16x128xf32>
    %56 = arith.addf %8, %55 : vector<1x16x16x128xf32>
    %c0_66 = arith.constant 0 : index
    %c0_67 = arith.constant 0 : index
    %c0_68 = arith.constant 0 : index
    %c0_69 = arith.constant 0 : index
    %57 = vector.load %arg4[%c0_66, %c0_67, %c0_68, %c0_69] : memref<1x16x16x128xf32, #tpu.memory_space<vmem>>, vector<1x16x16x128xf32>
    tpu.vector_store %arg4[%c0_66, %c0_67, %c0_68, %c0_69], %56 {strides = array<i32>} : memref<1x16x16x128xf32, #tpu.memory_space<vmem>>, vector<1x16x16x128xf32>,
    %c0_70 = arith.constant 0 : index
    %c0_71 = arith.constant 0 : index
    %c0_72 = arith.constant 0 : index
    %c0_73 = arith.constant 0 : index
    %58 = vector.load %arg4[%c0_70, %c0_71, %c0_72, %c0_73] : memref<1x16x16x128xf32, #tpu.memory_space<vmem>>, vector<1x16x16x128xf32>
    %cst_74 = arith.constant 0.000000e+00 : f32
    %59 = vector.broadcast %cst_74 : f32 to vector<1x16x16x128xf32>
    %60 = arith.maximumf %58, %59 : vector<1x16x16x128xf32>
    %61 = vector.shape_cast %60 : vector<1x16x16x128xf32> to vector<16x16x128xf32>
    %c1_i32_75 = arith.constant 1 : i32
    %62 = tpu.dynamic_rotate %61 by %c1_i32_75 dim 1 : vector<16x16x128xf32>, i32 -> vector<16x16x128xf32>
    %cst_76 = arith.constant 0.000000e+00 : f32
    %63 = vector.shape_cast %5 : vector<1x16x1xi1> to vector<1x16x1xi1>
    %64 = vector.broadcast %63 : vector<1x16x1xi1> to vector<16x16x128xi1>
    %65 = vector.broadcast %cst_76 : f32 to vector<16x16x128xf32>
    %66 = arith.select %64, %65, %62 : vector<16x16x128xi1>, vector<16x16x128xf32>
    %c15_i32_77 = arith.constant 15 : i32
    %67 = tpu.dynamic_rotate %61 by %c15_i32_77 dim 1 : vector<16x16x128xf32>, i32 -> vector<16x16x128xf32>
    %cst_78 = arith.constant 0.000000e+00 : f32
    %68 = vector.shape_cast %7 : vector<1x16x1xi1> to vector<1x16x1xi1>
    %69 = vector.broadcast %68 : vector<1x16x1xi1> to vector<16x16x128xi1>
    %70 = vector.broadcast %cst_78 : f32 to vector<16x16x128xf32>
    %71 = arith.select %69, %70, %67 : vector<16x16x128xi1>, vector<16x16x128xf32>
    %72 = vector.shape_cast %66 : vector<16x16x128xf32> to vector<1x16x16x128xf32>
    %c0_79 = arith.constant 0 : index
    %c1_80 = arith.constant 1 : index
    %c0_81 = arith.constant 0 : index
    %c0_82 = arith.constant 0 : index
    %73 = vector.load %arg5[%c0_79, %c1_80, %c0_81, %c0_82] : memref<1x18x16x384xf32, #tpu.memory_space<vmem>>, vector<1x16x16x128xf32>
    tpu.vector_store %arg5[%c0_79, %c1_80, %c0_81, %c0_82], %72 {strides = array<i32>} : memref<1x18x16x384xf32, #tpu.memory_space<vmem>>, vector<1x16x16x128xf32>,
    %c0_83 = arith.constant 0 : index
    %c1_84 = arith.constant 1 : index
    %c0_85 = arith.constant 0 : index
    %c128_86 = arith.constant 128 : index
    %74 = vector.load %arg5[%c0_83, %c1_84, %c0_85, %c128_86] : memref<1x18x16x384xf32, #tpu.memory_space<vmem>>, vector<1x16x16x128xf32>
    tpu.vector_store %arg5[%c0_83, %c1_84, %c0_85, %c128_86], %60 {strides = array<i32>} : memref<1x18x16x384xf32, #tpu.memory_space<vmem>>, vector<1x16x16x128xf32>,
    %75 = vector.shape_cast %71 : vector<16x16x128xf32> to vector<1x16x16x128xf32>
    %c0_87 = arith.constant 0 : index
    %c1_88 = arith.constant 1 : index
    %c0_89 = arith.constant 0 : index
    %c256_90 = arith.constant 256 : index
    %76 = vector.load %arg5[%c0_87, %c1_88, %c0_89, %c256_90] : memref<1x18x16x384xf32, #tpu.memory_space<vmem>>, vector<1x16x16x128xf32>
    tpu.vector_store %arg5[%c0_87, %c1_88, %c0_89, %c256_90], %75 {strides = array<i32>} : memref<1x18x16x384xf32, #tpu.memory_space<vmem>>, vector<1x16x16x128xf32>,
    %c0_91 = arith.constant 0 : index
    %c0_92 = arith.constant 0 : index
    %c0_93 = arith.constant 0 : index
    %c0_94 = arith.constant 0 : index
    %77 = vector.load %arg5[%c0_91, %c0_92, %c0_93, %c0_94] : memref<1x18x16x384xf32, #tpu.memory_space<vmem>>, vector<1x16x16x384xf32>
    %78 = vector.shape_cast %77 : vector<1x16x16x384xf32> to vector<256x384xf32>
    %c1_95 = arith.constant 1 : index
    %c0_96 = arith.constant 0 : index
    %c0_97 = arith.constant 0 : index
    %c0_98 = arith.constant 0 : index
    %79 = vector.load %arg2[%c1_95, %c0_96, %c0_97, %c0_98] : memref<2x3x384x128xf32, #tpu.memory_space<vmem>>, vector<1x1x384x128xf32>
    %80 = vector.shape_cast %79 : vector<1x1x384x128xf32> to vector<384x128xf32>
    %cst_99 = arith.constant dense<0.000000e+00> : vector<256x128xf32>
    %81 = tpu.matmul %78, %80, %cst_99 {dimension_numbers = #tpu.dot_dimension_numbers<[1], [0], [0], [1], [0, 0, 1, 1], [], []>} : vector<256x384xf32>, vector<384x128xf32>, vector<256x128xf32> -> vector<256x128xf32>
    %c0_100 = arith.constant 0 : index
    %c0_101 = arith.constant 0 : index
    %82 = vector.load %arg6[%c0_100, %c0_101] : memref<256x128xf32, #tpu.memory_space<vmem>>, vector<256x128xf32>
    tpu.vector_store %arg6[%c0_100, %c0_101], %81 {strides = array<i32>} : memref<256x128xf32, #tpu.memory_space<vmem>>, vector<256x128xf32>,
    %c0_102 = arith.constant 0 : index
    %c0_103 = arith.constant 0 : index
    %83 = vector.load %arg6[%c0_102, %c0_103] : memref<256x128xf32, #tpu.memory_space<vmem>>, vector<256x128xf32>
    %c0_104 = arith.constant 0 : index
    %c1_105 = arith.constant 1 : index
    %c0_106 = arith.constant 0 : index
    %c0_107 = arith.constant 0 : index
    %84 = vector.load %arg5[%c0_104, %c1_105, %c0_106, %c0_107] : memref<1x18x16x384xf32, #tpu.memory_space<vmem>>, vector<1x16x16x384xf32>
    %85 = vector.shape_cast %84 : vector<1x16x16x384xf32> to vector<256x384xf32>
    %c1_108 = arith.constant 1 : index
    %c1_109 = arith.constant 1 : index
    %c0_110 = arith.constant 0 : index
    %c0_111 = arith.constant 0 : index
    %86 = vector.load %arg2[%c1_108, %c1_109, %c0_110, %c0_111] : memref<2x3x384x128xf32, #tpu.memory_space<vmem>>, vector<1x1x384x128xf32>
    %87 = vector.shape_cast %86 : vector<1x1x384x128xf32> to vector<384x128xf32>
    %cst_112 = arith.constant dense<0.000000e+00> : vector<256x128xf32>
    %88 = tpu.matmul %85, %87, %cst_112 {dimension_numbers = #tpu.dot_dimension_numbers<[1], [0], [0], [1], [0, 0, 1, 1], [], []>} : vector<256x384xf32>, vector<384x128xf32>, vector<256x128xf32> -> vector<256x128xf32>
    %89 = arith.addf %83, %88 : vector<256x128xf32>
    %c0_113 = arith.constant 0 : index
    %c0_114 = arith.constant 0 : index
    %90 = vector.load %arg6[%c0_113, %c0_114] : memref<256x128xf32, #tpu.memory_space<vmem>>, vector<256x128xf32>
    tpu.vector_store %arg6[%c0_113, %c0_114], %89 {strides = array<i32>} : memref<256x128xf32, #tpu.memory_space<vmem>>, vector<256x128xf32>,
    %c0_115 = arith.constant 0 : index
    %c0_116 = arith.constant 0 : index
    %91 = vector.load %arg6[%c0_115, %c0_116] : memref<256x128xf32, #tpu.memory_space<vmem>>, vector<256x128xf32>
    %c0_117 = arith.constant 0 : index
    %c2_118 = arith.constant 2 : index
    %c0_119 = arith.constant 0 : index
    %c0_120 = arith.constant 0 : index
    %92 = vector.load %arg5[%c0_117, %c2_118, %c0_119, %c0_120] : memref<1x18x16x384xf32, #tpu.memory_space<vmem>>, vector<1x16x16x384xf32>
    %93 = vector.shape_cast %92 : vector<1x16x16x384xf32> to vector<256x384xf32>
    %c1_121 = arith.constant 1 : index
    %c2_122 = arith.constant 2 : index
    %c0_123 = arith.constant 0 : index
    %c0_124 = arith.constant 0 : index
    %94 = vector.load %arg2[%c1_121, %c2_122, %c0_123, %c0_124] : memref<2x3x384x128xf32, #tpu.memory_space<vmem>>, vector<1x1x384x128xf32>
    %95 = vector.shape_cast %94 : vector<1x1x384x128xf32> to vector<384x128xf32>
    %cst_125 = arith.constant dense<0.000000e+00> : vector<256x128xf32>
    %96 = tpu.matmul %93, %95, %cst_125 {dimension_numbers = #tpu.dot_dimension_numbers<[1], [0], [0], [1], [0, 0, 1, 1], [], []>} : vector<256x384xf32>, vector<384x128xf32>, vector<256x128xf32> -> vector<256x128xf32>
    %97 = arith.addf %91, %96 : vector<256x128xf32>
    %c0_126 = arith.constant 0 : index
    %c0_127 = arith.constant 0 : index
    %98 = vector.load %arg6[%c0_126, %c0_127] : memref<256x128xf32, #tpu.memory_space<vmem>>, vector<256x128xf32>
    tpu.vector_store %arg6[%c0_126, %c0_127], %97 {strides = array<i32>} : memref<256x128xf32, #tpu.memory_space<vmem>>, vector<256x128xf32>,
    %c0_128 = arith.constant 0 : index
    %c0_129 = arith.constant 0 : index
    %99 = vector.load %arg6[%c0_128, %c0_129] : memref<256x128xf32, #tpu.memory_space<vmem>>, vector<256x128xf32>
    %cst_130 = arith.constant 0.000000e+00 : f32
    %100 = vector.broadcast %cst_130 : f32 to vector<256x128xf32>
    %101 = arith.maximumf %99, %100 : vector<256x128xf32>
    %c1_131 = arith.constant 1 : index
    %c0_132 = arith.constant 0 : index
    %c0_133 = arith.constant 0 : index
    %102 = vector.load %arg3[%c1_131, %c0_132, %c0_133] : memref<2x128x128xf32, #tpu.memory_space<vmem>>, vector<1x128x128xf32>
    %103 = vector.shape_cast %102 : vector<1x128x128xf32> to vector<128x128xf32>
    %cst_134 = arith.constant dense<0.000000e+00> : vector<256x128xf32>
    %104 = tpu.matmul %101, %103, %cst_134 {dimension_numbers = #tpu.dot_dimension_numbers<[1], [0], [0], [1], [0, 0, 1, 1], [], []>} : vector<256x128xf32>, vector<128x128xf32>, vector<256x128xf32> -> vector<256x128xf32>
    %105 = vector.shape_cast %104 : vector<256x128xf32> to vector<1x16x16x128xf32>
    %106 = arith.addf %58, %105 : vector<1x16x16x128xf32>
    %cst_135 = arith.constant 0.000000e+00 : f32
    %107 = vector.broadcast %cst_135 : f32 to vector<1x16x16x128xf32>
    %108 = arith.maximumf %106, %107 : vector<1x16x16x128xf32>
    %c0_136 = arith.constant 0 : index
    %c0_137 = arith.constant 0 : index
    %c0_138 = arith.constant 0 : index
    %c0_139 = arith.constant 0 : index
    %109 = vector.load %arg4[%c0_136, %c0_137, %c0_138, %c0_139] : memref<1x16x16x128xf32, #tpu.memory_space<vmem>>, vector<1x16x16x128xf32>
    tpu.vector_store %arg4[%c0_136, %c0_137, %c0_138, %c0_139], %108 {strides = array<i32>} : memref<1x16x16x128xf32, #tpu.memory_space<vmem>>, vector<1x16x16x128xf32>,
    return
  }
  func.func @transform_0(%arg0: i32) -> (i32, i32, i32, i32) {
    %c0_i32 = arith.constant 0 : i32
    %c0_i32_0 = arith.constant 0 : i32
    %c0_i32_1 = arith.constant 0 : i32
    %c0_i32_2 = arith.constant 0 : i32
    return %arg0, %c0_i32, %c0_i32_0, %c0_i32_1 : i32, i32, i32, i32
  }
  func.func @transform_1(%arg0: i32) -> (i32, i32, i32, i32) {
    %c0_i32 = arith.constant 0 : i32
    %c0_i32_0 = arith.constant 0 : i32
    %c0_i32_1 = arith.constant 0 : i32
    %c0_i32_2 = arith.constant 0 : i32
    %c0_i32_3 = arith.constant 0 : i32
    return %c0_i32, %c0_i32_0, %c0_i32_1, %c0_i32_2 : i32, i32, i32, i32
  }
  func.func @transform_2(%arg0: i32) -> (i32, i32, i32) {
    %c0_i32 = arith.constant 0 : i32
    %c0_i32_0 = arith.constant 0 : i32
    %c0_i32_1 = arith.constant 0 : i32
    %c0_i32_2 = arith.constant 0 : i32
    return %c0_i32, %c0_i32_0, %c0_i32_1 : i32, i32, i32
  }
  func.func @transform_3(%arg0: i32) -> (i32, i32, i32, i32) {
    %c0_i32 = arith.constant 0 : i32
    %c0_i32_0 = arith.constant 0 : i32
    %c0_i32_1 = arith.constant 0 : i32
    %c0_i32_2 = arith.constant 0 : i32
    return %arg0, %c0_i32, %c0_i32_0, %c0_i32_1 : i32, i32, i32, i32
  }
}

</mosaic_0001>

<bundles_post_ra>
// kernel: tpu_custom_call.1
= control target key start
LH: loop header
LB: loop body
LE: loop exit
PB: predicated region body
PF: predicated region fallthrough
CT: control target
= control target key end

     0   :  { %8 = vsyncpa [#allocation5], 0  ;;  %s11100_s0 = inlined_call_operand.hbm [shape: f32[2,16,16,128], index: 0, kind: input, shape index: {}]   ;;  %s11101_s1 = inlined_call_operand.hbm [shape: f32[2,3,384,128], index: 1, kind: input, shape index: {}]   ;;  %s11102_s2 = inlined_call_operand.hbm [shape: f32[2,128,128], index: 2, kind: input, shape index: {}]   ;;  %s11103_s3 = inlined_call_operand.hbm [shape: f32[2,16,16,128], index: 3, kind: output, shape index: {}]  }
   0x1   :  { %10 = vsyncpa [#allocation5 + $0x1], 0 }
   0x2   :  { %11 = vsyncpa [#allocation8], 0 }
   0x3   :  { %12 = vsyncpa [#allocation6], 0 }
   0x4   :  { %14 = vsyncpa [#allocation6 + $0x1], 0  ;;  %s8115_s12 = smov 0   ;;  %s8117_s13 = smov 0  }
   0x5   :  { %s8119_s14 = smov 0   ;;  %s8121_s15 = smov 0  }
   0x6 LB: > { %s8136_s16 = sadd.s32 4294967295, %s8083_s15   ;;  %s5848_s17 = sadd.s32 4294967294, %s8083_s15   ;;  %s8083_s15 = sphi %s8121_s15, %s11622_s15   ;;  %s8079_s14 = sphi %s8119_s14, %s11621_s14   ;;  %s8075_s13 = sphi %s8117_s13, %s11620_s13   ;;  %s8071_s12 = sphi %s8115_s12, %s11619_s12  }
   0x7   : > { %p40_p0 = scmp.ne.s32.totalorder %s8075_s13, %s8071_s12  ;;  %p11104_p1 = scmp.eq.s32.totalorder %s8136_s16, 0 }
   0x8   : > { %p112_p3 = scmp.eq.s32.totalorder %s5848_s17, 1  ;;  %p5849_p5 = scmp.ge.s32.totalorder %s8083_s15, 1 }
   0x9   : > { %p8145_p4 = por %p11104_p1, %p40_p0  ;;  %p119_p7 = scmp.lt.s32.totalorder %s8083_s15, 3 }
   0xa   : > { %p8150_p6 = por %p112_p3, %p40_p0  ;;  %s8085_s21 = smov [#allocation7]  }
   0xb   : > { %s11302_s18 = scalar_select %p8145_p4, 1, 0 }
   0xc   : > { %s11303_s19 = scalar_select %p8150_p6, 1, 0 }
   0xd   : > { %p8155_p8 = pnand %p5849_p5, %p119_p7  ;;  %s131_s22 = sshll.u32 %s8085_s21, 4  ;;  %s8159_s22 = int_to_ptr.vmem [resolvable:$true] %s131_s22 }
   0xe   : > { %s8086_s24 = smov [#allocation9]   ;;  %s7927_s28 = scalar_lea.hbm %s11101_s1, 36864 }
   0xf   : > { %p7832_p9 = pneg %p8155_p8  ;;  %s144_s25 = sshll.u32 %s8086_s24, 4  ;;  %s8170_s25 = int_to_ptr.vmem [resolvable:$true] %s144_s25 }
  0x10   : > { %p7928_p12 = scmp.ne.s32.totalorder %s11101_s1, %s7927_s28  ;;  %p7934_p5 = scmp.lt.u32.totalorder %s7927_s28, %s11101_s1 }
  0x11   : > { %p8166_p11 = pnand %p7832_p9, %p11104_p1 }
  0x13   : > { %p7929_p13 = pneg %p8166_p11 }
  0x15   : > { %p7930_p0 = pnand %p7929_p13, %p7928_p12 }
  0x17   : > { %p7931_p3 = pneg %p7930_p0 }
  0x19   : > { %p7936_p7 = pnand %p7934_p5, %p7931_p3 }
  0x1b   : > { %7939 = shalt.err (!%p7936_p7)
}
  0x1c   : > { %s7940_s6 = scalar_lea.vmem %s8159_s22, 36864  ;;  %p7948_p2 = scmp.lt.s32.totalorder %s8159_s22, %s8159_s22 }
  0x1d   : > { %p7941_p9 = scmp.ne.s32.totalorder %s8159_s22, %s7940_s6  ;;  %p7949_p12 = scmp.lt.s32.totalorder %s7940_s6, %s7940_s6 }
  0x1f   : > { %p7943_p10 = pnand %p7941_p9, %p7929_p13  ;;  %p7950_p0 = por %p7949_p12, %p7948_p2 }
  0x21   : > { %p7944_p1 = pneg %p7943_p10 }
  0x23   : > { %p7951_p6 = pnand %p7950_p0, %p7944_p1 }
  0x25   : > { %7954 = shalt.err (!%p7951_p6)
}
  0x26   : > { %s8087_s7 = smov 128   ;;  %s8088_s8 = smov 8  }
  0x27   : > { %7835 = dma.hbm_to_vmem [thread:$0]  (!%p8166_p11), %s11101_s1, 36864, %s8159_s22, [#allocation8], %s8087_s7, %s8087_s7, %s8088_s8  }
  0x28   : > { %s7955_s21 = scalar_lea.hbm %s11102_s2, 4096 }
  0x29   : > { %p7956_p1 = scmp.ne.s32.totalorder %s11102_s2, %s7955_s21  ;;  %p7962_p10 = scmp.lt.u32.totalorder %s7955_s21, %s11102_s2 }
  0x2b   : > { %p7958_p2 = pnand %p7956_p1, %p7929_p13 }
  0x2d   : > { %p7959_p6 = pneg %p7958_p2 }
  0x2f   : > { %p7964_p3 = pnand %p7962_p10, %p7959_p6 }
  0x31   : > { %7967 = shalt.err (!%p7964_p3)
}
  0x32   : > { %s7968_s22 = scalar_lea.vmem %s8170_s25, 4096  ;;  %p7976_p12 = scmp.lt.s32.totalorder %s8170_s25, %s8170_s25 }
  0x33   : > { %p7969_p5 = scmp.ne.s32.totalorder %s8170_s25, %s7968_s22  ;;  %p7977_p0 = scmp.lt.s32.totalorder %s7968_s22, %s7968_s22 }
  0x35   : > { %p7971_p7 = pnand %p7969_p5, %p7929_p13  ;;  %p7978_p1 = por %p7977_p0, %p7976_p12 }
  0x37   : > { %p7972_p9 = pneg %p7971_p7 }
  0x39   : > { %p7979_p2 = pnand %p7978_p1, %p7972_p9 }
  0x3b   : > { %7982 = shalt.err (!%p7979_p2)
}
  0x3c   : > { %7838 = dma.hbm_to_vmem [thread:$0]  (!%p8166_p11), %s11102_s2, 4096, %s8170_s25, [#allocation8], %s8087_s7, %s8087_s7, %s8088_s8  }
  0x3d   : > { %s8231_s23 = sadd.s32 1, %s8083_s15   ;;  %s27_s4 = sadd.s32 1, %s8079_s14 }
  0x3e   : > { %s24_s5 = ssub.s32 %s8083_s15, %s8231_s23  ;;  %p34_p13 = scmp.ne.s32.totalorder %s8079_s14, %s8075_s13 }
  0x3f   : > { %p25_p6 = scmp.eq.s32.totalorder %s24_s5, 0  ;;  %p35_p10 = scmp.eq.s32.totalorder %s8083_s15, 0 }
  0x40   : > { %p11306_p3 = scmp.eq.s32.totalorder %s8136_s16, 1  ;;  %p7849_p7 = scmp.lt.s32.totalorder %s8083_s15, 2 }
  0x41   : > { %s8247_s9 = scalar_select %p25_p6, %s8079_s14, %s27_s4  }
  0x42   : > { %p8241_p5 = por %p11306_p3, %p34_p13  ;;  %p36_p9 = por %p35_p10, %p34_p13 }
  0x43   : > { %s158_s10 = sand.u32 1, %s8079_s14   ;;  %s5866_s25 = sshll.u32 %s8083_s15, 12 }
  0x44   : > { %s11307_s6 = scalar_select %p8241_p5, 1, 0 }
  0x45   : > { %s5853_s11 = sshll.u32 %s158_s10, 8  ;;  %s8254_s24 = scalar_lea.hbm %s11100_s0, %s5866_s25 }
  0x46   : > { %s162_s26 = scalar_lea.vmem [#allocation4], %s5853_s11  ;;  %p8258_p11 = pnand %p7849_p7, %p36_p9 }
  0x47   : > { %s169_s27 = sshll.u32 %s162_s26, 4  ;;  %s8262_s22 = scalar_lea.sflag [#allocation5], %s158_s10  ;;  %s8256_s27 = int_to_ptr.vmem [resolvable:$true] %s169_s27 }
  0x48   : > { %s7983_s29 = scalar_lea.hbm %s8254_s24, 4096  ;;  %p7985_p0 = pneg %p8258_p11 }
  0x49   : > { %p7984_p12 = scmp.ne.s32.totalorder %s8254_s24, %s7983_s29  ;;  %s7988_s5 = scalar_lea.hbm %s11100_s0, 8192 }
  0x4a   : > { %p7989_p13 = scmp.lt.u32.totalorder %s8254_s24, %s11100_s0  ;;  %p7990_p6 = scmp.lt.u32.totalorder %s7988_s5, %s7983_s29 }
  0x4b   : > { %p7986_p1 = pnand %p7985_p0, %p7984_p12  ;;  %p7992_p3 = scmp.lt.u32.totalorder %s7983_s29, %s8254_s24 }
  0x4c   : > { %p7991_p10 = por %p7990_p6, %p7989_p13 }
  0x4d   : > { %p7987_p2 = pneg %p7986_p1 }
  0x4e   : > { %p7993_p7 = por %p7992_p3, %p7991_p10 }
  0x50   : > { %p7994_p9 = pnand %p7993_p7, %p7987_p2 }
  0x52   : > { %7997 = shalt.err (!%p7994_p9)
}
  0x53   : > { %s7998_s10 = scalar_lea.vmem %s8256_s27, 4096  ;;  %s8089_s17 = smov [#allocation4]  }
  0x54   : > { %p7999_p12 = scmp.ne.s32.totalorder %s8256_s27, %s7998_s10  ;;  %s8003_s21 = sshll.u32 %s8089_s17, 4  ;;  %s8004_s21 = int_to_ptr.vmem [resolvable:$false] %s8003_s21 }
  0x55   : > { %s8005_s26 = scalar_lea.vmem %s8004_s21, 8192  ;;  %p8006_p4 = scmp.lt.s32.totalorder %s8256_s27, %s8004_s21 }
  0x56   : > { %p8001_p1 = pnand %p7999_p12, %p7985_p0  ;;  %p8007_p13 = scmp.lt.s32.totalorder %s8005_s26, %s7998_s10 }
  0x58   : > { %p8002_p5 = pneg %p8001_p1  ;;  %p8008_p6 = por %p8007_p13, %p8006_p4 }
  0x5a   : > { %p8009_p10 = pnand %p8008_p6, %p8002_p5 }
  0x5c   : > { %8012 = shalt.err (!%p8009_p10)
}
  0x5d   : > { %7842 = dma.hbm_to_vmem [thread:$0]  (!%p8258_p11), %s8254_s24, 4096, %s8256_s27, %s8262_s22, %s8087_s7, %s8087_s7, %s8088_s8  }
  0x5e   : > { %181 = sbr.rel (%p8155_p8) target bundleno = 1583 (0x62f), region = 32 }
  0x65   : > { %s8296_s29 = sand.u32 1, %s8075_s13   ;;  %p11309_p4 = scmp.ne.s32.totalorder %s11302_s18, 0 }
  0x66   : > { %s5857_s30 = sshll.u32 %s8296_s29, 8  ;;  %s184_s4 = scalar_lea.sflag [#allocation5], %s8296_s29 }
  0x67   : > { %s8302_s28 = scalar_lea.vmem [#allocation4], %s5857_s30 }
  0x68   : > { %8058 = dma.done.wait (%p11309_p4), %s184_s4, 4096  }
  0x69   : > { %8060 = vsyncadd (%p11309_p4), %s184_s4, 4294963200  ;;  %p11310_p5 = scmp.eq.s32.totalorder %s8136_s16, 0 }
  0x6b   : > { %8062 = dma.done.wait (%p11310_p5), [#allocation8], 40960   ;;  %p11311_p8 = pmov %p11310_p5 }
  0x6c   : > { %v231_v0 = vlaneseq  ;;  %v11109_v1 = vmov 0.0|0.0   ;;  %v11107_v2 = vmov 0.0   ;;  %v697_v5 = vld [vmem:[#allocation7] sm:$0xff]  ;;  %v698_v6 = vld [vmem:[#allocation7 + $0x8] sm:$0xff]  ;;  %v699_v10 = vld [vmem:[#allocation7 + $0x10] sm:$0xff]  ;;  %s10985_s18 = scalar_lea.vmem [#allocation10], %s5857_s30 }
  0x6d   : > { %8064 = vsyncadd (%p11311_p8), [#allocation8], 4294926336  ;;  %7260 = vmatprep.subr.bf16.mxu0 %v11109_v1  ;;  %6652 = vmatprep.mubr.f32.mxu1 %v11107_v2  ;;  %v729_v7 = vld [vmem:[#allocation7 + $0x100] sm:$0xff]  ;;  %v7261_v8 = vpack.c.bf16 %v698_v6, %v697_v5  ;;  %v730_v9 = vld [vmem:[#allocation7 + $0x108] sm:$0xff]  ;;  %s5867_s20 = sshll.u32 %s8136_s16, 12  ;;  %s5756_s7 = sshll.u32 %s10985_s18, 4  ;;  %s11054_s7 = int_to_ptr.vmem [resolvable:$true] %s5756_s7 }
  0x6e   : > { %v8314_v3 = vshrl.u32 %v231_v0, 7  ;;  %809 = vmatprep.mubr.f32.mxu0 %v11107_v2  ;;  %v700_v11 = vld [vmem:[#allocation7 + $0x18] sm:$0xff]  ;;  %v7308_v12 = vpack.c.bf16 %v730_v9, %v729_v7  ;;  %v731_v13 = vld [vmem:[#allocation7 + $0x110] sm:$0xff]  ;;  %v733_v17 = vld [vmem:[#allocation7 + $0x120] sm:$0xff]  ;;  %s11052_s27 = scalar_lea.hbm %s11103_s3, %s5867_s20  ;;  %s5743_s16 = scalar_lea.sflag [#allocation6], %s8296_s29 }
  0x6f   : > { %v732_v14 = vld [vmem:[#allocation7 + $0x118] sm:$0xff]  ;;  %7262 = vmatpush1.bf16.msra.mxu0 %v7261_v8  ;;  %v7264_v15 = vpack.c.bf16 %v700_v11, %v699_v10  ;;  %v734_v18 = vld [vmem:[#allocation7 + $0x128] sm:$0xff]  ;;  %v701_v19 = vld [vmem:[#allocation7 + $0x20] sm:$0xff]  ;;  %s8013_s22 = scalar_lea.vmem %s11054_s7, 4096  ;;  %p11616_p0 = scmp.ne.s32.totalorder %s11307_s6, 0 }
  0x70   : > { %11312 = vst [vmem:[#allocation14_spill] sm:$0xff] %v8314_v3  ;;  %v8318_v4 = vadd.s32 8, %v8314_v3  ;;  %v7312_v16 = vpack.c.bf16 %v732_v14, %v731_v13  ;;  %7309 = vmatprep.subr.bf16.mxu1 %v7308_v12  ;;  %7263 = vmatprep.subr.bf16.mxu0 %v11109_v1  ;;  %v702_v20 = vld [vmem:[#allocation7 + $0x28] sm:$0xff]  ;;  %v7316_v21 = vpack.c.bf16 %v734_v18, %v733_v17  ;;  %v735_v23 = vld [vmem:[#allocation7 + $0x130] sm:$0xff]  ;;  %v736_v24 = vld [vmem:[#allocation7 + $0x138] sm:$0xff]  ;;  %vm435_vm0 = vcmp.lt.s32.totalorder %v8314_v3, 7  ;;  %p8014_p11 = scmp.ne.s32.totalorder %s11054_s7, %s8013_s22 }
  0x71   : > { %7311 = vmatpush3.bf16.msra.mxu1 %v7308_v12  ;;  %v7267_v22 = vpack.c.bf16 %v702_v20, %v701_v19  ;;  %v703_v25 = vld [vmem:[#allocation7 + $0x30] sm:$0xff]  ;;  %v704_v26 = vld [vmem:[#allocation7 + $0x38] sm:$0xff]  ;;  %v7320_v27 = vpack.c.bf16 %v736_v24, %v735_v23  ;;  %v737_v29 = vld [vmem:[#allocation7 + $0x140] sm:$0xff]  ;;  %vm334_vm2 = vcmp.lt.s32.totalorder %v8314_v3, 1  ;;  %vm7852_vm3 = vcmp.ne.s32.totalorder %v8314_v3, 0  ;;  %s8092_s5 = smov [#allocation10]  }
  0x72   : > { %11313 = vst [vmem:[#allocation15_spill] sm:$0xff] %v8318_v4  ;;  %7313 = vmatprep.subr.bf16.mxu1 %v7312_v16  ;;  %v7270_v28 = vpack.c.bf16 %v704_v26, %v703_v25  ;;  %v738_v30 = vld [vmem:[#allocation7 + $0x148] sm:$0xff]  ;;  %v705_v31 = vld [vmem:[#allocation7 + $0x40] sm:$0xff]  ;;  %v739_v35 = vld [vmem:[#allocation7 + $0x150] sm:$0xff]  ;;  %vm7853_vm1 = vcmp.ne.s32.totalorder %v8318_v4, 15  ;;  %p8015_p2 = pnand %p8014_p11, %p11616_p0  ;;  %s8017_s11 = sshll.u32 %s8092_s5, 4  ;;  %s8018_s11 = int_to_ptr.vmem [resolvable:$false] %s8017_s11 }
  0x73   : > { %7265 = vmatpush1.bf16.msra.mxu0 %v7264_v15  ;;  %v706_v32 = vld [vmem:[#allocation7 + $0x48] sm:$0xff]  ;;  %v7324_v33 = vpack.c.bf16 %v738_v30, %v737_v29  ;;  %v740_v36 = vld [vmem:[#allocation7 + $0x158] sm:$0xff]  ;;  %v707_v37 = vld [vmem:[#allocation7 + $0x50] sm:$0xff]  ;;  %s8019_s25 = scalar_lea.vmem %s8018_s11, 8192  ;;  %p8020_p7 = scmp.lt.s32.totalorder %s11054_s7, %s8018_s11 }
  0x74   : > { %7266 = vmatprep.subr.bf16.mxu0 %v11109_v1  ;;  %v7273_v34 = vpack.c.bf16 %v706_v32, %v705_v31  ;;  %v708_v38 = vld [vmem:[#allocation7 + $0x58] sm:$0xff]  ;;  %v7328_v39 = vpack.c.bf16 %v740_v36, %v739_v35  ;;  %v741_v41 = vld [vmem:[#allocation7 + $0x160] sm:$0xff]  ;;  %v742_v42 = vld [vmem:[#allocation7 + $0x168] sm:$0xff]  ;;  %p8016_p3 = pneg %p8015_p2  ;;  %p8021_p9 = scmp.lt.s32.totalorder %s8019_s25, %s8013_s22 }
  0x75   : > { %7315 = vmatpush3.bf16.msra.mxu1 %v7312_v16  ;;  %v7276_v40 = vpack.c.bf16 %v708_v38, %v707_v37  ;;  %v709_v43 = vld [vmem:[#allocation7 + $0x60] sm:$0xff]  ;;  %v710_v44 = vld [vmem:[#allocation7 + $0x68] sm:$0xff]  ;;  %v7332_v45 = vpack.c.bf16 %v742_v42, %v741_v41  ;;  %v743_v46 = vld [vmem:[#allocation7 + $0x170] sm:$0xff] }
  0x76   : > { %7317 = vmatprep.subr.bf16.mxu1 %v7316_v21  ;;  %v7279_v47 = vpack.c.bf16 %v710_v44, %v709_v43  ;;  %v744_v48 = vld [vmem:[#allocation7 + $0x178] sm:$0xff]  ;;  %v238_v49 = vld [vmem:[%s8302_s28] sm:$0xff]  ;;  %v239_v50 = vld [vmem:[%s8302_s28 + $0x8] sm:$0xff]  ;;  %p8022_p12 = por %p8021_p9, %p8020_p7 }
  0x77   : > { %7268 = vmatpush1.bf16.msra.mxu0 %v7267_v22  ;;  %v711_v51 = vld [vmem:[#allocation7 + $0x70] sm:$0xff]  ;;  %v712_v52 = vld [vmem:[#allocation7 + $0x78] sm:$0xff]  ;;  %v7336_v53 = vpack.c.bf16 %v744_v48, %v743_v46  ;;  %v8328_v54 = vmax.f32 %v238_v49, 0.0  ;;  %v8330_v55 = vmax.f32 %v239_v50, 0.0  ;;  %v713_v59 = vld [vmem:[#allocation7 + $0x80] sm:$0xff] }
  0x78   : > { %7269 = vmatprep.subr.bf16.mxu0 %v11109_v1  ;;  %v240_v56 = vld [vmem:[%s8302_s28 + $0x10] sm:$0xff]  ;;  %v241_v57 = vld [vmem:[%s8302_s28 + $0x18] sm:$0xff]  ;;  %v7282_v58 = vpack.c.bf16 %v712_v52, %v711_v51  ;;  %v714_v60 = vld [vmem:[#allocation7 + $0x88] sm:$0xff]  ;;  %p8023_p1 = pnand %p8022_p12, %p8016_p3 }
  0x79   : > { %7319 = vmatpush3.bf16.msra.mxu1 %v7316_v21  ;;  %v8335_v61 = vmax.f32 %v240_v56, 0.0  ;;  %v8337_v62 = vmax.f32 %v241_v57, 0.0  ;;  %v1356_v63 = vld [vmem:[#allocation7 + $0x180] sm:$0xff]  ;;  %v1357_v0 = vld [vmem:[#allocation7 + $0x188] sm:$0xff]  ;;  %v403_v5 = vrot.slane %v8328_v54, 1  ;;  %v419_v6 = vrot.slane %v8330_v55, 1 }
  0x7a   : > { %7321 = vmatprep.subr.bf16.mxu1 %v7320_v27  ;;  %v7285_v7 = vpack.c.bf16 %v714_v60, %v713_v59  ;;  %v242_v8 = vld [vmem:[%s8302_s28 + $0x20] sm:$0xff]  ;;  %v243_v9 = vld [vmem:[%s8302_s28 + $0x28] sm:$0xff]  ;;  %v715_v10 = vld [vmem:[#allocation7 + $0x90] sm:$0xff]  ;;  %v7341_v12 = vpack.c.bf16 %v1357_v0, %v1356_v63 }
  0x7b   : > { %7271 = vmatpush1.bf16.msra.mxu0 %v7270_v28  ;;  %v716_v11 = vld [vmem:[#allocation7 + $0x98] sm:$0xff]  ;;  %v404_v13 = vrot.slane %v8335_v61, 1  ;;  %v420_v14 = vrot.slane %v8337_v62, 1  ;;  %v8350_v15 = vsel %vm435_vm0, %v403_v5, %v419_v6  ;;  %v1358_v16 = vld [vmem:[#allocation7 + $0x190] sm:$0xff]  ;;  %v8352_v18 = vmax.f32 %v242_v8, 0.0  ;;  %v717_v23 = vld [vmem:[#allocation7 + $0xa0] sm:$0xff] }
  0x7c   : > { %7272 = vmatprep.subr.bf16.mxu0 %v11109_v1  ;;  %v1359_v17 = vld [vmem:[#allocation7 + $0x198] sm:$0xff]  ;;  %v8354_v19 = vmax.f32 %v243_v9, 0.0  ;;  %v7288_v20 = vpack.c.bf16 %v716_v11, %v715_v10  ;;  %v244_v21 = vld [vmem:[%s8302_s28 + $0x30] sm:$0xff]  ;;  %v718_v24 = vld [vmem:[#allocation7 + $0xa8] sm:$0xff]  ;;  %v8364_v25 = vsel %vm435_vm0, %v419_v6, %v403_v5 }
  0x7d   : > { %7323 = vmatpush3.bf16.msra.mxu1 %v7320_v27  ;;  %v245_v22 = vld [vmem:[%s8302_s28 + $0x38] sm:$0xff]  ;;  %v7344_v26 = vpack.c.bf16 %v1359_v17, %v1358_v16  ;;  %v8368_v27 = vsel %vm435_vm0, %v404_v13, %v420_v14  ;;  %v1360_v28 = vld [vmem:[#allocation7 + $0x1a0] sm:$0xff]  ;;  %v1361_v29 = vld [vmem:[#allocation7 + $0x1a8] sm:$0xff]  ;;  %v405_v30 = vrot.slane %v8352_v18, 1  ;;  %v8373_v32 = vmax.f32 %v244_v21, 0.0 }
  0x7e   : > { %7325 = vmatprep.subr.bf16.mxu1 %v7324_v33  ;;  %v421_v31 = vrot.slane %v8354_v19, 1  ;;  %v247_v35 = vld [vmem:[%s8302_s28 + $0x48] sm:$0xff]  ;;  %v7291_v36 = vpack.c.bf16 %v718_v24, %v717_v23  ;;  %v719_v37 = vld [vmem:[#allocation7 + $0xb0] sm:$0xff]  ;;  %v720_v38 = vld [vmem:[#allocation7 + $0xb8] sm:$0xff] }
  0x7f   : > { %7274 = vmatpush1.bf16.msra.mxu0 %v7273_v34  ;;  %v246_v34 = vld [vmem:[%s8302_s28 + $0x40] sm:$0xff]  ;;  %v8390_v42 = vmax.f32 %v247_v35, 0.0  ;;  %v1362_v44 = vld [vmem:[#allocation7 + $0x1b0] sm:$0xff]  ;;  %v406_v46 = vrot.slane %v8373_v32, 1  ;;  %v7294_v48 = vpack.c.bf16 %v720_v38, %v719_v37  ;;  %v249_v50 = vld [vmem:[%s8302_s28 + $0x58] sm:$0xff] }
  0x80   : > { %7275 = vmatprep.subr.bf16.mxu0 %v11109_v1  ;;  %v8388_v41 = vmax.f32 %v246_v34, 0.0  ;;  %v8395_v43 = vsel %vm435_vm0, %v405_v30, %v421_v31  ;;  %v248_v49 = vld [vmem:[%s8302_s28 + $0x50] sm:$0xff]  ;;  %v721_v51 = vld [vmem:[#allocation7 + $0xc0] sm:$0xff]  ;;  %v722_v52 = vld [vmem:[#allocation7 + $0xc8] sm:$0xff]  ;;  %v8419_v5 = vmax.f32 %v249_v50, 0.0 }
  0x81   : > { %7327 = vmatpush3.bf16.msra.mxu1 %v7324_v33  ;;  %v8375_v33 = vmax.f32 %v245_v22, 0.0  ;;  %v1364_v60 = vld [vmem:[#allocation7 + $0x1c0] sm:$0xff]  ;;  %v1365_v63 = vld [vmem:[#allocation7 + $0x1c8] sm:$0xff]  ;;  %v8417_v0 = vmax.f32 %v248_v49, 0.0  ;;  %v7297_v6 = vpack.c.bf16 %v722_v52, %v721_v51  ;;  %v723_v9 = vld [vmem:[#allocation7 + $0xd0] sm:$0xff] }
  0x82   : > { %7329 = vmatprep.subr.bf16.mxu1 %v7328_v39  ;;  %11314 = vst [vmem:[#allocation16_spill] sm:$0xff] %v8388_v41  ;;  %v407_v57 = vrot.slane %v8388_v41, 1  ;;  %v251_v8 = vld [vmem:[%s8302_s28 + $0x68] sm:$0xff]  ;;  %v724_v10 = vld [vmem:[#allocation7 + $0xd8] sm:$0xff]  ;;  %v252_v23 = vld [vmem:[%s8302_s28 + $0x70] sm:$0xff] }
  0x83   : > { %7277 = vmatpush1.bf16.msra.mxu0 %v7276_v40  ;;  %v7347_v40 = vpack.c.bf16 %v1361_v29, %v1360_v28  ;;  %11316 = vst [vmem:[#allocation18_spill] sm:$0xff] %v8417_v0  ;;  %v1367_v16 = vld [vmem:[#allocation7 + $0x1d8] sm:$0xff]  ;;  %v408_v17 = vrot.slane %v8417_v0, 1  ;;  %v8441_v22 = vmax.f32 %v251_v8, 0.0  ;;  %v725_v28 = vld [vmem:[#allocation7 + $0xe0] sm:$0xff]  ;;  %v726_v29 = vld [vmem:[#allocation7 + $0xe8] sm:$0xff] }
  0x84   : > { %7278 = vmatprep.subr.bf16.mxu0 %v11109_v1  ;;  %v253_v24 = vld [vmem:[%s8302_s28 + $0x78] sm:$0xff]  ;;  %v8454_v34 = vmax.f32 %v252_v23, 0.0  ;;  %v1368_v37 = vld [vmem:[#allocation7 + $0x1e0] sm:$0xff]  ;;  %v1369_v38 = vld [vmem:[#allocation7 + $0x1e8] sm:$0xff] }
  0x85   : > { %7331 = vmatpush3.bf16.msra.mxu1 %v7328_v39  ;;  %v8386_v39 = vsel %vm435_vm0, %v420_v14, %v404_v13  ;;  %v1366_v14 = vld [vmem:[#allocation7 + $0x1d0] sm:$0xff]  ;;  %v8456_v35 = vmax.f32 %v253_v24, 0.0  ;;  %v728_v49 = vld [vmem:[#allocation7 + $0xf8] sm:$0xff]  ;;  %v7359_v51 = vpack.c.bf16 %v1369_v38, %v1368_v37  ;;  %v1372_v23 = vld [vmem:[#allocation7 + $0x200] sm:$0xff] }
  0x86   : > { %7333 = vmatprep.subr.bf16.mxu1 %v7332_v45  ;;  %11321 = vst [vmem:[#allocation23_spill] sm:$0xff] %v8454_v34  ;;  %v410_v52 = vrot.slane %v8454_v34, 1  ;;  %v1390_v24 = vld [vmem:[#allocation7 + $0x290] sm:$0xff] }
  0x87   : > { %7280 = vmatpush1.bf16.msra.mxu0 %v7279_v47  ;;  %v422_v47 = vrot.slane %v8375_v33, 1 }
  0x88   : > { %7281 = vmatprep.subr.bf16.mxu0 %v11109_v1 }
  0x89   : > { %7335 = vmatpush3.bf16.msra.mxu1 %v7332_v45  ;;  %v1363_v45 = vld [vmem:[#allocation7 + $0x1b8] sm:$0xff]  ;;  %v8415_v59 = vsel %vm435_vm0, %v406_v46, %v422_v47  ;;  %v8430_v11 = vsel %vm435_vm0, %v422_v47, %v406_v46  ;;  %v254_v46 = vld [vmem:[%s8302_s28 + $0x80] sm:$0xff]  ;;  %v255_v47 = vld [vmem:[%s8302_s28 + $0x88] sm:$0xff] }
  0x8a   : > { %7337 = vmatprep.subr.bf16.mxu1 %v7336_v53  ;;  %v7350_v56 = vpack.c.bf16 %v1363_v45, %v1362_v44  ;;  %11315 = vst [vmem:[#allocation17_spill] sm:$0xff] %v8415_v59  ;;  %11317 = vst [vmem:[#allocation19_spill] sm:$0xff] %v8430_v11  ;;  %v425_v44 = vrot.slane %v8441_v22, 1  ;;  %v7303_v45 = vpack.c.bf16 %v726_v29, %v725_v28  ;;  %v8485_v8 = vmax.f32 %v255_v47, 0.0  ;;  %v1373_v28 = vld [vmem:[#allocation7 + $0x208] sm:$0xff] }
  0x8b   : > { %7283 = vmatpush1.bf16.msra.mxu0 %v7282_v58  ;;  %v423_v58 = vrot.slane %v8390_v42, 1  ;;  %v7365_v47 = vpack.c.bf16 %v1373_v28, %v1372_v23  ;;  %v1394_v28 = vld [vmem:[#allocation7 + $0x2b0] sm:$0xff] }
  0x8c   : > { %7284 = vmatprep.subr.bf16.mxu0 %v11109_v1 }
  0x8d   : > { %7339 = vmatpush3.bf16.msra.mxu1 %v7336_v53  ;;  %v8408_v53 = vsel %vm435_vm0, %v421_v31, %v405_v30  ;;  %v8434_v13 = vsel %vm435_vm0, %v407_v57, %v423_v58  ;;  %v8452_v30 = vsel %vm435_vm0, %v423_v58, %v407_v57  ;;  %v7356_v31 = vpack.c.bf16 %v1367_v16, %v1366_v14  ;;  %v1388_v57 = vld [vmem:[#allocation7 + $0x280] sm:$0xff]  ;;  %v1389_v58 = vld [vmem:[#allocation7 + $0x288] sm:$0xff] }
  0x8e   : > { %7340 = vmatprep.subr.bf16.mxu1 %v11109_v1  ;;  %11318 = vst [vmem:[#allocation20_spill] sm:$0xff] %v8434_v13  ;;  %11320 = vst [vmem:[#allocation22_spill] sm:$0xff] %v8452_v30  ;;  %v7388_v14 = vpack.c.bf16 %v1389_v58, %v1388_v57  ;;  %v1374_v58 = vld [vmem:[#allocation7 + $0x210] sm:$0xff] }
  0x8f   : > { %7286 = vmatpush1.bf16.msra.mxu0 %v7285_v7  ;;  %v250_v7 = vld [vmem:[%s8302_s28 + $0x60] sm:$0xff] }
  0x90   : > { %6653 = vmatmul.mubr.f32.vlgmr.msra.gmra.mrb[0].mxu1 %v11107_v2  ;;  %7287 = vmatprep.subr.bf16.mxu0 %v11109_v1  ;;  %v8439_v21 = vmax.f32 %v250_v7, 0.0  ;;  %v8483_v7 = vmax.f32 %v254_v46, 0.0 }
  0x91   : > { %7342 = vmatpush1.bf16.msra.mxu1 %v7341_v12  ;;  %6655 = vmatprep.mubr.f32.mxu1 %v8350_v15  ;;  %v7353_v12 = vpack.c.bf16 %v1365_v63, %v1364_v60  ;;  %v1370_v63 = vld [vmem:[#allocation7 + $0x1f0] sm:$0xff] }
  0x92   : > { %7343 = vmatprep.subr.bf16.mxu1 %v11109_v1  ;;  %11319 = vst [vmem:[#allocation21_spill] sm:$0xff] %v8439_v21  ;;  %v411_v29 = vrot.slane %v8483_v7, 1 }
  0x93   : > { %7289 = vmatpush1.bf16.msra.mxu0 %v7288_v20  ;;  %v424_v20 = vrot.slane %v8419_v5, 1 }
  0x94   : > { %6656 = vmatmul.mubr.msk.f32.gmra.mrb[2].mxu1 %vm7853_vm1, %v8364_v25  ;;  %7290 = vmatprep.subr.bf16.mxu0 %v11109_v1 }
  0x95   : > { %7345 = vmatpush1.bf16.msra.mxu1 %v7344_v26  ;;  %6658 = vmatprep.mubr.f32.mxu1 %v8368_v27  ;;  %v7300_v26 = vpack.c.bf16 %v724_v10, %v723_v9  ;;  %v8474_v50 = vsel %vm435_vm0, %v424_v20, %v408_v17  ;;  %v256_v10 = vld [vmem:[%s8302_s28 + $0x90] sm:$0xff] }
  0x96   : > { %7346 = vmatprep.subr.bf16.mxu1 %v11109_v1  ;;  %11323 = vst [vmem:[#allocation25_spill] sm:$0xff] %v8474_v50  ;;  %v8505_v37 = vmax.f32 %v256_v10, 0.0  ;;  %v318_v10 = vrot.slane %v8330_v55, 7 }
  0x97   : > { %7292 = vmatpush1.bf16.msra.mxu0 %v7291_v36  ;;  %v8461_v36 = vsel %vm435_vm0, %v408_v17, %v424_v20 }
  0x98   : > { %6659 = vmatmul.mubr.msk.f32.gmra.mrb[4].mxu1 %vm7853_vm1, %v8386_v39  ;;  %7293 = vmatprep.subr.bf16.mxu0 %v11109_v1  ;;  %11322 = vst [vmem:[#allocation24_spill] sm:$0xff] %v8461_v36 }
  0x99   : > { %7348 = vmatpush1.bf16.msra.mxu1 %v7347_v40  ;;  %6661 = vmatprep.mubr.f32.mxu1 %v8395_v43  ;;  %v409_v40 = vrot.slane %v8439_v21, 1 }
  0x9a   : > { %7349 = vmatprep.subr.bf16.mxu1 %v11109_v1 }
  0x9b   : > { %7295 = vmatpush1.bf16.msra.mxu0 %v7294_v48  ;;  %v727_v48 = vld [vmem:[#allocation7 + $0xf0] sm:$0xff]  ;;  %v8481_v60 = vsel %vm435_vm0, %v409_v40, %v425_v44  ;;  %v8496_v16 = vsel %vm435_vm0, %v425_v44, %v409_v40  ;;  %v258_v40 = vld [vmem:[%s8302_s28 + $0xa0] sm:$0xff]  ;;  %v259_v44 = vld [vmem:[%s8302_s28 + $0xa8] sm:$0xff] }
  0x9c   : > { %6662 = vmatmul.mubr.msk.f32.gmra.mrb[6].mxu1 %vm7853_vm1, %v8408_v53  ;;  %7296 = vmatprep.subr.bf16.mxu0 %v11109_v1  ;;  %11324 = vst [vmem:[#allocation26_spill] sm:$0xff] %v8481_v60  ;;  %v7306_v9 = vpack.c.bf16 %v728_v49, %v727_v48  ;;  %11325 = vst [vmem:[#allocation27_spill] sm:$0xff] %v8496_v16  ;;  %v8519_v48 = vmax.f32 %v258_v40, 0.0  ;;  %v1392_v49 = vld [vmem:[#allocation7 + $0x2a0] sm:$0xff]  ;;  %v1395_v40 = vld [vmem:[#allocation7 + $0x2b8] sm:$0xff] }
  0x9d   : > { %7351 = vmatpush1.bf16.msra.mxu1 %v7350_v56  ;;  %6664 = vmatprep.mubr.f32.mxu1 %v8415_v59  ;;  %v426_v56 = vrot.slane %v8456_v35, 1  ;;  %v2081_v59 = vld [vmem:[#allocation7 + $0x408] sm:$0xff] }
  0x9e   : > { %7352 = vmatprep.subr.bf16.mxu1 %v11109_v1 }
  0x9f   : > { %7298 = vmatpush1.bf16.msra.mxu0 %v7297_v6  ;;  %v1371_v6 = vld [vmem:[#allocation7 + $0x1f8] sm:$0xff]  ;;  %v8500_v20 = vsel %vm435_vm0, %v410_v52, %v426_v56  ;;  %v8517_v46 = vsel %vm435_vm0, %v426_v56, %v410_v52  ;;  %v412_v52 = vrot.slane %v8505_v37, 1 }
  0xa0   : > { %6665 = vmatmul.mubr.msk.f32.gmra.mrb[8].mxu1 %vm7853_vm1, %v8430_v11  ;;  %7299 = vmatprep.subr.bf16.mxu0 %v11109_v1  ;;  %v7362_v17 = vpack.c.bf16 %v1371_v6, %v1370_v63  ;;  %11326 = vst [vmem:[#allocation28_spill] sm:$0xff] %v8500_v20  ;;  %11327 = vst [vmem:[#allocation29_spill] sm:$0xff] %v8517_v46  ;;  %v1375_v63 = vld [vmem:[#allocation7 + $0x218] sm:$0xff]  ;;  %v8529_v6 = vmax.f32 %v259_v44, 0.0  ;;  %v1401_v11 = vld [vmem:[#allocation7 + $0x2e8] sm:$0xff] }
  0xa1   : > { %7354 = vmatpush1.bf16.msra.mxu1 %v7353_v12  ;;  %6667 = vmatprep.mubr.f32.mxu1 %v8434_v13  ;;  %v257_v12 = vld [vmem:[%s8302_s28 + $0x98] sm:$0xff]  ;;  %v1400_v13 = vld [vmem:[#allocation7 + $0x2e0] sm:$0xff] }
  0xa2   : > { %7355 = vmatprep.subr.bf16.mxu1 %v11109_v1  ;;  %v8507_v38 = vmax.f32 %v257_v12, 0.0  ;;  %11329 = vst [vmem:[#allocation31_spill] sm:$0xff] %v8529_v6  ;;  %v260_v12 = vld [vmem:[%s8302_s28 + $0xb0] sm:$0xff] }
  0xa3   : > { %7301 = vmatpush1.bf16.msra.mxu0 %v7300_v26  ;;  %v1391_v26 = vld [vmem:[#allocation7 + $0x298] sm:$0xff] }
  0xa4   : > { %6668 = vmatmul.mubr.msk.f32.gmra.mrb[10].mxu1 %vm7853_vm1, %v8452_v30  ;;  %7302 = vmatprep.subr.bf16.mxu0 %v11109_v1  ;;  %v428_v56 = vrot.slane %v8507_v38, 1 }
  0xa5   : > { %7357 = vmatpush1.bf16.msra.mxu1 %v7356_v31  ;;  %6670 = vmatprep.mubr.f32.mxu1 %v8461_v36  ;;  %v427_v31 = vrot.slane %v8485_v8, 1 }
  0xa6   : > { %7358 = vmatprep.subr.bf16.mxu1 %v11109_v1  ;;  %v8550_v44 = vsel %vm435_vm0, %v412_v52, %v428_v56 }
  0xa7   : > { %7304 = vmatpush1.bf16.msra.mxu0 %v7303_v45  ;;  %v7392_v45 = vpack.c.bf16 %v1391_v26, %v1390_v24  ;;  %v8525_v57 = vsel %vm435_vm0, %v411_v29, %v427_v31  ;;  %v7368_v24 = vpack.c.bf16 %v1375_v63, %v1374_v58  ;;  %v413_v26 = vrot.slane %v8519_v48, 1  ;;  %11331 = vst [vmem:[#allocation33_spill] sm:$0xff] %v8550_v44  ;;  %v262_v58 = vld [vmem:[%s8302_s28 + $0xc0] sm:$0xff] }
  0xa8   : > { %6671 = vmatmul.mubr.msk.f32.gmra.mrb[12].mxu1 %vm7853_vm1, %v8474_v50  ;;  %7305 = vmatprep.subr.bf16.mxu0 %v11109_v1  ;;  %11328 = vst [vmem:[#allocation30_spill] sm:$0xff] %v8525_v57  ;;  %v1398_v50 = vld [vmem:[#allocation7 + $0x2d0] sm:$0xff] }
  0xa9   : > { %7360 = vmatpush1.bf16.msra.mxu1 %v7359_v51  ;;  %6673 = vmatprep.mubr.f32.mxu1 %v8481_v60  ;;  %v1393_v51 = vld [vmem:[#allocation7 + $0x2a8] sm:$0xff] }
  0xaa   : > { %7361 = vmatprep.subr.bf16.mxu1 %v11109_v1  ;;  %v7396_v23 = vpack.c.bf16 %v1393_v51, %v1392_v49  ;;  %v1377_v49 = vld [vmem:[#allocation7 + $0x228] sm:$0xff]  ;;  %v429_v51 = vrot.slane %v8529_v6, 1 }
  0xab   : > { %7307 = vmatpush1.bf16.msra.mxu0 %v7306_v9  ;;  %v302_v9 = vrot.slane %v8328_v54, 7 }
  0xac   : > { %6674 = vmatmul.mubr.msk.f32.gmra.mrb[14].mxu1 %vm7853_vm1, %v8496_v16  ;;  %7389 = vmatprep.subr.bf16.mxu0 %v7388_v14  ;;  %v265_v16 = vld [vmem:[%s8302_s28 + $0xd8] sm:$0xff] }
  0xad   : > { %7363 = vmatpush1.bf16.msra.mxu1 %v7362_v17  ;;  %6676 = vmatprep.mubr.f32.mxu1 %v8500_v20  ;;  %v261_v17 = vld [vmem:[%s8302_s28 + $0xb8] sm:$0xff]  ;;  %v8562_v63 = vsel %vm334_vm2, %v318_v10, %v302_v9  ;;  %v264_v20 = vld [vmem:[%s8302_s28 + $0xd0] sm:$0xff] }
  0xae   : > { %810 = vmatmul.mubr.f32.vlgmr.msra.gmra.mrb[0].mxu0 %v11107_v2  ;;  %7364 = vmatprep.subr.bf16.mxu1 %v11109_v1 }
  0xaf   : > { %7391 = vmatpush3.bf16.msra.mxu0 %v7388_v14  ;;  %814 = vmatprep.mubr.f32.mxu0 %v11107_v2  ;;  %v8543_v14 = vsel %vm435_vm0, %v427_v31, %v411_v29  ;;  %v8553_v29 = vmax.f32 %v260_v12, 0.0  ;;  %v8555_v31 = vmax.f32 %v261_v17, 0.0  ;;  %v7400_v12 = vpack.c.bf16 %v1395_v40, %v1394_v28  ;;  %v1378_v28 = vld [vmem:[#allocation7 + $0x230] sm:$0xff] }
  0xb0   : > { %6677 = vmatmul.mubr.msk.f32.gmra.mrb[16].mxu1 %vm7853_vm1, %v8517_v46  ;;  %7393 = vmatprep.subr.bf16.mxu0 %v7392_v45  ;;  %11330 = vst [vmem:[#allocation32_spill] sm:$0xff] %v8543_v14  ;;  %v8571_v17 = vsel %vm435_vm0, %v428_v56, %v412_v52  ;;  %v1397_v46 = vld [vmem:[#allocation7 + $0x2c8] sm:$0xff]  ;;  %v1379_v52 = vld [vmem:[#allocation7 + $0x238] sm:$0xff] }
  0xb1   : > { %7366 = vmatpush1.bf16.msra.mxu1 %v7365_v47  ;;  %6679 = vmatprep.mubr.f32.mxu1 %v8525_v57  ;;  %v1376_v47 = vld [vmem:[#allocation7 + $0x220] sm:$0xff]  ;;  %11332 = vst [vmem:[#allocation34_spill] sm:$0xff] %v8553_v29  ;;  %11333 = vst [vmem:[#allocation35_spill] sm:$0xff] %v8571_v17  ;;  %v8573_v57 = vmax.f32 %v262_v58, 0.0  ;;  %v414_v56 = vrot.slane %v8553_v29, 1  ;;  %v430_v40 = vrot.slane %v8555_v31, 1 }
  0xb2   : > { %815 = vmatmul.mubr.f32.gmra.mrb[2].mxu0 %v11107_v2  ;;  %7367 = vmatprep.subr.bf16.mxu1 %v11109_v1  ;;  %v263_v2 = vld [vmem:[%s8302_s28 + $0xc8] sm:$0xff]  ;;  %v7371_v1 = vpack.c.bf16 %v1377_v49, %v1376_v47  ;;  %v8590_v49 = vsel %vm334_vm2, %v302_v9, %v318_v10  ;;  %v303_v58 = vrot.slane %v8335_v61, 7  ;;  %v8602_v9 = vsel %vm435_vm0, %v429_v51, %v413_v26 }
  0xb3   : > { %819 = vmatprep.mubr.f32.mxu0 %v8328_v54  ;;  %7395 = vmatpush3.bf16.msra.mxu0 %v7392_v45  ;;  %11334 = vst [vmem:[#allocation36_spill] sm:$0xff] %v8573_v57  ;;  %v1396_v45 = vld [vmem:[#allocation7 + $0x2c0] sm:$0xff]  ;;  %v8585_v47 = vmax.f32 %v263_v2, 0.0  ;;  %11338 = vst [vmem:[#allocation39_spill] sm:$0xff] %v8602_v9  ;;  %v7374_v10 = vpack.c.bf16 %v1379_v52, %v1378_v28  ;;  %v415_v60 = vrot.slane %v8573_v57, 1 }
  0xb4   : > { %6680 = vmatmul.mubr.msk.f32.gmra.mrb[18].mxu1 %vm7853_vm1, %v8543_v14  ;;  %7397 = vmatprep.subr.bf16.mxu0 %v7396_v23  ;;  %v11335_v14 = vmov 0.0|0.0   ;;  %v7404_v2 = vpack.c.bf16 %v1397_v46, %v1396_v45  ;;  %v8609_v46 = vsel %vm435_vm0, %v414_v56, %v430_v40  ;;  %v1381_v45 = vld [vmem:[#allocation7 + $0x248] sm:$0xff]  ;;  %v266_v28 = vld [vmem:[%s8302_s28 + $0xe0] sm:$0xff] }
  0xb5   : > { %7369 = vmatpush1.bf16.msra.mxu1 %v7368_v24  ;;  %6682 = vmatprep.mubr.f32.mxu1 %v8550_v44  ;;  %v8581_v24 = vsel %vm435_vm0, %v413_v26, %v429_v51  ;;  %11337 = vst [vmem:[#allocation38_spill] sm:$0xff] %v8585_v47  ;;  %v319_v44 = vrot.slane %v8337_v62, 7  ;;  %11339 = vst [vmem:[#allocation40_spill] sm:$0xff] %v8609_v46  ;;  %v8612_v26 = vmax.f32 %v264_v20, 0.0  ;;  %v8614_v51 = vmax.f32 %v265_v16, 0.0 }
  0xb6   : > { %5869 = vmatmul.mubr.msk.f32.gmra.mrb[4].mxu0 %vm7852_vm3, %v8562_v63  ;;  %7370 = vmatprep.subr.bf16.mxu1 %v11335_v14  ;;  %11336 = vst [vmem:[#allocation37_spill] sm:$0xff] %v8581_v24  ;;  %v8629_v16 = vsel %vm435_vm0, %v430_v40, %v414_v56  ;;  %v8631_v30 = vmax.f32 %v266_v28, 0.0  ;;  %v320_v28 = vrot.slane %v8354_v19, 7 }
  0xb7   : > { %824 = vmatprep.mubr.f32.mxu0 %v8330_v55  ;;  %7399 = vmatpush3.bf16.msra.mxu0 %v7396_v23  ;;  %v1399_v23 = vld [vmem:[#allocation7 + $0x2d8] sm:$0xff]  ;;  %11340 = vst [vmem:[#allocation41_spill] sm:$0xff] %v8612_v26  ;;  %11341 = vst [vmem:[#allocation42_spill] sm:$0xff] %v8614_v51  ;;  %v8620_v52 = vsel %vm334_vm2, %v319_v44, %v303_v58  ;;  %v416_v56 = vrot.slane %v8612_v26, 1  ;;  %v432_v40 = vrot.slane %v8614_v51, 1 }
  0xb8   : > { %6683 = vmatmul.mubr.msk.f32.gmra.mrb[20].mxu1 %vm7853_vm1, %v8571_v17  ;;  %7401 = vmatprep.subr.bf16.mxu0 %v7400_v12  ;;  %v267_v17 = vld [vmem:[%s8302_s28 + $0xe8] sm:$0xff]  ;;  %v7408_v36 = vpack.c.bf16 %v1399_v23, %v1398_v50  ;;  %11342 = vst [vmem:[#allocation43_spill] sm:$0xff] %v8629_v16  ;;  %11343 = vst [vmem:[#allocation44_spill] sm:$0xff] %v8631_v30 }
  0xb9   : > { %7372 = vmatpush1.bf16.msra.mxu1 %v7371_v1  ;;  %6685 = vmatprep.mubr.f32.mxu1 %v8581_v24  ;;  %v1380_v1 = vld [vmem:[#allocation7 + $0x240] sm:$0xff]  ;;  %v431_v24 = vrot.slane %v8585_v47, 1  ;;  %v8643_v23 = vmax.f32 %v267_v17, 0.0 }
  0xba   : > { %825 = vmatmul.mubr.f32.gmra.mrb[6].mxu0 %v8590_v49  ;;  %7373 = vmatprep.subr.bf16.mxu1 %v11335_v14  ;;  %v7377_v20 = vpack.c.bf16 %v1381_v45, %v1380_v1  ;;  %v8648_v1 = vsel %vm334_vm2, %v303_v58, %v319_v44  ;;  %v304_v45 = vrot.slane %v8352_v18, 7  ;;  %v1402_v58 = vld [vmem:[#allocation7 + $0x2f0] sm:$0xff] }
  0xbb   : > { %829 = vmatprep.mubr.f32.mxu0 %v8335_v61  ;;  %7403 = vmatpush3.bf16.msra.mxu0 %v7400_v12  ;;  %v8639_v50 = vsel %vm435_vm0, %v415_v60, %v431_v24  ;;  %v1382_v12 = vld [vmem:[#allocation7 + $0x250] sm:$0xff]  ;;  %11345 = vst [vmem:[#allocation46_spill] sm:$0xff] %v8643_v23  ;;  %v8658_v17 = vsel %vm435_vm0, %v431_v24, %v415_v60 }
  0xbc   : > { %6686 = vmatmul.mubr.msk.f32.gmra.mrb[22].mxu1 %vm7853_vm1, %v8602_v9  ;;  %7405 = vmatprep.subr.bf16.mxu0 %v7404_v2  ;;  %11344 = vst [vmem:[#allocation45_spill] sm:$0xff] %v8639_v50  ;;  %v1403_v9 = vld [vmem:[#allocation7 + $0x2f8] sm:$0xff]  ;;  %v8671_v60 = vsel %vm334_vm2, %v320_v28, %v304_v45 }
  0xbd   : > { %7375 = vmatpush1.bf16.msra.mxu1 %v7374_v10  ;;  %6688 = vmatprep.mubr.f32.mxu1 %v8609_v46  ;;  %v1383_v10 = vld [vmem:[#allocation7 + $0x258] sm:$0xff]  ;;  %v7412_v46 = vpack.c.bf16 %v1401_v11, %v1400_v13  ;;  %v1385_v11 = vld [vmem:[#allocation7 + $0x268] sm:$0xff]  ;;  %v417_v13 = vrot.slane %v8631_v30, 1  ;;  %v7416_v24 = vpack.c.bf16 %v1403_v9, %v1402_v58  ;;  %v1386_v9 = vld [vmem:[#allocation7 + $0x270] sm:$0xff] }
  0xbe   : > { %5871 = vmatmul.mubr.msk.f32.gmra.mrb[8].mxu0 %vm7852_vm3, %v8620_v52  ;;  %7376 = vmatprep.subr.bf16.mxu1 %v11335_v14  ;;  %v7380_v44 = vpack.c.bf16 %v1383_v10, %v1382_v12  ;;  %v8679_v12 = vsel %vm435_vm0, %v432_v40, %v416_v56 }
  0xbf   : > { %834 = vmatprep.mubr.f32.mxu0 %v8337_v62  ;;  %7407 = vmatpush3.bf16.msra.mxu0 %v7404_v2  ;;  %v8664_v2 = vsel %vm435_vm0, %v416_v56, %v432_v40  ;;  %v8692_v56 = vsel %vm334_vm2, %v304_v45, %v320_v28  ;;  %v321_v40 = vrot.slane %v8375_v33, 7  ;;  %v2049_v28 = vld [vmem:[#allocation7 + $0x308] sm:$0xff] }
  0xc0   : > { %6689 = vmatmul.mubr.msk.f32.gmra.mrb[24].mxu1 %vm7853_vm1, %v8629_v16  ;;  %7409 = vmatprep.subr.bf16.mxu0 %v7408_v36  ;;  %v1384_v16 = vld [vmem:[#allocation7 + $0x260] sm:$0xff] }
  0xc1   : > { %7378 = vmatpush1.bf16.msra.mxu1 %v7377_v20  ;;  %6691 = vmatprep.mubr.f32.mxu1 %v8639_v50  ;;  %v433_v20 = vrot.slane %v8643_v23, 1  ;;  %v7383_v10 = vpack.c.bf16 %v1385_v11, %v1384_v16  ;;  %v2080_v50 = vld [vmem:[#allocation7 + $0x400] sm:$0xff]  ;;  %v305_v16 = vrot.slane %v8373_v32, 7 }
  0xc2   : > { %835 = vmatmul.mubr.f32.gmra.mrb[10].mxu0 %v8648_v1  ;;  %7379 = vmatprep.subr.bf16.mxu1 %v11335_v14  ;;  %v8699_v58 = vpack.c.bf16 %v2081_v59, %v2080_v50 }
  0xc3   : > { %839 = vmatprep.mubr.f32.mxu0 %v8352_v18  ;;  %7411 = vmatpush3.bf16.msra.mxu0 %v7408_v36  ;;  %v8687_v36 = vsel %vm435_vm0, %v417_v13, %v433_v20  ;;  %v8704_v11 = vsel %vm435_vm0, %v433_v20, %v417_v13  ;;  %v8711_v59 = vsel %vm334_vm2, %v321_v40, %v305_v16  ;;  %v2050_v13 = vld [vmem:[#allocation7 + $0x310] sm:$0xff]  ;;  %v2051_v20 = vld [vmem:[#allocation7 + $0x318] sm:$0xff] }
  0xc4   : > { %6692 = vmatmul.mubr.msk.f32.gmra.mrb[26].mxu1 %vm7853_vm1, %v8658_v17  ;;  %7413 = vmatprep.subr.bf16.mxu0 %v7412_v46  ;;  %11346 = vst [vmem:[#allocation47_spill] sm:$0xff] %v8704_v11 }
  0xc5   : > { %7381 = vmatpush1.bf16.msra.mxu1 %v7380_v44  ;;  %6694 = vmatprep.mubr.f32.mxu1 %v8664_v2  ;;  %v1387_v44 = vld [vmem:[#allocation7 + $0x278] sm:$0xff] }
  0xc6   : > { %5873 = vmatmul.mubr.msk.f32.gmra.mrb[12].mxu0 %vm7852_vm3, %v8671_v60  ;;  %7382 = vmatprep.subr.bf16.mxu1 %v11335_v14  ;;  %v7386_v45 = vpack.c.bf16 %v1387_v44, %v1386_v9  ;;  %v322_v9 = vrot.slane %v8390_v42, 7  ;;  %v2052_v44 = vld [vmem:[#allocation7 + $0x320] sm:$0xff] }
  0xc7   : > { %844 = vmatprep.mubr.f32.mxu0 %v8354_v19  ;;  %7415 = vmatpush3.bf16.msra.mxu0 %v7412_v46  ;;  %v2048_v46 = vld [vmem:[#allocation7 + $0x300] sm:$0xff] }
  0xc8   : > { %6695 = vmatmul.mubr.msk.f32.gmra.mrb[28].mxu1 %vm7853_vm1, %v8679_v12  ;;  %7417 = vmatprep.subr.bf16.mxu0 %v7416_v24  ;;  %v7421_v50 = vpack.c.bf16 %v2049_v28, %v2048_v46  ;;  %v323_v28 = vrot.slane %v8419_v5, 7 }
  0xc9   : > { %7384 = vmatpush1.bf16.msra.mxu1 %v7383_v10  ;;  %6697 = vmatprep.mubr.f32.mxu1 %v8687_v36  ;;  %v306_v10 = vrot.slane %v8388_v41, 7 }
  0xca   : > { %845 = vmatmul.mubr.f32.gmra.mrb[14].mxu0 %v8692_v56  ;;  %7385 = vmatprep.subr.bf16.mxu1 %v11335_v14 }
  0xcb   : > { %849 = vmatprep.mubr.f32.mxu0 %v8373_v32  ;;  %7419 = vmatpush3.bf16.msra.mxu0 %v7416_v24  ;;  %v8725_v24 = vsel %vm334_vm2, %v305_v16, %v321_v40  ;;  %v8738_v16 = vsel %vm334_vm2, %v322_v9, %v306_v10  ;;  %v2055_v40 = vld [vmem:[#allocation7 + $0x338] sm:$0xff]  ;;  %v8749_v46 = vsel %vm334_vm2, %v306_v10, %v322_v9 }
  0xcc   : > { %6698 = vmatmul.mubr.msk.f32.gmra.mrb[30].mxu1 %vm7853_vm1, %v8704_v11  ;;  %7469 = vmatprep.subr.bf16.mxu0 %v8699_v58  ;;  %11347 = vst [vmem:[#allocation48_spill] sm:$0xff] %v8725_v24  ;;  %11348 = vst [vmem:[#allocation49_spill] sm:$0xff] %v8749_v46  ;;  %v325_v11 = vrot.slane %v8456_v35, 7 }
  0xcd   : > { %7387 = vmatpush1.bf16.msra.mxu1 %v7386_v45  ;;  %1468 = vmatprep.mubr.f32.mxu1 %v8328_v54  ;;  %v7424_v54 = vpack.c.bf16 %v2051_v20, %v2050_v13  ;;  %v2053_v45 = vld [vmem:[#allocation7 + $0x328] sm:$0xff]  ;;  %v2056_v13 = vld [vmem:[#allocation7 + $0x340] sm:$0xff] }
  0xce   : > { %5875 = vmatmul.mubr.msk.f32.gmra.mrb[16].mxu0 %vm7852_vm3, %v8711_v59  ;;  %7420 = vmatprep.subr.bf16.mxu1 %v11335_v14  ;;  %v2057_v20 = vld [vmem:[#allocation7 + $0x348] sm:$0xff] }
  0xcf   : > { %854 = vmatprep.mubr.f32.mxu0 %v8375_v33  ;;  %v7433_v9 = vpack.c.bf16 %v2057_v20, %v2056_v13  ;;  %v2061_v13 = vld [vmem:[#allocation7 + $0x368] sm:$0xff]  ;;  %v2062_v20 = vld [vmem:[#allocation7 + $0x370] sm:$0xff] }
  0xd0   : > { %5929 = vmatmul.mubr.msk.f32.vlgmr.msra.gmra.mrb[32].mxu1 %vm7852_vm3, %v8562_v63  ;;  %v2054_v63 = vld [vmem:[#allocation7 + $0x330] sm:$0xff] }
  0xd1   : > { %1473 = vmatprep.mubr.f32.mxu1 %v8330_v55  ;;  %7422 = vmatpush1.bf16.msra.mxu1 %v7421_v50  ;;  %v7427_v55 = vpack.c.bf16 %v2053_v45, %v2052_v44  ;;  %v7430_v50 = vpack.c.bf16 %v2055_v40, %v2054_v63  ;;  %v2059_v44 = vld [vmem:[#allocation7 + $0x358] sm:$0xff]  ;;  %v324_v63 = vrot.slane %v8441_v22, 7 }
  0xd2   : > { %855 = vmatmul.mubr.f32.gmra.mrb[18].mxu0 %v8725_v24  ;;  %7423 = vmatprep.subr.bf16.mxu1 %v11335_v14 }
  0xd3   : > { %859 = vmatprep.mubr.f32.mxu0 %v8388_v41 }
  0xd4   : > { %1474 = vmatmul.mubr.f32.gmra.mrb[34].mxu1 %v8590_v49  ;;  %v307_v49 = vrot.slane %v8417_v0, 7 }
  0xd5   : > { %1478 = vmatprep.mubr.f32.mxu1 %v8335_v61  ;;  %7425 = vmatpush1.bf16.msra.mxu1 %v7424_v54  ;;  %v2058_v54 = vld [vmem:[#allocation7 + $0x350] sm:$0xff] }
  0xd6   : > { %5877 = vmatmul.mubr.msk.f32.gmra.mrb[20].mxu0 %vm7852_vm3, %v8738_v16  ;;  %7426 = vmatprep.subr.bf16.mxu1 %v11335_v14  ;;  %v8762_v10 = vsel %vm334_vm2, %v323_v28, %v307_v49  ;;  %v8773_v45 = vsel %vm334_vm2, %v307_v49, %v323_v28  ;;  %v7436_v40 = vpack.c.bf16 %v2059_v44, %v2058_v54  ;;  %v309_v44 = vrot.slane %v8454_v34, 7 }
  0xd7   : > { %864 = vmatprep.mubr.f32.mxu0 %v8390_v42  ;;  %11349 = vst [vmem:[#allocation50_spill] sm:$0xff] %v8773_v45 }
  0xd8   : > { %5931 = vmatmul.mubr.msk.f32.gmra.mrb[36].mxu1 %vm7852_vm3, %v8620_v52 }
  0xd9   : > { %1483 = vmatprep.mubr.f32.mxu1 %v8337_v62  ;;  %7428 = vmatpush1.bf16.msra.mxu1 %v7427_v55  ;;  %v308_v55 = vrot.slane %v8439_v21, 7 }
  0xda   : > { %865 = vmatmul.mubr.f32.gmra.mrb[22].mxu0 %v8749_v46  ;;  %7429 = vmatprep.subr.bf16.mxu1 %v11335_v14 }
  0xdb   : > { %869 = vmatprep.mubr.f32.mxu0 %v8417_v0  ;;  %v8786_v49 = vsel %vm334_vm2, %v324_v63, %v308_v55  ;;  %v8797_v54 = vsel %vm334_vm2, %v308_v55, %v324_v63  ;;  %v8810_v55 = vsel %vm334_vm2, %v325_v11, %v309_v44 }
  0xdc   : > { %1484 = vmatmul.mubr.f32.gmra.mrb[38].mxu1 %v8648_v1  ;;  %11350 = vst [vmem:[#allocation51_spill] sm:$0xff] %v8797_v54 }
  0xdd   : > { %1488 = vmatprep.mubr.f32.mxu1 %v8352_v18  ;;  %7431 = vmatpush1.bf16.msra.mxu1 %v7430_v50  ;;  %v2060_v50 = vld [vmem:[#allocation7 + $0x360] sm:$0xff] }
  0xde   : > { %5879 = vmatmul.mubr.msk.f32.gmra.mrb[24].mxu0 %vm7852_vm3, %v8762_v10  ;;  %7432 = vmatprep.subr.bf16.mxu1 %v11335_v14  ;;  %v7439_v28 = vpack.c.bf16 %v2061_v13, %v2060_v50  ;;  %v2064_v50 = vld [vmem:[#allocation7 + $0x380] sm:$0xff]  ;;  %v2065_v13 = vld [vmem:[#allocation7 + $0x388] sm:$0xff] }
  0xdf   : > { %874 = vmatprep.mubr.f32.mxu0 %v8419_v5  ;;  %v7445_v63 = vpack.c.bf16 %v2065_v13, %v2064_v50  ;;  %v2068_v50 = vld [vmem:[#allocation7 + $0x3a0] sm:$0xff]  ;;  %v2069_v13 = vld [vmem:[#allocation7 + $0x3a8] sm:$0xff] }
  0xe0   : > { %5933 = vmatmul.mubr.msk.f32.gmra.mrb[40].mxu1 %vm7852_vm3, %v8671_v60 }
  0xe1   : > { %1493 = vmatprep.mubr.f32.mxu1 %v8354_v19  ;;  %7434 = vmatpush1.bf16.msra.mxu1 %v7433_v9  ;;  %v2063_v9 = vld [vmem:[#allocation7 + $0x378] sm:$0xff] }
  0xe2   : > { %875 = vmatmul.mubr.f32.gmra.mrb[26].mxu0 %v8773_v45  ;;  %7435 = vmatprep.subr.bf16.mxu1 %v11335_v14 }
  0xe3   : > { %879 = vmatprep.mubr.f32.mxu0 %v8439_v21 }
  0xe4   : > { %1494 = vmatmul.mubr.f32.gmra.mrb[42].mxu1 %v8692_v56 }
  0xe5   : > { %1498 = vmatprep.mubr.f32.mxu1 %v8373_v32  ;;  %7437 = vmatpush1.bf16.msra.mxu1 %v7436_v40  ;;  %v7442_v40 = vpack.c.bf16 %v2063_v9, %v2062_v20  ;;  %v2067_v20 = vld [vmem:[#allocation7 + $0x398] sm:$0xff]  ;;  %v8821_v9 = vsel %vm334_vm2, %v309_v44, %v325_v11  ;;  %v7451_v44 = vpack.c.bf16 %v2069_v13, %v2068_v50  ;;  %v2072_v50 = vld [vmem:[#allocation7 + $0x3c0] sm:$0xff]  ;;  %v2073_v13 = vld [vmem:[#allocation7 + $0x3c8] sm:$0xff] }
  0xe6   : > { %5881 = vmatmul.mubr.msk.f32.gmra.mrb[28].mxu0 %vm7852_vm3, %v8786_v49  ;;  %7438 = vmatprep.subr.bf16.mxu1 %v11335_v14 }
  0xe7   : > { %884 = vmatprep.mubr.f32.mxu0 %v8441_v22 }
  0xe8   : > { %5935 = vmatmul.mubr.msk.f32.gmra.mrb[44].mxu1 %vm7852_vm3, %v8711_v59 }
  0xe9   : > { %1503 = vmatprep.mubr.f32.mxu1 %v8375_v33  ;;  %7440 = vmatpush1.bf16.msra.mxu1 %v7439_v28  ;;  %v2066_v28 = vld [vmem:[#allocation7 + $0x390] sm:$0xff] }
  0xea   : > { %885 = vmatmul.mubr.f32.gmra.mrb[30].mxu0 %v8797_v54  ;;  %7441 = vmatprep.subr.bf16.mxu1 %v11335_v14 }
  0xeb   : > { %889 = vmatprep.mubr.f32.mxu0 %v8454_v34 }
  0xec   : > { %1504 = vmatmul.mubr.f32.gmra.mrb[46].mxu1 %v8725_v24  ;;  %v310_v24 = vrot.slane %v8483_v7, 7 }
  0xed   : > { %1508 = vmatprep.mubr.f32.mxu1 %v8388_v41  ;;  %7443 = vmatpush1.bf16.msra.mxu1 %v7442_v40  ;;  %v326_v41 = vrot.slane %v8485_v8, 7  ;;  %v7448_v40 = vpack.c.bf16 %v2067_v20, %v2066_v28  ;;  %v2071_v28 = vld [vmem:[#allocation7 + $0x3b8] sm:$0xff] }
  0xee   : > { %5883 = vmatmul.mubr.msk.f32.gmra.mrb[32].mxu0 %vm7852_vm3, %v8810_v55  ;;  %7444 = vmatprep.subr.bf16.mxu1 %v11335_v14 }
  0xef   : > { %894 = vmatprep.mubr.f32.mxu0 %v8456_v35  ;;  %v8834_v11 = vsel %vm334_vm2, %v326_v41, %v310_v24  ;;  %v8845_v20 = vsel %vm334_vm2, %v310_v24, %v326_v41  ;;  %v7457_v24 = vpack.c.bf16 %v2073_v13, %v2072_v50  ;;  %v2076_v50 = vld [vmem:[#allocation7 + $0x3e0] sm:$0xff]  ;;  %v2077_v13 = vld [vmem:[#allocation7 + $0x3e8] sm:$0xff] }
  0xf0   : > { %5937 = vmatmul.mubr.msk.f32.gmra.mrb[48].mxu1 %vm7852_vm3, %v8738_v16 }
  0xf1   : > { %1513 = vmatprep.mubr.f32.mxu1 %v8390_v42  ;;  %7446 = vmatpush1.bf16.msra.mxu1 %v7445_v63  ;;  %v2070_v63 = vld [vmem:[#allocation7 + $0x3b0] sm:$0xff] }
  0xf2   : > { %895 = vmatmul.mubr.f32.gmra.mrb[34].mxu0 %v8821_v9  ;;  %7447 = vmatprep.subr.bf16.mxu1 %v11335_v14 }
  0xf3   : > { %899 = vmatprep.mubr.f32.mxu0 %v8483_v7 }
  0xf4   : > { %1514 = vmatmul.mubr.f32.gmra.mrb[50].mxu1 %v8749_v46  ;;  %v311_v46 = vrot.slane %v8505_v37, 7 }
  0xf5   : > { %1518 = vmatprep.mubr.f32.mxu1 %v8417_v0  ;;  %7449 = vmatpush1.bf16.msra.mxu1 %v7448_v40  ;;  %v327_v0 = vrot.slane %v8507_v38, 7  ;;  %v7454_v40 = vpack.c.bf16 %v2071_v28, %v2070_v63  ;;  %v2075_v63 = vld [vmem:[#allocation7 + $0x3d8] sm:$0xff] }
  0xf6   : > { %5885 = vmatmul.mubr.msk.f32.gmra.mrb[36].mxu0 %vm7852_vm3, %v8834_v11  ;;  %7450 = vmatprep.subr.bf16.mxu1 %v11335_v14 }
  0xf7   : > { %904 = vmatprep.mubr.f32.mxu0 %v8485_v8  ;;  %v8858_v41 = vsel %vm334_vm2, %v327_v0, %v311_v46  ;;  %v8869_v28 = vsel %vm334_vm2, %v311_v46, %v327_v0  ;;  %v7463_v46 = vpack.c.bf16 %v2077_v13, %v2076_v50  ;;  %v314_v50 = vrot.slane %v8573_v57, 7 }
  0xf8   : > { %5939 = vmatmul.mubr.msk.f32.gmra.mrb[52].mxu1 %vm7852_vm3, %v8762_v10  ;;  %v330_v13 = vrot.slane %v8585_v47, 7 }
  0xf9   : > { %1523 = vmatprep.mubr.f32.mxu1 %v8419_v5  ;;  %7452 = vmatpush1.bf16.msra.mxu1 %v7451_v44  ;;  %v2074_v44 = vld [vmem:[#allocation7 + $0x3d0] sm:$0xff] }
  0xfa   : > { %905 = vmatmul.mubr.f32.gmra.mrb[38].mxu0 %v8845_v20  ;;  %7453 = vmatprep.subr.bf16.mxu1 %v11335_v14 }
  0xfb   : > { %909 = vmatprep.mubr.f32.mxu0 %v8505_v37 }
  0xfc   : > { %1524 = vmatmul.mubr.f32.gmra.mrb[54].mxu1 %v8773_v45  ;;  %v312_v45 = vrot.slane %v8519_v48, 7 }
  0xfd   : > { %1528 = vmatprep.mubr.f32.mxu1 %v8439_v21  ;;  %7455 = vmatpush1.bf16.msra.mxu1 %v7454_v40  ;;  %v328_v21 = vrot.slane %v8529_v6, 7  ;;  %v7460_v40 = vpack.c.bf16 %v2075_v63, %v2074_v44  ;;  %v2079_v44 = vld [vmem:[#allocation7 + $0x3f8] sm:$0xff] }
  0xfe   : > { %5887 = vmatmul.mubr.msk.f32.gmra.mrb[40].mxu0 %vm7852_vm3, %v8858_v41  ;;  %7456 = vmatprep.subr.bf16.mxu1 %v11335_v14 }
  0xff   : > { %914 = vmatprep.mubr.f32.mxu0 %v8507_v38  ;;  %v8882_v0 = vsel %vm334_vm2, %v328_v21, %v312_v45  ;;  %v8893_v63 = vsel %vm334_vm2, %v312_v45, %v328_v21 }
 0x100   : > { %5941 = vmatmul.mubr.msk.f32.gmra.mrb[56].mxu1 %vm7852_vm3, %v8786_v49  ;;  %11351 = vst [vmem:[#allocation52_spill] sm:$0xff] %v8893_v63 }
 0x101   : > { %1533 = vmatprep.mubr.f32.mxu1 %v8441_v22  ;;  %7458 = vmatpush1.bf16.msra.mxu1 %v7457_v24  ;;  %v2078_v24 = vld [vmem:[#allocation7 + $0x3f0] sm:$0xff] }
 0x102   : > { %915 = vmatmul.mubr.f32.gmra.mrb[42].mxu0 %v8869_v28  ;;  %7459 = vmatprep.subr.bf16.mxu1 %v11335_v14 }
 0x103   : > { %919 = vmatprep.mubr.f32.mxu0 %v8519_v48 }
 0x104   : > { %1534 = vmatmul.mubr.f32.gmra.mrb[58].mxu1 %v8797_v54  ;;  %v313_v54 = vrot.slane %v8553_v29, 7 }
 0x105   : > { %1538 = vmatprep.mubr.f32.mxu1 %v8454_v34  ;;  %7461 = vmatpush1.bf16.msra.mxu1 %v7460_v40  ;;  %v329_v34 = vrot.slane %v8555_v31, 7  ;;  %v7466_v40 = vpack.c.bf16 %v2079_v44, %v2078_v24  ;;  %v331_v24 = vrot.slane %v8614_v51, 7 }
 0x106   : > { %5889 = vmatmul.mubr.msk.f32.gmra.mrb[44].mxu0 %vm7852_vm3, %v8882_v0  ;;  %7462 = vmatprep.subr.bf16.mxu1 %v11335_v14 }
 0x107   : > { %924 = vmatprep.mubr.f32.mxu0 %v8529_v6  ;;  %v8906_v21 = vsel %vm334_vm2, %v329_v34, %v313_v54  ;;  %v8917_v45 = vsel %vm334_vm2, %v313_v54, %v329_v34  ;;  %v8939_v34 = vsel %vm334_vm2, %v314_v50, %v330_v13  ;;  %v315_v54 = vrot.slane %v8612_v26, 7 }
 0x108   : > { %5943 = vmatmul.mubr.msk.f32.gmra.mrb[60].mxu1 %vm7852_vm3, %v8810_v55  ;;  %11353 = vst [vmem:[#allocation54_spill] sm:$0xff] %v8939_v34 }
 0x109   : > { %1543 = vmatprep.mubr.f32.mxu1 %v8456_v35  ;;  %7464 = vmatpush1.bf16.msra.mxu1 %v7463_v46  ;;  %v8929_v46 = vsel %vm334_vm2, %v330_v13, %v314_v50  ;;  %v8951_v44 = vsel %vm334_vm2, %v331_v24, %v315_v54  ;;  %v316_v50 = vrot.slane %v8631_v30, 7  ;;  %v332_v13 = vrot.slane %v8643_v23, 7 }
 0x10a   : > { %925 = vmatmul.mubr.f32.gmra.mrb[46].mxu0 %v8893_v63  ;;  %7465 = vmatprep.subr.bf16.mxu1 %v11335_v14  ;;  %11352 = vst [vmem:[#allocation53_spill] sm:$0xff] %v8929_v46  ;;  %11354 = vst [vmem:[#allocation55_spill] sm:$0xff] %v8951_v44 }
 0x10b   : > { %929 = vmatprep.mubr.f32.mxu0 %v8553_v29 }
 0x10c   : > { %1544 = vmatmul.mubr.f32.gmra.mrb[62].mxu1 %v8821_v9 }
 0x10d   : > { %1548 = vmatprep.mubr.f32.mxu1 %v8483_v7  ;;  %7467 = vmatpush1.bf16.msra.mxu1 %v7466_v40  ;;  %v8961_v40 = vsel %vm334_vm2, %v315_v54, %v331_v24  ;;  %v8983_v54 = vsel %vm334_vm2, %v316_v50, %v332_v13  ;;  %v2082_v24 = vld [vmem:[#allocation7 + $0x410] sm:$0xff] }
 0x10e   : > { %5891 = vmatmul.mubr.msk.f32.gmra.mrb[48].mxu0 %vm7852_vm3, %v8906_v21  ;;  %7532 = vmatprep.subr.bf16.mxu1 %v11335_v14  ;;  %11355 = vst [vmem:[#allocation56_spill] sm:$0xff] %v8961_v40  ;;  %v8973_v14 = vsel %vm334_vm2, %v332_v13, %v316_v50  ;;  %v2085_v50 = vld [vmem:[#allocation7 + $0x428] sm:$0xff]  ;;  %v2087_v13 = vld [vmem:[#allocation7 + $0x438] sm:$0xff] }
 0x10f   : > { %934 = vmatprep.mubr.f32.mxu0 %v8555_v31 }
 0x110   : > { %5945 = vmatmul.mubr.msk.f32.gmra.mrb[64].mxu1 %vm7852_vm3, %v8834_v11 }
 0x111   : > { %1553 = vmatprep.mubr.f32.mxu1 %v8485_v8 }
 0x112   : > { %935 = vmatmul.mubr.f32.gmra.mrb[50].mxu0 %v8917_v45 }
 0x113   : > { %939 = vmatprep.mubr.f32.mxu0 %v8573_v57 }
 0x114   : > { %1554 = vmatmul.mubr.f32.gmra.mrb[66].mxu1 %v8845_v20 }
 0x115   : > { %1558 = vmatprep.mubr.f32.mxu1 %v8505_v37 }
 0x116   : > { %5893 = vmatmul.mubr.msk.f32.gmra.mrb[52].mxu0 %vm7852_vm3, %v8929_v46 }
 0x117   : > { %944 = vmatprep.mubr.f32.mxu0 %v8585_v47 }
 0x118   : > { %5947 = vmatmul.mubr.msk.f32.gmra.mrb[68].mxu1 %vm7852_vm3, %v8858_v41 }
 0x119   : > { %1563 = vmatprep.mubr.f32.mxu1 %v8507_v38 }
 0x11a   : > { %945 = vmatmul.mubr.f32.gmra.mrb[54].mxu0 %v8939_v34 }
 0x11b   : > { %949 = vmatprep.mubr.f32.mxu0 %v8612_v26 }
 0x11c   : > { %1564 = vmatmul.mubr.f32.gmra.mrb[70].mxu1 %v8869_v28 }
 0x11d   : > { %1568 = vmatprep.mubr.f32.mxu1 %v8519_v48 }
 0x11e   : > { %5895 = vmatmul.mubr.msk.f32.gmra.mrb[56].mxu0 %vm7852_vm3, %v8951_v44 }
 0x11f   : > { %954 = vmatprep.mubr.f32.mxu0 %v8614_v51 }
 0x120   : > { %5949 = vmatmul.mubr.msk.f32.gmra.mrb[72].mxu1 %vm7852_vm3, %v8882_v0 }
 0x121   : > { %1573 = vmatprep.mubr.f32.mxu1 %v8529_v6  ;;  %v2084_v6 = vld [vmem:[#allocation7 + $0x420] sm:$0xff] }
 0x122   : > { %955 = vmatmul.mubr.f32.gmra.mrb[58].mxu0 %v8961_v40 }
 0x123   : > { %959 = vmatprep.mubr.f32.mxu0 %v8631_v30 }
 0x124   : > { %1574 = vmatmul.mubr.f32.gmra.mrb[74].mxu1 %v8893_v63  ;;  %v2083_v63 = vld [vmem:[#allocation7 + $0x418] sm:$0xff] }
 0x125   : > { %1578 = vmatprep.mubr.f32.mxu1 %v8553_v29  ;;  %v7472_v29 = vpack.c.bf16 %v2083_v63, %v2082_v24  ;;  %v2086_v63 = vld [vmem:[#allocation7 + $0x430] sm:$0xff]  ;;  %v11356_v24 = vld [vmem:[#allocation17_spill] sm:$0xff] }
 0x126   : > { %5897 = vmatmul.mubr.msk.f32.gmra.mrb[60].mxu0 %vm7852_vm3, %v8973_v14 }
 0x127   : > { %964 = vmatprep.mubr.f32.mxu0 %v8643_v23 }
 0x128   : > { %5951 = vmatmul.mubr.msk.f32.gmra.mrb[76].mxu1 %vm7852_vm3, %v8906_v21 }
 0x129   : > { %1583 = vmatprep.mubr.f32.mxu1 %v8555_v31 }
 0x12a   : > { %965 = vmatmul.mubr.f32.gmra.mrb[62].mxu0 %v8983_v54 }
 0x12b   : > { %6732 = vmatprep.mubr.f32.mxu0 %v8350_v15  ;;  %v7476_v15 = vpack.c.bf16 %v2085_v50, %v2084_v6  ;;  %v2088_v6 = vld [vmem:[#allocation7 + $0x440] sm:$0xff]  ;;  %v2090_v50 = vld [vmem:[#allocation7 + $0x450] sm:$0xff] }
 0x12c   : > { %1584 = vmatmul.mubr.f32.gmra.mrb[78].mxu1 %v8917_v45 }
 0x12d   : > { %1588 = vmatprep.mubr.f32.mxu1 %v8573_v57  ;;  %v11362_v57 = vld [vmem:[#allocation24_spill] sm:$0xff] }
 0x12e   : > { %6733 = vmatmul.mubr.msk.f32.vlgmr.msra.gmra.mrb[64].mxu0 %vm7853_vm1, %v8364_v25  ;;  %v7480_v25 = vpack.c.bf16 %v2087_v13, %v2086_v63  ;;  %v2091_v63 = vld [vmem:[#allocation7 + $0x458] sm:$0xff]  ;;  %v11357_v13 = vld [vmem:[#allocation19_spill] sm:$0xff] }
 0x12f   : > { %7471 = vmatpush3.bf16.msra.mxu0 %v8699_v58  ;;  %6735 = vmatprep.mubr.f32.mxu0 %v8368_v27  ;;  %v2089_v58 = vld [vmem:[#allocation7 + $0x448] sm:$0xff] }
 0x130   : > { %5953 = vmatmul.mubr.msk.f32.gmra.mrb[80].mxu1 %vm7852_vm3, %v8929_v46  ;;  %7473 = vmatprep.subr.bf16.mxu0 %v7472_v29  ;;  %v11361_v46 = vld [vmem:[#allocation22_spill] sm:$0xff] }
 0x131   : > { %1593 = vmatprep.mubr.f32.mxu1 %v8585_v47  ;;  %v11358_v47 = vld [vmem:[#allocation20_spill] sm:$0xff] }
 0x132   : > { %6736 = vmatmul.mubr.msk.f32.gmra.mrb[66].mxu0 %vm7853_vm1, %v8386_v39 }
 0x133   : > { %6738 = vmatprep.mubr.f32.mxu0 %v8395_v43  ;;  %7475 = vmatpush3.bf16.msra.mxu0 %v7472_v29  ;;  %v7484_v29 = vpack.c.bf16 %v2089_v58, %v2088_v6 }
 0x134   : > { %1594 = vmatmul.mubr.f32.gmra.mrb[82].mxu1 %v8939_v34  ;;  %7477 = vmatprep.subr.bf16.mxu0 %v7476_v15  ;;  %v269_v34 = vld [vmem:[%s8302_s28 + $0xf8] sm:$0xff] }
 0x135   : > { %1598 = vmatprep.mubr.f32.mxu1 %v8612_v26  ;;  %v268_v26 = vld [vmem:[%s8302_s28 + $0xf0] sm:$0xff]  ;;  %v9026_v58 = vmax.f32 %v269_v34, 0.0 }
 0x136   : > { %6739 = vmatmul.mubr.msk.f32.gmra.mrb[68].mxu0 %vm7853_vm1, %v8408_v53  ;;  %v9024_v6 = vmax.f32 %v268_v26, 0.0 }
 0x137   : > { %6741 = vmatprep.mubr.f32.mxu0 %v11356_v24  ;;  %7479 = vmatpush3.bf16.msra.mxu0 %v7476_v15  ;;  %v7488_v15 = vpack.c.bf16 %v2091_v63, %v2090_v50  ;;  %11360 = vst [vmem:[#allocation19_spill] sm:$0xff] %v9026_v58  ;;  %v333_v34 = vrot.slane %v9026_v58, 7  ;;  %v2094_v50 = vld [vmem:[#allocation7 + $0x470] sm:$0xff]  ;;  %v2095_v63 = vld [vmem:[#allocation7 + $0x478] sm:$0xff] }
 0x138   : > { %5955 = vmatmul.mubr.msk.f32.gmra.mrb[84].mxu1 %vm7852_vm3, %v8951_v44  ;;  %7481 = vmatprep.subr.bf16.mxu0 %v7480_v25  ;;  %11359 = vst [vmem:[#allocation17_spill] sm:$0xff] %v9024_v6  ;;  %v2093_v44 = vld [vmem:[#allocation7 + $0x468] sm:$0xff]  ;;  %v317_v26 = vrot.slane %v9024_v6, 7 }
 0x139   : > { %1603 = vmatprep.mubr.f32.mxu1 %v8614_v51  ;;  %v2092_v51 = vld [vmem:[#allocation7 + $0x460] sm:$0xff] }
 0x13a   : > { %6742 = vmatmul.mubr.msk.f32.gmra.mrb[70].mxu0 %vm7853_vm1, %v11357_v13 }
 0x13b   : > { %6744 = vmatprep.mubr.f32.mxu0 %v11358_v47  ;;  %7483 = vmatpush3.bf16.msra.mxu0 %v7480_v25  ;;  %v7492_v25 = vpack.c.bf16 %v2093_v44, %v2092_v51  ;;  %v9046_v51 = vsel %vm334_vm2, %v333_v34, %v317_v26  ;;  %v11366_v44 = vld [vmem:[#allocation27_spill] sm:$0xff] }
 0x13c   : > { %1604 = vmatmul.mubr.f32.gmra.mrb[86].mxu1 %v8961_v40  ;;  %7485 = vmatprep.subr.bf16.mxu0 %v7484_v29  ;;  %v11364_v40 = vld [vmem:[#allocation26_spill] sm:$0xff]  ;;  %11365 = vst [vmem:[#allocation20_spill] sm:$0xff] %v9046_v51 }
 0x13d   : > { %1608 = vmatprep.mubr.f32.mxu1 %v8631_v30  ;;  %v11363_v30 = vld [vmem:[#allocation25_spill] sm:$0xff] }
 0x13e   : > { %6745 = vmatmul.mubr.msk.f32.gmra.mrb[72].mxu0 %vm7853_vm1, %v11361_v46 }
 0x13f   : > { %6747 = vmatprep.mubr.f32.mxu0 %v11362_v57  ;;  %7487 = vmatpush3.bf16.msra.mxu0 %v7484_v29  ;;  %v7496_v29 = vpack.c.bf16 %v2095_v63, %v2094_v50  ;;  %v11369_v50 = vld [vmem:[#allocation29_spill] sm:$0xff]  ;;  %v11370_v63 = vld [vmem:[#allocation30_spill] sm:$0xff] }
 0x140   : > { %5957 = vmatmul.mubr.msk.f32.gmra.mrb[88].mxu1 %vm7852_vm3, %v8973_v14  ;;  %7489 = vmatprep.subr.bf16.mxu0 %v7488_v15 }
 0x141   : > { %1613 = vmatprep.mubr.f32.mxu1 %v8643_v23  ;;  %v11367_v23 = vld [vmem:[#allocation28_spill] sm:$0xff] }
 0x142   : > { %6748 = vmatmul.mubr.msk.f32.gmra.mrb[74].mxu0 %vm7853_vm1, %v11363_v30 }
 0x143   : > { %6750 = vmatprep.mubr.f32.mxu0 %v11364_v40  ;;  %7491 = vmatpush3.bf16.msra.mxu0 %v7488_v15  ;;  %v9058_v15 = vsel %vm334_vm2, %v317_v26, %v333_v34  ;;  %v11373_v26 = vld [vmem:[#allocation35_spill] sm:$0xff]  ;;  %v11374_v34 = vld [vmem:[#allocation37_spill] sm:$0xff] }
 0x144   : > { %1614 = vmatmul.mubr.f32.gmra.mrb[90].mxu1 %v8983_v54  ;;  %7493 = vmatprep.subr.bf16.mxu0 %v7492_v25  ;;  %11368 = vst [vmem:[#allocation22_spill] sm:$0xff] %v9058_v15 }
 0x145   : > { %1618 = vmatprep.mubr.f32.mxu1 %v9024_v6 }
 0x146   : > { %6751 = vmatmul.mubr.msk.f32.gmra.mrb[76].mxu0 %vm7853_vm1, %v11366_v44 }
 0x147   : > { %6753 = vmatprep.mubr.f32.mxu0 %v11367_v23  ;;  %7495 = vmatpush3.bf16.msra.mxu0 %v7492_v25  ;;  %v11371_v25 = vld [vmem:[#allocation32_spill] sm:$0xff] }
 0x148   : > { %5959 = vmatmul.mubr.msk.f32.gmra.mrb[92].mxu1 %vm7852_vm3, %v9046_v51  ;;  %7497 = vmatprep.subr.bf16.mxu0 %v7496_v29  ;;  %v11372_v51 = vld [vmem:[#allocation33_spill] sm:$0xff] }
 0x149   : > { %1623 = vmatprep.mubr.f32.mxu1 %v9026_v58 }
 0x14a   : > { %6754 = vmatmul.mubr.msk.f32.gmra.mrb[78].mxu0 %vm7853_vm1, %v11369_v50 }
 0x14b   : > { %6756 = vmatprep.mubr.f32.mxu0 %v11370_v63  ;;  %7499 = vmatpush3.bf16.msra.mxu0 %v7496_v29  ;;  %v11376_v29 = vld [vmem:[#allocation40_spill] sm:$0xff] }
 0x14c   : > { %1624 = vmatmul.mubr.f32.gmra.mrb[94].mxu1 %v9058_v15  ;;  %v11381_v15 = vld [vmem:[#allocation47_spill] sm:$0xff] }
 0x14d   : > { %2160 = vmatprep.mubr.f32.mxu1 %v8335_v61  ;;  %v11375_v61 = vld [vmem:[#allocation39_spill] sm:$0xff] }
 0x14e   : > { %6757 = vmatmul.mubr.msk.f32.gmra.mrb[80].mxu0 %vm7853_vm1, %v11371_v25 }
 0x14f   : > { %6759 = vmatprep.mubr.f32.mxu0 %v11372_v51 }
 0x150   : > { %5993 = vmatmul.mubr.msk.f32.vlgmr.msra.gmra.mrb[96].mxu1 %vm7852_vm3, %v8620_v52  ;;  %v11378_v52 = vld [vmem:[#allocation45_spill] sm:$0xff] }
 0x151   : > { %2165 = vmatprep.mubr.f32.mxu1 %v8337_v62  ;;  %v11377_v62 = vld [vmem:[#allocation43_spill] sm:$0xff] }
 0x152   : > { %6760 = vmatmul.mubr.msk.f32.gmra.mrb[82].mxu0 %vm7853_vm1, %v11373_v26 }
 0x153   : > { %6762 = vmatprep.mubr.f32.mxu0 %v11374_v34 }
 0x154   : > { %2166 = vmatmul.mubr.f32.gmra.mrb[98].mxu1 %v8648_v1  ;;  %v11379_v1 = vld [vmem:[#allocation48_spill] sm:$0xff] }
 0x155   : > { %2170 = vmatprep.mubr.f32.mxu1 %v8352_v18  ;;  %v418_v18 = vrot.slane %v9024_v6, 1  ;;  %v11382_v6 = vld [vmem:[#allocation49_spill] sm:$0xff] }
 0x156   : > { %6763 = vmatmul.mubr.msk.f32.gmra.mrb[84].mxu0 %vm7853_vm1, %v11375_v61 }
 0x157   : > { %6765 = vmatprep.mubr.f32.mxu0 %v11376_v29 }
 0x158   : > { %5995 = vmatmul.mubr.msk.f32.gmra.mrb[100].mxu1 %vm7852_vm3, %v8671_v60 }
 0x159   : > { %2175 = vmatprep.mubr.f32.mxu1 %v8354_v19  ;;  %v434_v19 = vrot.slane %v9026_v58, 1 }
 0x15a   : > { %6766 = vmatmul.mubr.msk.f32.gmra.mrb[86].mxu0 %vm7853_vm1, %v11377_v62 }
 0x15b   : > { %6768 = vmatprep.mubr.f32.mxu0 %v11378_v52  ;;  %v9111_v60 = vsel %vm435_vm0, %v418_v18, %v434_v19 }
 0x15c   : > { %2176 = vmatmul.mubr.f32.gmra.mrb[102].mxu1 %v8692_v56 }
 0x15d   : > { %2180 = vmatprep.mubr.f32.mxu1 %v8373_v32 }
 0x15e   : > { %6769 = vmatmul.mubr.msk.f32.gmra.mrb[88].mxu0 %vm7853_vm1, %v8658_v17 }
 0x15f   : > { %6771 = vmatprep.mubr.f32.mxu0 %v8664_v2 }
 0x160   : > { %5997 = vmatmul.mubr.msk.f32.gmra.mrb[104].mxu1 %vm7852_vm3, %v8711_v59  ;;  %v11380_v59 = vld [vmem:[#allocation16_spill] sm:$0xff] }
 0x161   : > { %2185 = vmatprep.mubr.f32.mxu1 %v8375_v33  ;;  %v9120_v33 = vsel %vm435_vm0, %v434_v19, %v418_v18  ;;  %v11383_v19 = vld [vmem:[#allocation18_spill] sm:$0xff] }
 0x162   : > { %6772 = vmatmul.mubr.msk.f32.gmra.mrb[90].mxu0 %vm7853_vm1, %v8679_v12 }
 0x163   : > { %6774 = vmatprep.mubr.f32.mxu0 %v8687_v36  ;;  %v6654_v32 = vpop.f32.mrb[0].mxu1 }
 0x164   : > { %2186 = vmatmul.mubr.f32.gmra.mrb[106].mxu1 %v11379_v1  ;;  %v1036_v56 = vpop.f32.mrb[1].mxu1 }
 0x165   : > { %2190 = vmatprep.mubr.f32.mxu1 %v11380_v59 }
 0x166   : > { %6775 = vmatmul.mubr.msk.f32.gmra.mrb[92].mxu0 %vm7853_vm1, %v11381_v15 }
 0x167   : > { %6777 = vmatprep.mubr.f32.mxu0 %v9111_v60  ;;  %v9122_v58 = vpop.f32.mrb[2].mxu1 }
 0x168   : > { %5999 = vmatmul.mubr.msk.f32.gmra.mrb[108].mxu1 %vm7852_vm3, %v8738_v16  ;;  %v1046_v1 = vpop.f32.mrb[3].mxu1 }
 0x169   : > { %2195 = vmatprep.mubr.f32.mxu1 %v8390_v42 }
 0x16a   : > { %6778 = vmatmul.mubr.msk.f32.gmra.mrb[94].mxu0 %vm7853_vm1, %v9120_v33 }
 0x16b   : > { %6812 = vmatprep.mubr.f32.mxu0 %v8368_v27  ;;  %v9132_v59 = vpop.f32.mrb[4].mxu1 }
 0x16c   : > { %2196 = vmatmul.mubr.f32.gmra.mrb[110].mxu1 %v11382_v6  ;;  %v9135_v18 = vpop.f32.mrb[5].mxu1  ;;  %v11385_v6 = vld [vmem:[#allocation21_spill] sm:$0xff] }
 0x16d   : > { %2200 = vmatprep.mubr.f32.mxu1 %v11383_v19 }
 0x16e   : > { %6813 = vmatmul.mubr.msk.f32.vlgmr.msra.gmra.mrb[96].mxu0 %vm7853_vm1, %v8386_v39  ;;  %v11384_v39 = vld [vmem:[#allocation50_spill] sm:$0xff] }
 0x16f   : > { %6815 = vmatprep.mubr.f32.mxu0 %v8395_v43  ;;  %v9142_v42 = vpop.f32.mrb[6].mxu1 }
 0x170   : > { %6001 = vmatmul.mubr.msk.f32.gmra.mrb[112].mxu1 %vm7852_vm3, %v8762_v10  ;;  %v9147_v27 = vpop.f32.mrb[7].mxu1 }
 0x171   : > { %2205 = vmatprep.mubr.f32.mxu1 %v8419_v5 }
 0x172   : > { %6816 = vmatmul.mubr.msk.f32.gmra.mrb[98].mxu0 %vm7853_vm1, %v8408_v53 }
 0x173   : > { %6818 = vmatprep.mubr.f32.mxu0 %v11356_v24  ;;  %v9154_v16 = vpop.f32.mrb[8].mxu1  ;;  %v11386_v24 = vld [vmem:[#allocation51_spill] sm:$0xff] }
 0x174   : > { %2206 = vmatmul.mubr.f32.gmra.mrb[114].mxu1 %v11384_v39  ;;  %v9157_v43 = vpop.f32.mrb[9].mxu1 }
 0x175   : > { %2210 = vmatprep.mubr.f32.mxu1 %v11385_v6 }
 0x176   : > { %6819 = vmatmul.mubr.msk.f32.gmra.mrb[100].mxu0 %vm7853_vm1, %v11357_v13  ;;  %v11387_v13 = vld [vmem:[#allocation23_spill] sm:$0xff] }
 0x177   : > { %6821 = vmatprep.mubr.f32.mxu0 %v11358_v47  ;;  %v9164_v5 = vpop.f32.mrb[10].mxu1 }
 0x178   : > { %6003 = vmatmul.mubr.msk.f32.gmra.mrb[116].mxu1 %vm7852_vm3, %v8786_v49  ;;  %v9169_v53 = vpop.f32.mrb[11].mxu1 }
 0x179   : > { %2215 = vmatprep.mubr.f32.mxu1 %v8441_v22 }
 0x17a   : > { %6822 = vmatmul.mubr.msk.f32.gmra.mrb[102].mxu0 %vm7853_vm1, %v11361_v46 }
 0x17b   : > { %6824 = vmatprep.mubr.f32.mxu0 %v11362_v57  ;;  %v9176_v10 = vpop.f32.mrb[12].mxu1 }
 0x17c   : > { %2216 = vmatmul.mubr.f32.gmra.mrb[118].mxu1 %v11386_v24  ;;  %v9179_v47 = vpop.f32.mrb[13].mxu1 }
 0x17d   : > { %2220 = vmatprep.mubr.f32.mxu1 %v11387_v13  ;;  %v2677_v13 = vld [vmem:[#allocation9 + $0x18] sm:$0xff] }
 0x17e   : > { %6825 = vmatmul.mubr.msk.f32.gmra.mrb[104].mxu0 %vm7853_vm1, %v11363_v30 }
 0x17f   : > { %6827 = vmatprep.mubr.f32.mxu0 %v11364_v40  ;;  %v9186_v22 = vpop.f32.mrb[14].mxu1 }
 0x180   : > { %6005 = vmatmul.mubr.msk.f32.gmra.mrb[120].mxu1 %vm7852_vm3, %v8810_v55  ;;  %v9191_v57 = vpop.f32.mrb[15].mxu1 }
 0x181   : > { %v811_v49 = vpop.f32.mrb[0].mxu0  ;;  %2225 = vmatprep.mubr.f32.mxu1 %v8456_v35 }
 0x182   : > { %v9194_v46 = vadd.f32 %v1036_v56, %v811_v49  ;;  %v813_v19 = vpop.f32.mrb[1].mxu0  ;;  %6828 = vmatmul.mubr.msk.f32.gmra.mrb[106].mxu0 %vm7853_vm1, %v11366_v44  ;;  %v2674_v56 = vld [vmem:[#allocation9] sm:$0xff] }
 0x183   : > { %6830 = vmatprep.mubr.f32.mxu0 %v11367_v23  ;;  %v9200_v30 = vpop.f32.mrb[16].mxu1 }
 0x184   : > { %2226 = vmatmul.mubr.f32.gmra.mrb[122].mxu1 %v8821_v9  ;;  %v9203_v40 = vpop.f32.mrb[17].mxu1 }
 0x185   : > { %v816_v55 = vpop.f32.mrb[2].mxu0  ;;  %2230 = vmatprep.mubr.f32.mxu1 %v8483_v7 }
 0x186   : > { %v9206_v39 = vadd.f32 %v6654_v32, %v816_v55  ;;  %v818_v35 = vpop.f32.mrb[3].mxu0  ;;  %6831 = vmatmul.mubr.msk.f32.gmra.mrb[108].mxu0 %vm7853_vm1, %v11369_v50 }
 0x187   : > { %6833 = vmatprep.mubr.f32.mxu0 %v11370_v63  ;;  %v9212_v44 = vpop.f32.mrb[18].mxu1 }
 0x188   : > { %6007 = vmatmul.mubr.msk.f32.gmra.mrb[124].mxu1 %vm7852_vm3, %v8834_v11  ;;  %v9217_v23 = vpop.f32.mrb[19].mxu1 }
 0x189   : > { %v821_v9 = vpop.f32.mrb[4].mxu0  ;;  %2235 = vmatprep.mubr.f32.mxu1 %v8485_v8  ;;  %v2675_v8 = vld [vmem:[#allocation9 + $0x8] sm:$0xff] }
 0x18a   : > { %v9220_v7 = vadd.f32 %v1046_v1, %v821_v9  ;;  %v823_v32 = vpop.f32.mrb[5].mxu0  ;;  %6834 = vmatmul.mubr.msk.f32.gmra.mrb[110].mxu0 %vm7853_vm1, %v11371_v25  ;;  %v11390_v9 = vld [vmem:[#allocation34_spill] sm:$0xff] }
 0x18b   : > { %6836 = vmatprep.mubr.f32.mxu0 %v11372_v51  ;;  %v9226_v50 = vpop.f32.mrb[20].mxu1  ;;  %v7500_v51 = vpack.c.bf16 %v2675_v8, %v2674_v56  ;;  %v2678_v32 = vld [vmem:[#allocation9 + $0x20] sm:$0xff] }
 0x18c   : > { %2236 = vmatmul.mubr.f32.gmra.mrb[126].mxu1 %v8845_v20  ;;  %v9229_v63 = vpop.f32.mrb[21].mxu1 }
 0x18d   : > { %v826_v11 = vpop.f32.mrb[6].mxu0  ;;  %2240 = vmatprep.mubr.f32.mxu1 %v8505_v37  ;;  %7501 = vmatprep.subr.bf16.mxu0 %v7500_v51 }
 0x18e   : > { %v9233_v1 = vadd.f32 %v9122_v58, %v826_v11  ;;  %v828_v6 = vpop.f32.mrb[7].mxu0  ;;  %6837 = vmatmul.mubr.msk.f32.gmra.mrb[112].mxu0 %vm7853_vm1, %v11373_v26  ;;  %v2679_v11 = vld [vmem:[#allocation9 + $0x28] sm:$0xff] }
 0x18f   : > { %6839 = vmatprep.mubr.f32.mxu0 %v11374_v34  ;;  %v9239_v25 = vpop.f32.mrb[22].mxu1  ;;  %7503 = vmatpush3.bf16.msra.mxu0 %v7500_v51 }
 0x190   : > { %6009 = vmatmul.mubr.msk.f32.gmra.mrb[128].mxu1 %vm7852_vm3, %v8858_v41  ;;  %v9244_v37 = vpop.f32.mrb[23].mxu1 }
 0x191   : > { %v831_v20 = vpop.f32.mrb[8].mxu0  ;;  %2245 = vmatprep.mubr.f32.mxu1 %v8507_v38  ;;  %v2676_v38 = vld [vmem:[#allocation9 + $0x10] sm:$0xff] }
 0x192   : > { %v9248_v58 = vadd.f32 %v9135_v18, %v831_v20  ;;  %v833_v26 = vpop.f32.mrb[9].mxu0  ;;  %6840 = vmatmul.mubr.msk.f32.gmra.mrb[114].mxu0 %vm7853_vm1, %v11375_v61  ;;  %v7504_v61 = vpack.c.bf16 %v2677_v13, %v2676_v38  ;;  %v11391_v20 = vld [vmem:[#allocation36_spill] sm:$0xff]  ;;  %v11392_v38 = vmov 0.0  }
 0x193   : > { %6842 = vmatprep.mubr.f32.mxu0 %v11376_v29  ;;  %v9254_v34 = vpop.f32.mrb[24].mxu1  ;;  %v2681_v26 = vld [vmem:[#allocation9 + $0x38] sm:$0xff] }
 0x194   : > { %2246 = vmatmul.mubr.f32.gmra.mrb[130].mxu1 %v8869_v28  ;;  %v9257_v41 = vpop.f32.mrb[25].mxu1  ;;  %7505 = vmatprep.subr.bf16.mxu0 %v7504_v61 }
 0x195   : > { %v836_v24 = vpop.f32.mrb[10].mxu0  ;;  %2250 = vmatprep.mubr.f32.mxu1 %v8519_v48  ;;  %7507 = vmatpush3.bf16.msra.mxu0 %v7504_v61  ;;  %v11394_v61 = vld [vmem:[#allocation38_spill] sm:$0xff] }
 0x196   : > { %v9261_v18 = vadd.f32 %v9132_v59, %v836_v24  ;;  %v838_v49 = vpop.f32.mrb[11].mxu0  ;;  %6843 = vmatmul.mubr.msk.f32.gmra.mrb[116].mxu0 %vm7853_vm1, %v11377_v62  ;;  %v11388_v59 = vld [vmem:[#allocation31_spill] sm:$0xff] }
 0x197   : > { %6845 = vmatprep.mubr.f32.mxu0 %v11378_v52  ;;  %v9267_v29 = vpop.f32.mrb[26].mxu1 }
 0x198   : > { %6011 = vmatmul.mubr.msk.f32.gmra.mrb[132].mxu1 %vm7852_vm3, %v8882_v0  ;;  %v9272_v48 = vpop.f32.mrb[27].mxu1  ;;  %v11389_v0 = vld [vmem:[#allocation52_spill] sm:$0xff] }
 0x199   : > { %v841_v28 = vpop.f32.mrb[12].mxu0  ;;  %2255 = vmatprep.mubr.f32.mxu1 %v11388_v59  ;;  %v11395_v59 = vld [vmem:[#allocation54_spill] sm:$0xff] }
 0x19a   : > { %v9276_v19 = vadd.f32 %v9147_v27, %v841_v28  ;;  %v843_v62 = vpop.f32.mrb[13].mxu0  ;;  %6846 = vmatmul.mubr.msk.f32.gmra.mrb[118].mxu0 %vm7853_vm1, %v8658_v17  ;;  %v7508_v17 = vpack.c.bf16 %v2679_v11, %v2678_v32  ;;  %v2683_v32 = vld [vmem:[#allocation9 + $0x48] sm:$0xff] }
 0x19b   : > { %6848 = vmatprep.mubr.f32.mxu0 %v8664_v2  ;;  %v9282_v52 = vpop.f32.mrb[28].mxu1 }
 0x19c   : > { %2256 = vmatmul.mubr.f32.gmra.mrb[134].mxu1 %v11389_v0  ;;  %v9285_v55 = vpop.f32.mrb[29].mxu1  ;;  %7509 = vmatprep.subr.bf16.mxu0 %v7508_v17 }
 0x19d   : > { %v846_v35 = vpop.f32.mrb[14].mxu0  ;;  %2260 = vmatprep.mubr.f32.mxu1 %v11390_v9  ;;  %7511 = vmatpush3.bf16.msra.mxu0 %v7508_v17  ;;  %v2682_v9 = vld [vmem:[#allocation9 + $0x40] sm:$0xff] }
 0x19e   : > { %v9289_v27 = vadd.f32 %v9142_v42, %v846_v35  ;;  %v848_v56 = vpop.f32.mrb[15].mxu0  ;;  %6849 = vmatmul.mubr.msk.f32.gmra.mrb[120].mxu0 %vm7853_vm1, %v8679_v12  ;;  %v11396_v35 = vld [vmem:[#allocation41_spill] sm:$0xff]  ;;  %v7516_v17 = vpack.c.bf16 %v2683_v32, %v2682_v9 }
 0x19f   : > { %6851 = vmatprep.mubr.f32.mxu0 %v8687_v36  ;;  %v9295_v2 = vpop.f32.mrb[30].mxu1 }
 0x1a0   : > { %6013 = vmatmul.mubr.msk.f32.gmra.mrb[136].mxu1 %vm7852_vm3, %v8906_v21  ;;  %v9300_v8 = vpop.f32.mrb[31].mxu1 }
 0x1a1   : > { %v851_v6 = vpop.f32.mrb[16].mxu0  ;;  %2265 = vmatprep.mubr.f32.mxu1 %v8555_v31  ;;  %v2680_v31 = vld [vmem:[#allocation9 + $0x30] sm:$0xff] }
 0x1a2   : > { %v9304_v42 = vadd.f32 %v9157_v43, %v851_v6  ;;  %v853_v12 = vpop.f32.mrb[17].mxu0  ;;  %6852 = vmatmul.mubr.msk.f32.gmra.mrb[122].mxu0 %vm7853_vm1, %v11381_v15  ;;  %v7512_v15 = vpack.c.bf16 %v2681_v26, %v2680_v31  ;;  %v11397_v6 = vld [vmem:[#allocation55_spill] sm:$0xff]  ;;  %v11399_v26 = vld [vmem:[#allocation56_spill] sm:$0xff] }
 0x1a3   : > { %6854 = vmatprep.mubr.f32.mxu0 %v9111_v60  ;;  %v9310_v36 = vpop.f32.mrb[32].mxu1 }
 0x1a4   : > { %2266 = vmatmul.mubr.f32.gmra.mrb[138].mxu1 %v8917_v45  ;;  %v1472_v21 = vpop.f32.mrb[33].mxu1  ;;  %v11393_v45 = vld [vmem:[#allocation53_spill] sm:$0xff]  ;;  %7513 = vmatprep.subr.bf16.mxu0 %v7512_v15 }
 0x1a5   : > { %v856_v51 = vpop.f32.mrb[18].mxu0  ;;  %2270 = vmatprep.mubr.f32.mxu1 %v11391_v20  ;;  %7515 = vmatpush3.bf16.msra.mxu0 %v7512_v15 }
 0x1a6   : > { %v9315_v43 = vadd.f32 %v9154_v16, %v856_v51  ;;  %v858_v24 = vpop.f32.mrb[19].mxu0  ;;  %6855 = vmatmul.mubr.msk.f32.gmra.mrb[124].mxu0 %vm7853_vm1, %v9120_v33  ;;  %7517 = vmatprep.subr.bf16.mxu0 %v7516_v17  ;;  %v11398_v51 = vld [vmem:[#allocation42_spill] sm:$0xff] }
 0x1a7   : > { %v9320_v60 = vpop.f32.mrb[34].mxu1  ;;  %6857 = vmatprep.mubr.f32.mxu0 %v11392_v38 }
 0x1a8   : > { %6015 = vmatmul.mubr.msk.f32.gmra.mrb[140].mxu1 %vm7852_vm3, %v11393_v45  ;;  %v1477_v13 = vpop.f32.mrb[35].mxu1  ;;  %v11400_v45 = vld [vmem:[#allocation44_spill] sm:$0xff] }
 0x1a9   : > { %v861_v49 = vpop.f32.mrb[20].mxu0  ;;  %2275 = vmatprep.mubr.f32.mxu1 %v11394_v61  ;;  %7519 = vmatpush3.bf16.msra.mxu0 %v7516_v17  ;;  %v2684_v13 = vld [vmem:[#allocation9 + $0x50] sm:$0xff] }
 0x1aa   : > { %v9328_v16 = vadd.f32 %v9169_v53, %v861_v49  ;;  %v863_v28 = vpop.f32.mrb[21].mxu0  ;;  %6858 = vmatmul.mubr.f32.gmra.mrb[126].mxu0 %v11392_v38  ;;  %v2685_v49 = vld [vmem:[#allocation9 + $0x58] sm:$0xff] }
 0x1ab   : > { %v9331_v33 = vpop.f32.mrb[36].mxu1 }
 0x1ac   : > { %2276 = vmatmul.mubr.f32.gmra.mrb[142].mxu1 %v11395_v59  ;;  %v1482_v62 = vpop.f32.mrb[37].mxu1  ;;  %v7520_v59 = vpack.c.bf16 %v2685_v49, %v2684_v13  ;;  %v11405_v49 = vld [vmem:[#allocation22_spill] sm:$0xff] }
 0x1ad   : > { %v866_v0 = vpop.f32.mrb[22].mxu0  ;;  %2280 = vmatprep.mubr.f32.mxu1 %v11396_v35  ;;  %v11401_v35 = vld [vmem:[#allocation46_spill] sm:$0xff] }
 0x1ae   : > { %v9336_v11 = vadd.f32 %v9164_v5, %v866_v0  ;;  %v868_v56 = vpop.f32.mrb[23].mxu0  ;;  %7521 = vmatprep.subr.bf16.mxu0 %v7520_v59 }
 0x1af   : > { %v9338_v53 = vpop.f32.mrb[38].mxu1  ;;  %7523 = vmatpush3.bf16.msra.mxu0 %v7520_v59  ;;  %v2688_v59 = vld [vmem:[#allocation9 + $0x70] sm:$0xff] }
 0x1b0   : > { %6017 = vmatmul.mubr.msk.f32.gmra.mrb[144].mxu1 %vm7852_vm3, %v11397_v6  ;;  %v1487_v12 = vpop.f32.mrb[39].mxu1  ;;  %v11402_v6 = vld [vmem:[#allocation17_spill] sm:$0xff] }
 0x1b1   : > { %v871_v21 = vpop.f32.mrb[24].mxu0  ;;  %2285 = vmatprep.mubr.f32.mxu1 %v11398_v51  ;;  %v2686_v12 = vld [vmem:[#allocation9 + $0x60] sm:$0xff] }
 0x1b2   : > { %v9345_v20 = vadd.f32 %v9179_v47, %v871_v21  ;;  %v873_v31 = vpop.f32.mrb[25].mxu0 }
 0x1b3   : > { %v9347_v5 = vpop.f32.mrb[40].mxu1 }
 0x1b4   : > { %2286 = vmatmul.mubr.f32.gmra.mrb[146].mxu1 %v11399_v26  ;;  %v1492_v24 = vpop.f32.mrb[41].mxu1 }
 0x1b5   : > { %v876_v15 = vpop.f32.mrb[26].mxu0  ;;  %2290 = vmatprep.mubr.f32.mxu1 %v11400_v45 }
 0x1b6   : > { %v9352_v61 = vadd.f32 %v9176_v10, %v876_v15  ;;  %v878_v28 = vpop.f32.mrb[27].mxu0  ;;  %v11404_v15 = vld [vmem:[#allocation19_spill] sm:$0xff] }
 0x1b7   : > { %v9354_v62 = vpop.f32.mrb[42].mxu1 }
 0x1b8   : > { %6019 = vmatmul.mubr.msk.f32.gmra.mrb[148].mxu1 %vm7852_vm3, %v8973_v14  ;;  %v1497_v47 = vpop.f32.mrb[43].mxu1  ;;  %v2687_v14 = vld [vmem:[#allocation9 + $0x68] sm:$0xff] }
 0x1b9   : > { %v881_v0 = vpop.f32.mrb[28].mxu0  ;;  %2295 = vmatprep.mubr.f32.mxu1 %v11401_v35  ;;  %v7524_v31 = vpack.c.bf16 %v2687_v14, %v2686_v12  ;;  %v2689_v47 = vld [vmem:[#allocation9 + $0x78] sm:$0xff] }
 0x1ba   : > { %v9361_v9 = vadd.f32 %v9191_v57, %v881_v0  ;;  %v883_v32 = vpop.f32.mrb[29].mxu0  ;;  %v11403_v57 = vld [vmem:[#allocation20_spill] sm:$0xff]  ;;  %v7528_v35 = vpack.c.bf16 %v2689_v47, %v2688_v59 }
 0x1bb   : > { %v9363_v10 = vpop.f32.mrb[44].mxu1  ;;  %7525 = vmatprep.subr.bf16.mxu0 %v7524_v31 }
 0x1bc   : > { %2296 = vmatmul.mubr.f32.gmra.mrb[150].mxu1 %v8983_v54  ;;  %v1502_v56 = vpop.f32.mrb[45].mxu1  ;;  %7527 = vmatpush3.bf16.msra.mxu0 %v7524_v31 }
 0x1bd   : > { %v886_v17 = vpop.f32.mrb[30].mxu0  ;;  %2300 = vmatprep.mubr.f32.mxu1 %v11402_v6  ;;  %7529 = vmatprep.subr.bf16.mxu0 %v7528_v35 }
 0x1be   : > { %v9368_v21 = vadd.f32 %v9186_v22, %v886_v17  ;;  %v888_v51 = vpop.f32.mrb[31].mxu0 }
 0x1bf   : > { %v9370_v26 = vpop.f32.mrb[46].mxu1 }
 0x1c0   : > { %6021 = vmatmul.mubr.msk.f32.gmra.mrb[152].mxu1 %vm7852_vm3, %v11403_v57  ;;  %v1507_v24 = vpop.f32.mrb[47].mxu1  ;;  %7531 = vmatpush3.bf16.msra.mxu0 %v7528_v35 }
 0x1c1   : > { %v891_v54 = vpop.f32.mrb[32].mxu0  ;;  %2305 = vmatprep.mubr.f32.mxu1 %v11404_v15 }
 0x1c2   : > { %v9377_v45 = vadd.f32 %v9203_v40, %v891_v54  ;;  %v893_v13 = vpop.f32.mrb[33].mxu0 }
 0x1c3   : > { %v9379_v22 = vpop.f32.mrb[48].mxu1 }
 0x1c4   : > { %2306 = vmatmul.mubr.f32.gmra.mrb[154].mxu1 %v11405_v49  ;;  %v1512_v28 = vpop.f32.mrb[49].mxu1 }
 0x1c5   : > { %v896_v0 = vpop.f32.mrb[34].mxu0  ;;  %2310 = vmatprep.mubr.f32.mxu1 %v11392_v38 }
 0x1c6   : > { %v9384_v32 = vadd.f32 %v9200_v30, %v896_v0  ;;  %v898_v56 = vpop.f32.mrb[35].mxu0 }
 0x1c7   : > { %v9386_v17 = vpop.f32.mrb[50].mxu1 }
 0x1c8   : > { %2311 = vmatmul.mubr.f32.gmra.mrb[156].mxu1 %v11392_v38  ;;  %v1517_v40 = vpop.f32.mrb[51].mxu1 }
 0x1c9   : > { %v901_v6 = vpop.f32.mrb[36].mxu0  ;;  %2315 = vmatprep.mubr.f32.mxu1 %v11392_v38 }
 0x1ca   : > { %v9391_v12 = vadd.f32 %v9217_v23, %v901_v6  ;;  %v903_v14 = vpop.f32.mrb[37].mxu0 }
 0x1cb   : > { %v9393_v51 = vpop.f32.mrb[52].mxu1 }
 0x1cc   : > { %2316 = vmatmul.mubr.f32.gmra.mrb[158].mxu1 %v11392_v38  ;;  %v1522_v30 = vpop.f32.mrb[53].mxu1 }
 0x1cd   : > { %v906_v31 = vpop.f32.mrb[38].mxu0  ;;  %3540 = vmatprep.mubr.f32.mxu1 %v11392_v38 }
 0x1ce   : > { %v9398_v57 = vadd.f32 %v9212_v44, %v906_v31  ;;  %v908_v24 = vpop.f32.mrb[39].mxu0 }
 0x1cf   : > { %v9400_v54 = vpop.f32.mrb[54].mxu1 }
 0x1d0   : > { %v1527_v15 = vpop.f32.mrb[55].mxu1 }
 0x1d1   : > { %v911_v13 = vpop.f32.mrb[40].mxu0 }
 0x1d2   : > { %v9403_v23 = vadd.f32 %v9229_v63, %v911_v13  ;;  %v913_v49 = vpop.f32.mrb[41].mxu0 }
 0x1d3   : > { %v9405_v28 = vpop.f32.mrb[56].mxu1 }
 0x1d4   : > { %v1532_v59 = vpop.f32.mrb[57].mxu1 }
 0x1d5   : > { %v916_v47 = vpop.f32.mrb[42].mxu0 }
 0x1d6   : > { %v9408_v0 = vadd.f32 %v9226_v50, %v916_v47  ;;  %v918_v35 = vpop.f32.mrb[43].mxu0 }
 0x1d7   : > { %v9410_v56 = vpop.f32.mrb[58].mxu1 }
 0x1d8   : > { %v1537_v44 = vpop.f32.mrb[59].mxu1 }
 0x1d9   : > { %v921_v40 = vpop.f32.mrb[44].mxu0 }
 0x1da   : > { %v9413_v6 = vadd.f32 %v9244_v37, %v921_v40  ;;  %v923_v14 = vpop.f32.mrb[45].mxu0 }
 0x1db   : > { %v9415_v30 = vpop.f32.mrb[60].mxu1 }
 0x1dc   : > { %v1542_v63 = vpop.f32.mrb[61].mxu1 }
 0x1dd   : > { %v926_v31 = vpop.f32.mrb[46].mxu0 }
 0x1de   : > { %v9418_v24 = vadd.f32 %v9239_v25, %v926_v31  ;;  %v928_v15 = vpop.f32.mrb[47].mxu0 }
 0x1df   : > { %v9420_v13 = vpop.f32.mrb[62].mxu1 }
 0x1e0   : > { %v1547_v50 = vpop.f32.mrb[63].mxu1 }
 0x1e1   : > { %v931_v49 = vpop.f32.mrb[48].mxu0 }
 0x1e2   : > { %v9423_v59 = vadd.f32 %v9257_v41, %v931_v49  ;;  %v933_v47 = vpop.f32.mrb[49].mxu0 }
 0x1e3   : > { %v9425_v35 = vpop.f32.mrb[64].mxu1 }
 0x1e4   : > { %v1552_v37 = vpop.f32.mrb[65].mxu1 }
 0x1e5   : > { %v936_v44 = vpop.f32.mrb[50].mxu0 }
 0x1e6   : > { %v9428_v40 = vadd.f32 %v9254_v34, %v936_v44  ;;  %v938_v14 = vpop.f32.mrb[51].mxu0 }
 0x1e7   : > { %v9430_v63 = vpop.f32.mrb[66].mxu1 }
 0x1e8   : > { %v1557_v25 = vpop.f32.mrb[67].mxu1 }
 0x1e9   : > { %v941_v31 = vpop.f32.mrb[52].mxu0 }
 0x1ea   : > { %v9433_v15 = vadd.f32 %v9272_v48, %v941_v31  ;;  %v943_v50 = vpop.f32.mrb[53].mxu0 }
 0x1eb   : > { %v9435_v4 = vpop.f32.mrb[68].mxu1 }
 0x1ec   : > { %11406 = vst [vmem:[#allocation24_spill] sm:$0xff] %v9433_v15  ;;  %v1562_v41 = vpop.f32.mrb[69].mxu1 }
 0x1ed   : > { %v946_v49 = vpop.f32.mrb[54].mxu0 }
 0x1ee   : > { %v9438_v47 = vadd.f32 %v9267_v29, %v946_v49  ;;  %v948_v37 = vpop.f32.mrb[55].mxu0 }
 0x1ef   : > { %v9440_v3 = vpop.f32.mrb[70].mxu1 }
 0x1f0   : > { %11407 = vst [vmem:[#allocation25_spill] sm:$0xff] %v9438_v47  ;;  %v1567_v34 = vpop.f32.mrb[71].mxu1 }
 0x1f1   : > { %v951_v44 = vpop.f32.mrb[56].mxu0 }
 0x1f2   : > { %v9443_v14 = vadd.f32 %v9285_v55, %v951_v44  ;;  %v953_v25 = vpop.f32.mrb[57].mxu0 }
 0x1f3   : > { %v9445_v38 = vpop.f32.mrb[72].mxu1 }
 0x1f4   : > { %11408 = vst [vmem:[#allocation26_spill] sm:$0xff] %v9443_v14  ;;  %v1572_v48 = vpop.f32.mrb[73].mxu1 }
 0x1f5   : > { %v956_v31 = vpop.f32.mrb[58].mxu0 }
 0x1f6   : > { %v9448_v50 = vadd.f32 %v9282_v52, %v956_v31  ;;  %v958_v41 = vpop.f32.mrb[59].mxu0 }
 0x1f7   : > { %v9450_v15 = vpop.f32.mrb[74].mxu1 }
 0x1f8   : > { %11409 = vst [vmem:[#allocation27_spill] sm:$0xff] %v9448_v50  ;;  %v1577_v29 = vpop.f32.mrb[75].mxu1 }
 0x1f9   : > { %v961_v49 = vpop.f32.mrb[60].mxu0 }
 0x1fa   : > { %v9453_v37 = vadd.f32 %v9300_v8, %v961_v49  ;;  %v963_v34 = vpop.f32.mrb[61].mxu0 }
 0x1fb   : > { %v9455_v47 = vpop.f32.mrb[76].mxu1 }
 0x1fc   : > { %11410 = vst [vmem:[#allocation28_spill] sm:$0xff] %v9453_v37  ;;  %v1582_v55 = vpop.f32.mrb[77].mxu1 }
 0x1fd   : > { %v966_v44 = vpop.f32.mrb[62].mxu0 }
 0x1fe   : > { %v9458_v25 = vadd.f32 %v9295_v2, %v966_v44  ;;  %v968_v48 = vpop.f32.mrb[63].mxu0 }
 0x1ff   : > { %v9460_v14 = vpop.f32.mrb[78].mxu1 }
 0x200   : > { %v1587_v52 = vpop.f32.mrb[79].mxu1 }
 0x201   : > { %v6734_v31 = vpop.f32.mrb[64].mxu0 }
 0x202   : > { %v1701_v41 = vadd.f32 %v6734_v31, %v9320_v60  ;;  %v1695_v29 = vpop.f32.mrb[65].mxu0 }
 0x203   : > { %v1696_v50 = vadd.f32 %v1695_v29, %v9310_v36  ;;  %v9464_v8 = vpop.f32.mrb[80].mxu1 }
 0x204   : > { %v9467_v49 = vadd.f32 %v1701_v41, %v9206_v39  ;;  %v1592_v34 = vpop.f32.mrb[81].mxu1 }
 0x205   : > { %v9470_v55 = vadd.f32 %v1696_v50, %v9194_v46  ;;  %v6737_v2 = vpop.f32.mrb[66].mxu0 }
 0x206   : > { %v1711_v44 = vadd.f32 %v6737_v2, %v9338_v53  ;;  %v1705_v48 = vpop.f32.mrb[67].mxu0 }
 0x207   : > { %v1706_v52 = vadd.f32 %v1705_v48, %v9331_v33  ;;  %v9474_v37 = vpop.f32.mrb[82].mxu1 }
 0x208   : > { %v9477_v60 = vadd.f32 %v1711_v44, %v9233_v1  ;;  %v1597_v36 = vpop.f32.mrb[83].mxu1 }
 0x209   : > { %v9480_v31 = vadd.f32 %v1706_v52, %v9220_v7  ;;  %v6740_v39 = vpop.f32.mrb[68].mxu0 }
 0x20a   : > { %v1721_v41 = vadd.f32 %v6740_v39, %v9354_v62  ;;  %v1715_v46 = vpop.f32.mrb[69].mxu0 }
 0x20b   : > { %v1716_v50 = vadd.f32 %v1715_v46, %v9347_v5  ;;  %v9484_v29 = vpop.f32.mrb[84].mxu1 }
 0x20c   : > { %v9487_v53 = vadd.f32 %v1721_v41, %v9261_v18  ;;  %v1602_v33 = vpop.f32.mrb[85].mxu1 }
 0x20d   : > { %v9490_v34 = vadd.f32 %v1716_v50, %v9248_v58  ;;  %v6743_v1 = vpop.f32.mrb[70].mxu0 }
 0x20e   : > { %v1731_v2 = vadd.f32 %v6743_v1, %v9370_v26  ;;  %v1725_v7 = vpop.f32.mrb[71].mxu0 }
 0x20f   : > { %v1726_v44 = vadd.f32 %v1725_v7, %v9363_v10  ;;  %v9494_v48 = vpop.f32.mrb[86].mxu1 }
 0x210   : > { %v9497_v62 = vadd.f32 %v1731_v2, %v9289_v27  ;;  %v1607_v5 = vpop.f32.mrb[87].mxu1 }
 0x211   : > { %v9500_v52 = vadd.f32 %v1726_v44, %v9276_v19  ;;  %v6746_v18 = vpop.f32.mrb[72].mxu0 }
 0x212   : > { %v1741_v36 = vadd.f32 %v6746_v18, %v9386_v17  ;;  %v1735_v58 = vpop.f32.mrb[73].mxu0 }
 0x213   : > { %v1736_v39 = vadd.f32 %v1735_v58, %v9379_v22  ;;  %v9504_v41 = vpop.f32.mrb[88].mxu1 }
 0x214   : > { %v9507_v26 = vadd.f32 %v1741_v36, %v9315_v43  ;;  %v1612_v10 = vpop.f32.mrb[89].mxu1 }
 0x215   : > { %v9510_v46 = vadd.f32 %v1736_v39, %v9304_v42  ;;  %v6749_v27 = vpop.f32.mrb[74].mxu0 }
 0x216   : > { %v1751_v50 = vadd.f32 %v6749_v27, %v9400_v54  ;;  %v1745_v19 = vpop.f32.mrb[75].mxu0 }
 0x217   : > { %v1746_v33 = vadd.f32 %v1745_v19, %v9393_v51  ;;  %v9514_v1 = vpop.f32.mrb[90].mxu1 }
 0x218   : > { %v9517_v17 = vadd.f32 %v1751_v50, %v9336_v11  ;;  %v1617_v22 = vpop.f32.mrb[91].mxu1 }
 0x219   : > { %v9520_v2 = vadd.f32 %v1746_v33, %v9328_v16  ;;  %v6752_v43 = vpop.f32.mrb[76].mxu0 }
 0x21a   : > { %v1761_v7 = vadd.f32 %v6752_v43, %v9410_v56  ;;  %v1755_v42 = vpop.f32.mrb[77].mxu0  ;;  %v3428_v43 = vld [vmem:[#allocation7 + $0x480] sm:$0xff] }
 0x21b   : > { %v1756_v44 = vadd.f32 %v1755_v42, %v9405_v28  ;;  %v9524_v5 = vpop.f32.mrb[92].mxu1  ;;  %v3430_v42 = vld [vmem:[#allocation7 + $0x490] sm:$0xff] }
 0x21c   : > { %v9527_v54 = vadd.f32 %v1761_v7, %v9352_v61  ;;  %v1622_v51 = vpop.f32.mrb[93].mxu1  ;;  %v3429_v7 = vld [vmem:[#allocation7 + $0x488] sm:$0xff] }
 0x21d   : > { %v9530_v18 = vadd.f32 %v1756_v44, %v9345_v20  ;;  %v6755_v11 = vpop.f32.mrb[78].mxu0  ;;  %v3431_v51 = vld [vmem:[#allocation7 + $0x498] sm:$0xff] }
 0x21e   : > { %v1771_v36 = vadd.f32 %v6755_v11, %v9420_v13  ;;  %v1765_v16 = vpop.f32.mrb[79].mxu0 }
 0x21f   : > { %v1766_v58 = vadd.f32 %v1765_v16, %v9415_v30  ;;  %v9534_v39 = vpop.f32.mrb[94].mxu1 }
 0x220   : > { %v9537_v56 = vadd.f32 %v1771_v36, %v9368_v21  ;;  %v1627_v28 = vpop.f32.mrb[95].mxu1 }
 0x221   : > { %v9540_v10 = vadd.f32 %v1766_v58, %v9361_v9  ;;  %v6758_v61 = vpop.f32.mrb[80].mxu0  ;;  %v11411_v28 = vmov 0.0|0.0  }
 0x222   : > { %v1781_v27 = vadd.f32 %v6758_v61, %v9430_v63  ;;  %v1775_v20 = vpop.f32.mrb[81].mxu0  ;;  %v3433_v61 = vld [vmem:[#allocation7 + $0x4a8] sm:$0xff] }
 0x223   : > { %v1776_v50 = vadd.f32 %v1775_v20, %v9425_v35  ;;  %v9544_v19 = vpop.f32.mrb[96].mxu1  ;;  %v7533_v35 = vpack.c.bf16 %v3429_v7, %v3428_v43  ;;  %v3435_v43 = vld [vmem:[#allocation7 + $0x4b8] sm:$0xff]  ;;  %v3461_v7 = vld [vmem:[#allocation7 + $0x588] sm:$0xff] }
 0x224   : > { %v9547_v13 = vadd.f32 %v1781_v27, %v9384_v32  ;;  %v2164_v30 = vpop.f32.mrb[97].mxu1 }
 0x225   : > { %v9550_v33 = vadd.f32 %v1776_v50, %v9377_v45  ;;  %v6761_v21 = vpop.f32.mrb[82].mxu0  ;;  %7534 = vmatpush1.bf16.msra.mxu1 %v7533_v35 }
 0x226   : > { %v1791_v22 = vadd.f32 %v6761_v21, %v9440_v3  ;;  %v1785_v9 = vpop.f32.mrb[83].mxu0  ;;  %v7536_v3 = vpack.c.bf16 %v3431_v51, %v3430_v42  ;;  %7535 = vmatprep.subr.bf16.mxu1 %v11411_v28 }
 0x227   : > { %v1786_v63 = vadd.f32 %v1785_v9, %v9435_v4  ;;  %v9554_v44 = vpop.f32.mrb[98].mxu1  ;;  %v3432_v4 = vld [vmem:[#allocation7 + $0x4a0] sm:$0xff] }
 0x228   : > { %v9557_v32 = vadd.f32 %v1791_v22, %v9398_v57  ;;  %v2169_v11 = vpop.f32.mrb[99].mxu1  ;;  %v7539_v21 = vpack.c.bf16 %v3433_v61, %v3432_v4 }
 0x229   : > { %v9560_v45 = vadd.f32 %v1786_v63, %v9391_v12  ;;  %v6764_v36 = vpop.f32.mrb[84].mxu0  ;;  %7537 = vmatpush1.bf16.msra.mxu1 %v7536_v3 }
 0x22a   : > { %v1801_v16 = vadd.f32 %v6764_v36, %v9450_v15  ;;  %v1795_v58 = vpop.f32.mrb[85].mxu0  ;;  %v3434_v15 = vld [vmem:[#allocation7 + $0x4b0] sm:$0xff]  ;;  %7538 = vmatprep.subr.bf16.mxu1 %v11411_v28 }
 0x22b   : > { %v1796_v27 = vadd.f32 %v1795_v58, %v9445_v38  ;;  %v9565_v20 = vpop.f32.mrb[100].mxu1  ;;  %v3460_v38 = vld [vmem:[#allocation7 + $0x580] sm:$0xff]  ;;  %v7542_v11 = vpack.c.bf16 %v3435_v43, %v3434_v15  ;;  %v3439_v15 = vld [vmem:[#allocation7 + $0x4d8] sm:$0xff] }
 0x22c   : > { %v9568_v57 = vadd.f32 %v1801_v16, %v9408_v0  ;;  %v2174_v50 = vpop.f32.mrb[101].mxu1  ;;  %v9578_v63 = vpack.c.bf16 %v3461_v7, %v3460_v38  ;;  %v3437_v16 = vld [vmem:[#allocation7 + $0x4c8] sm:$0xff] }
 0x22d   : > { %v9571_v12 = vadd.f32 %v1796_v27, %v9403_v23  ;;  %v6767_v30 = vpop.f32.mrb[86].mxu0  ;;  %7540 = vmatpush1.bf16.msra.mxu1 %v7539_v21  ;;  %v3438_v21 = vld [vmem:[#allocation7 + $0x4d0] sm:$0xff] }
 0x22e   : > { %v1811_v22 = vadd.f32 %v6767_v30, %v9460_v14  ;;  %v1805_v9 = vpop.f32.mrb[87].mxu0  ;;  %7581 = vmatprep.subr.bf16.mxu0 %v9578_v63  ;;  %7541 = vmatprep.subr.bf16.mxu1 %v11411_v28 }
 0x22f   : > { %v1806_v42 = vadd.f32 %v1805_v9, %v9455_v47  ;;  %v9576_v0 = vpop.f32.mrb[102].mxu1  ;;  %v3436_v47 = vld [vmem:[#allocation7 + $0x4c0] sm:$0xff] }
 0x230   : > { %v9581_v23 = vadd.f32 %v1811_v22, %v9418_v24  ;;  %v2179_v35 = vpop.f32.mrb[103].mxu1  ;;  %v7545_v50 = vpack.c.bf16 %v3437_v16, %v3436_v47 }
 0x231   : > { %v9584_v51 = vadd.f32 %v1806_v42, %v9413_v6  ;;  %v6770_v14 = vpop.f32.mrb[88].mxu0  ;;  %7543 = vmatpush1.bf16.msra.mxu1 %v7542_v11  ;;  %v7548_v42 = vpack.c.bf16 %v3439_v15, %v3438_v21  ;;  %v3441_v11 = vld [vmem:[#allocation7 + $0x4e8] sm:$0xff]  ;;  %v3443_v21 = vld [vmem:[#allocation7 + $0x4f8] sm:$0xff] }
 0x232   : > { %v1821_v36 = vadd.f32 %v6770_v14, %v9474_v37  ;;  %v1815_v3 = vpop.f32.mrb[89].mxu0  ;;  %7544 = vmatprep.subr.bf16.mxu1 %v11411_v28  ;;  %v3440_v14 = vld [vmem:[#allocation7 + $0x4e0] sm:$0xff] }
 0x233   : > { %v1816_v58 = vadd.f32 %v1815_v3, %v9464_v8  ;;  %v9590_v24 = vpop.f32.mrb[104].mxu1  ;;  %v11414_v3 = vld [vmem:[#allocation27_spill] sm:$0xff] }
 0x234   : > { %v9593_v4 = vadd.f32 %v1821_v36, %v9428_v40  ;;  %v2184_v6 = vpop.f32.mrb[105].mxu1  ;;  %v11412_v40 = vld [vmem:[#allocation25_spill] sm:$0xff] }
 0x235   : > { %v9596_v61 = vadd.f32 %v1816_v58, %v9423_v59  ;;  %v6773_v27 = vpop.f32.mrb[90].mxu0  ;;  %v11413_v59 = vld [vmem:[#allocation24_spill] sm:$0xff]  ;;  %7546 = vmatpush1.bf16.msra.mxu1 %v7545_v50  ;;  %v11415_v58 = vld [vmem:[#allocation26_spill] sm:$0xff]  ;;  %v7551_v50 = vpack.c.bf16 %v3441_v11, %v3440_v14  ;;  %v3445_v14 = vld [vmem:[#allocation7 + $0x508] sm:$0xff] }
 0x236   : > { %v1831_v37 = vadd.f32 %v6773_v27, %v9494_v48  ;;  %v1825_v30 = vpop.f32.mrb[91].mxu0  ;;  %7547 = vmatprep.subr.bf16.mxu1 %v11411_v28 }
 0x237   : > { %v1826_v8 = vadd.f32 %v1825_v30, %v9484_v29  ;;  %v9601_v22 = vpop.f32.mrb[106].mxu1  ;;  %v3442_v30 = vld [vmem:[#allocation7 + $0x4f0] sm:$0xff] }
 0x238   : > { %v9604_v9 = vadd.f32 %v1831_v37, %v11412_v40  ;;  %v2189_v43 = vpop.f32.mrb[107].mxu1 }
 0x239   : > { %v9607_v38 = vadd.f32 %v1826_v8, %v11413_v59  ;;  %v6776_v7 = vpop.f32.mrb[92].mxu0  ;;  %7549 = vmatpush1.bf16.msra.mxu1 %v7548_v42  ;;  %v11416_v43 = vld [vmem:[#allocation28_spill] sm:$0xff]  ;;  %v7554_v42 = vpack.c.bf16 %v3443_v21, %v3442_v30  ;;  %v3447_v30 = vld [vmem:[#allocation7 + $0x518] sm:$0xff] }
 0x23a   : > { %v1841_v48 = vadd.f32 %v6776_v7, %v9514_v1  ;;  %v1835_v35 = vpop.f32.mrb[93].mxu0  ;;  %7550 = vmatprep.subr.bf16.mxu1 %v11411_v28 }
 0x23b   : > { %v1836_v29 = vadd.f32 %v1835_v35, %v9504_v41  ;;  %v9612_v36 = vpop.f32.mrb[108].mxu1  ;;  %v3444_v35 = vld [vmem:[#allocation7 + $0x500] sm:$0xff] }
 0x23c   : > { %v9615_v47 = vadd.f32 %v1841_v48, %v11414_v3  ;;  %v2194_v16 = vpop.f32.mrb[109].mxu1 }
 0x23d   : > { %v9618_v6 = vadd.f32 %v1836_v29, %v11415_v58  ;;  %v6779_v27 = vpop.f32.mrb[94].mxu0  ;;  %7552 = vmatpush1.bf16.msra.mxu1 %v7551_v50  ;;  %v7557_v58 = vpack.c.bf16 %v3445_v14, %v3444_v35  ;;  %v3463_v50 = vld [vmem:[#allocation7 + $0x598] sm:$0xff] }
 0x23e   : > { %v1851_v1 = vadd.f32 %v6779_v27, %v9534_v39  ;;  %v1845_v37 = vpop.f32.mrb[95].mxu0  ;;  %7553 = vmatprep.subr.bf16.mxu1 %v11411_v28  ;;  %v3462_v27 = vld [vmem:[#allocation7 + $0x590] sm:$0xff] }
 0x23f   : > { %v1846_v41 = vadd.f32 %v1845_v37, %v9524_v5  ;;  %v9623_v15 = vpop.f32.mrb[110].mxu1  ;;  %v3446_v37 = vld [vmem:[#allocation7 + $0x510] sm:$0xff] }
 0x240   : > { %v9626_v8 = vadd.f32 %v1851_v1, %v9458_v25  ;;  %v2199_v40 = vpop.f32.mrb[111].mxu1 }
 0x241   : > { %v9629_v59 = vadd.f32 %v1846_v41, %v11416_v43  ;;  %v6814_v7 = vpop.f32.mrb[96].mxu0  ;;  %7555 = vmatpush1.bf16.msra.mxu1 %v7554_v42  ;;  %v7584_v43 = vpack.c.bf16 %v3463_v50, %v3462_v27 }
 0x242   : > { %v2393_v39 = vadd.f32 %v6814_v7, %v9554_v44  ;;  %v2387_v48 = vpop.f32.mrb[97].mxu0  ;;  %7556 = vmatprep.subr.bf16.mxu1 %v11411_v28 }
 0x243   : > { %v2388_v5 = vadd.f32 %v2387_v48, %v9544_v19  ;;  %v9634_v11 = vpop.f32.mrb[112].mxu1  ;;  %v3465_v48 = vld [vmem:[#allocation7 + $0x5a8] sm:$0xff] }
 0x244   : > { %v2547_v25 = vadd.f32 %v2393_v39, %v9467_v49  ;;  %v2204_v29 = vpop.f32.mrb[113].mxu1  ;;  %v3464_v39 = vld [vmem:[#allocation7 + $0x5a0] sm:$0xff] }
 0x245   : > { %v2546_v3 = vadd.f32 %v2388_v5, %v9470_v55  ;;  %v6817_v16 = vpop.f32.mrb[98].mxu0  ;;  %7558 = vmatpush1.bf16.msra.mxu1 %v7557_v58  ;;  %v3449_v5 = vld [vmem:[#allocation7 + $0x528] sm:$0xff]  ;;  %v7588_v58 = vpack.c.bf16 %v3465_v48, %v3464_v39 }
 0x246   : > { %v2403_v44 = vadd.f32 %v6817_v16, %v9576_v0  ;;  %v2397_v1 = vpop.f32.mrb[99].mxu0  ;;  %v2643_v49 = vmax.f32 %v2547_v25, 0.0  ;;  %v7560_v0 = vpack.c.bf16 %v3447_v30, %v3446_v37  ;;  %7559 = vmatprep.subr.bf16.mxu1 %v11411_v28  ;;  %v3451_v30 = vld [vmem:[#allocation7 + $0x538] sm:$0xff]  ;;  %v3469_v39 = vld [vmem:[#allocation7 + $0x5c8] sm:$0xff] }
 0x247   : > { %v2642_v19 = vmax.f32 %v2546_v3, 0.0  ;;  %v2398_v21 = vadd.f32 %v2397_v1, %v9565_v20  ;;  %v2207_v41 = vpop.f32.mrb[114].mxu1  ;;  %v3448_v20 = vld [vmem:[#allocation7 + $0x520] sm:$0xff]  ;;  %v3467_v1 = vld [vmem:[#allocation7 + $0x5b8] sm:$0xff] }
 0x248   : > { %v2549_v40 = vadd.f32 %v2403_v44, %v9477_v60  ;;  %v2209_v55 = vpop.f32.mrb[115].mxu1  ;;  %v7563_v50 = vpack.c.bf16 %v3449_v5, %v3448_v20  ;;  %v3466_v44 = vld [vmem:[#allocation7 + $0x5b0] sm:$0xff] }
 0x249   : > { %v2548_v7 = vadd.f32 %v2398_v21, %v9480_v31  ;;  %v6820_v42 = vpop.f32.mrb[100].mxu0  ;;  %6892 = vmatprep.mubr.f32.mxu0 %v2642_v19  ;;  %7561 = vmatpush1.bf16.msra.mxu1 %v7560_v0  ;;  %v7592_v55 = vpack.c.bf16 %v3467_v1, %v3466_v44  ;;  %v3468_v0 = vld [vmem:[#allocation7 + $0x5c0] sm:$0xff] }
 0x24a   : > { %v2413_v35 = vadd.f32 %v6820_v42, %v9601_v22  ;;  %v2407_v14 = vpop.f32.mrb[101].mxu0  ;;  %6893 = vmatmul.mubr.f32.vlgmr.msra.gmra.mrb[128].mxu0 %v2643_v49  ;;  %v2645_v31 = vmax.f32 %v2549_v40, 0.0  ;;  %7562 = vmatprep.subr.bf16.mxu1 %v11411_v28 }
 0x24b   : > { %v2644_v25 = vmax.f32 %v2548_v7, 0.0  ;;  %v2408_v60 = vadd.f32 %v2407_v14, %v9590_v24  ;;  %v9646_v29 = vpop.f32.mrb[116].mxu1  ;;  %7583 = vmatpush3.bf16.msra.mxu0 %v9578_v63  ;;  %v3450_v63 = vld [vmem:[#allocation7 + $0x530] sm:$0xff] }
 0x24c   : > { %v2551_v3 = vadd.f32 %v2413_v35, %v9487_v53  ;;  %v2214_v16 = vpop.f32.mrb[117].mxu1  ;;  %7585 = vmatprep.subr.bf16.mxu0 %v7584_v43  ;;  %v7566_v42 = vpack.c.bf16 %v3451_v30, %v3450_v63 }
 0x24d   : > { %v2550_v22 = vadd.f32 %v2408_v60, %v9490_v34  ;;  %v6823_v27 = vpop.f32.mrb[102].mxu0  ;;  %6895 = vmatprep.mubr.f32.mxu0 %v2644_v25  ;;  %7564 = vmatpush1.bf16.msra.mxu1 %v7563_v50  ;;  %v7596_v60 = vpack.c.bf16 %v3469_v39, %v3468_v0  ;;  %v3470_v16 = vld [vmem:[#allocation7 + $0x5d0] sm:$0xff] }
 0x24e   : > { %v2423_v24 = vadd.f32 %v6823_v27, %v9623_v15  ;;  %v2417_v37 = vpop.f32.mrb[103].mxu0  ;;  %6896 = vmatmul.mubr.f32.gmra.mrb[130].mxu0 %v2645_v31  ;;  %v2647_v34 = vmax.f32 %v2551_v3, 0.0  ;;  %7565 = vmatprep.subr.bf16.mxu1 %v11411_v28 }
 0x24f   : > { %v2646_v53 = vmax.f32 %v2550_v22, 0.0  ;;  %v2418_v19 = vadd.f32 %v2417_v37, %v9612_v36  ;;  %v2217_v21 = vpop.f32.mrb[118].mxu1  ;;  %7587 = vmatpush3.bf16.msra.mxu0 %v7584_v43  ;;  %v3452_v36 = vld [vmem:[#allocation7 + $0x540] sm:$0xff]  ;;  %v3453_v43 = vld [vmem:[#allocation7 + $0x548] sm:$0xff]  ;;  %v3471_v22 = vld [vmem:[#allocation7 + $0x5d8] sm:$0xff] }
 0x250   : > { %v2553_v49 = vadd.f32 %v2423_v24, %v9497_v62  ;;  %v2219_v40 = vpop.f32.mrb[119].mxu1  ;;  %7589 = vmatprep.subr.bf16.mxu0 %v7588_v58  ;;  %v7569_v3 = vpack.c.bf16 %v3453_v43, %v3452_v36  ;;  %v7600_v63 = vpack.c.bf16 %v3471_v22, %v3470_v16 }
 0x251   : > { %v2552_v7 = vadd.f32 %v2418_v19, %v9500_v52  ;;  %v6826_v15 = vpop.f32.mrb[104].mxu0  ;;  %6898 = vmatprep.mubr.f32.mxu0 %v2646_v53  ;;  %7567 = vmatpush1.bf16.msra.mxu1 %v7566_v42 }
 0x252   : > { %v2433_v48 = vadd.f32 %v6826_v15, %v2207_v41  ;;  %v2427_v35 = vpop.f32.mrb[105].mxu0  ;;  %6899 = vmatmul.mubr.f32.gmra.mrb[132].mxu0 %v2647_v34  ;;  %v2649_v5 = vmax.f32 %v2553_v49, 0.0  ;;  %7568 = vmatprep.subr.bf16.mxu1 %v11411_v28  ;;  %v3457_v49 = vld [vmem:[#allocation7 + $0x568] sm:$0xff] }
 0x253   : > { %v2648_v14 = vmax.f32 %v2552_v7, 0.0  ;;  %v2428_v62 = vadd.f32 %v2427_v35, %v9634_v11  ;;  %v2222_v20 = vpop.f32.mrb[120].mxu1  ;;  %7591 = vmatpush3.bf16.msra.mxu0 %v7588_v58  ;;  %v3454_v11 = vld [vmem:[#allocation7 + $0x550] sm:$0xff]  ;;  %v3455_v58 = vld [vmem:[#allocation7 + $0x558] sm:$0xff] }
 0x254   : > { %v2555_v52 = vadd.f32 %v2433_v48, %v9507_v26  ;;  %v2224_v25 = vpop.f32.mrb[121].mxu1  ;;  %7593 = vmatprep.subr.bf16.mxu0 %v7592_v55  ;;  %v7572_v19 = vpack.c.bf16 %v3455_v58, %v3454_v11 }
 0x255   : > { %v2554_v31 = vadd.f32 %v2428_v62, %v9510_v46  ;;  %v6829_v41 = vpop.f32.mrb[106].mxu0  ;;  %6901 = vmatprep.mubr.f32.mxu0 %v2648_v14  ;;  %7570 = vmatpush1.bf16.msra.mxu1 %v7569_v3 }
 0x256   : > { %v2443_v27 = vadd.f32 %v6829_v41, %v2217_v21  ;;  %v2437_v50 = vpop.f32.mrb[107].mxu0  ;;  %6902 = vmatmul.mubr.f32.gmra.mrb[134].mxu0 %v2649_v5  ;;  %v2651_v24 = vmax.f32 %v2555_v52, 0.0  ;;  %7571 = vmatprep.subr.bf16.mxu1 %v11411_v28 }
 0x257   : > { %v2650_v44 = vmax.f32 %v2554_v31, 0.0  ;;  %v2438_v26 = vadd.f32 %v2437_v50, %v9646_v29  ;;  %v2227_v1 = vpop.f32.mrb[122].mxu1  ;;  %7595 = vmatpush3.bf16.msra.mxu0 %v7592_v55  ;;  %v3456_v29 = vld [vmem:[#allocation7 + $0x560] sm:$0xff] }
 0x258   : > { %v2557_v46 = vadd.f32 %v2443_v27, %v9517_v17  ;;  %v2229_v37 = vpop.f32.mrb[123].mxu1  ;;  %7597 = vmatprep.subr.bf16.mxu0 %v7596_v60  ;;  %v7575_v39 = vpack.c.bf16 %v3457_v49, %v3456_v29 }
 0x259   : > { %v2556_v30 = vadd.f32 %v2438_v26, %v9520_v2  ;;  %v6832_v53 = vpop.f32.mrb[108].mxu0  ;;  %6904 = vmatprep.mubr.f32.mxu0 %v2650_v44  ;;  %7573 = vmatpush1.bf16.msra.mxu1 %v7572_v19 }
 0x25a   : > { %v2453_v21 = vadd.f32 %v6832_v53, %v2227_v1  ;;  %v2447_v34 = vpop.f32.mrb[109].mxu0  ;;  %6905 = vmatmul.mubr.f32.gmra.mrb[136].mxu0 %v2651_v24  ;;  %v2653_v17 = vmax.f32 %v2557_v46, 0.0  ;;  %7574 = vmatprep.subr.bf16.mxu1 %v11411_v28 }
 0x25b   : > { %v2652_v40 = vmax.f32 %v2556_v30, 0.0  ;;  %v2448_v55 = vadd.f32 %v2447_v34, %v2222_v20  ;;  %v2232_v7 = vpop.f32.mrb[124].mxu1  ;;  %7599 = vmatpush3.bf16.msra.mxu0 %v7596_v60 }
 0x25c   : > { %v2559_v15 = vadd.f32 %v2453_v21, %v9527_v54  ;;  %v2234_v42 = vpop.f32.mrb[125].mxu1  ;;  %7601 = vmatprep.subr.bf16.mxu0 %v7600_v63 }
 0x25d   : > { %v2558_v2 = vadd.f32 %v2448_v55, %v9530_v18  ;;  %v6835_v0 = vpop.f32.mrb[110].mxu0  ;;  %6907 = vmatprep.mubr.f32.mxu0 %v2652_v40  ;;  %7576 = vmatpush1.bf16.msra.mxu1 %v7575_v39 }
 0x25e   : > { %v2457_v48 = vpop.f32.mrb[111].mxu0  ;;  %6908 = vmatmul.mubr.f32.gmra.mrb[138].mxu0 %v2653_v17  ;;  %v2655_v14 = vmax.f32 %v2559_v15, 0.0  ;;  %7577 = vmatprep.subr.bf16.mxu1 %v11411_v28 }
 0x25f   : > { %v2654_v35 = vmax.f32 %v2558_v2, 0.0  ;;  %v2237_v36 = vpop.f32.mrb[126].mxu1  ;;  %v2458_v43 = vadd.f32 %v2457_v48, %v2232_v7  ;;  %7603 = vmatpush3.bf16.msra.mxu0 %v7600_v63 }
 0x260   : > { %v2463_v62 = vadd.f32 %v6835_v0, %v2237_v36  ;;  %v2239_v20 = vpop.f32.mrb[127].mxu1 }
 0x261   : > { %v2560_v54 = vadd.f32 %v2458_v43, %v9540_v10  ;;  %v6838_v5 = vpop.f32.mrb[112].mxu0  ;;  %6910 = vmatprep.mubr.f32.mxu0 %v2654_v35 }
 0x262   : > { %v2561_v18 = vadd.f32 %v2463_v62, %v9537_v56  ;;  %v2467_v52 = vpop.f32.mrb[113].mxu0  ;;  %6911 = vmatmul.mubr.f32.gmra.mrb[140].mxu0 %v2655_v14 }
 0x263   : > { %v2656_v25 = vmax.f32 %v2560_v54, 0.0  ;;  %v2242_v60 = vpop.f32.mrb[128].mxu1 }
 0x264   : > { %v2657_v31 = vmax.f32 %v2561_v18, 0.0  ;;  %v2468_v41 = vadd.f32 %v2467_v52, %v2242_v60  ;;  %v2244_v3 = vpop.f32.mrb[129].mxu1 }
 0x265   : > { %6913 = vmatprep.mubr.f32.mxu0 %v2656_v25  ;;  %v6841_v16 = vpop.f32.mrb[114].mxu0 }
 0x266   : > { %v2562_v22 = vadd.f32 %v2468_v41, %v9550_v33  ;;  %6914 = vmatmul.mubr.f32.gmra.mrb[142].mxu0 %v2657_v31  ;;  %v2477_v10 = vpop.f32.mrb[115].mxu0 }
 0x267   : > { %v2247_v27 = vpop.f32.mrb[130].mxu1 }
 0x268   : > { %v2658_v50 = vmax.f32 %v2562_v22, 0.0  ;;  %v2473_v11 = vadd.f32 %v6838_v5, %v2247_v27  ;;  %v2249_v58 = vpop.f32.mrb[131].mxu1 }
 0x269   : > { %v6844_v56 = vpop.f32.mrb[116].mxu0 }
 0x26a   : > { %v2563_v44 = vadd.f32 %v2473_v11, %v9547_v13  ;;  %6916 = vmatprep.mubr.f32.mxu0 %v2658_v50  ;;  %v2487_v26 = vpop.f32.mrb[117].mxu0 }
 0x26b   : > { %v2252_v1 = vpop.f32.mrb[132].mxu1 }
 0x26c   : > { %v2659_v24 = vmax.f32 %v2563_v44, 0.0  ;;  %v2478_v46 = vadd.f32 %v2477_v10, %v2252_v1  ;;  %v2254_v37 = vpop.f32.mrb[133].mxu1 }
 0x26d   : > { %v6847_v63 = vpop.f32.mrb[118].mxu0 }
 0x26e   : > { %v2564_v30 = vadd.f32 %v2478_v46, %v9560_v45  ;;  %6917 = vmatmul.mubr.f32.gmra.mrb[144].mxu0 %v2659_v24  ;;  %v2497_v33 = vpop.f32.mrb[119].mxu0 }
 0x26f   : > { %v2257_v53 = vpop.f32.mrb[134].mxu1 }
 0x270   : > { %v2660_v19 = vmax.f32 %v2564_v30, 0.0  ;;  %v2483_v21 = vadd.f32 %v6841_v16, %v2257_v53  ;;  %v2259_v34 = vpop.f32.mrb[135].mxu1  ;;  %v3472_v30 = vld [vmem:[#allocation7 + $0x5e0] sm:$0xff] }
 0x271   : > { %v6850_v29 = vpop.f32.mrb[120].mxu0 }
 0x272   : > { %v2565_v49 = vadd.f32 %v2483_v21, %v9557_v32  ;;  %6919 = vmatprep.mubr.f32.mxu0 %v2660_v19  ;;  %v2507_v13 = vpop.f32.mrb[121].mxu0 }
 0x273   : > { %v2262_v40 = vpop.f32.mrb[136].mxu1 }
 0x274   : > { %v2661_v55 = vmax.f32 %v2565_v49, 0.0  ;;  %v2488_v7 = vadd.f32 %v2487_v26, %v2262_v40  ;;  %v2264_v17 = vpop.f32.mrb[137].mxu1  ;;  %v3475_v49 = vld [vmem:[#allocation7 + $0x5f8] sm:$0xff] }
 0x275   : > { %v6853_v15 = vpop.f32.mrb[122].mxu0 }
 0x276   : > { %v2566_v42 = vadd.f32 %v2488_v7, %v9571_v12  ;;  %6920 = vmatmul.mubr.f32.gmra.mrb[146].mxu0 %v2661_v55  ;;  %v2517_v45 = vpop.f32.mrb[123].mxu0  ;;  %v3459_v7 = vld [vmem:[#allocation7 + $0x578] sm:$0xff] }
 0x277   : > { %v2267_v2 = vpop.f32.mrb[138].mxu1 }
 0x278   : > { %v2662_v0 = vmax.f32 %v2566_v42, 0.0  ;;  %v2493_v39 = vadd.f32 %v6844_v56, %v2267_v2  ;;  %v2269_v48 = vpop.f32.mrb[139].mxu1 }
 0x279   : > { %v6856_v35 = vpop.f32.mrb[124].mxu0  ;;  %v11417_v48 = vmov 0.0  }
 0x27a   : > { %v2567_v36 = vadd.f32 %v2493_v39, %v9568_v57  ;;  %6922 = vmatprep.mubr.f32.mxu0 %v2662_v0  ;;  %v2527_v32 = vpop.f32.mrb[125].mxu0 }
 0x27b   : > { %v2272_v43 = vpop.f32.mrb[140].mxu1 }
 0x27c   : > { %v2663_v14 = vmax.f32 %v2567_v36, 0.0  ;;  %v2498_v62 = vadd.f32 %v2497_v33, %v2272_v43  ;;  %v2274_v20 = vpop.f32.mrb[141].mxu1  ;;  %v3473_v33 = vld [vmem:[#allocation7 + $0x5e8] sm:$0xff] }
 0x27d   : > { %v9677_v54 = vpop.f32.mrb[126].mxu0  ;;  %v7604_v21 = vpack.c.bf16 %v3473_v33, %v3472_v30  ;;  %v4101_v30 = vld [vmem:[#allocation7 + $0x670] sm:$0xff]  ;;  %v4102_v33 = vld [vmem:[#allocation7 + $0x678] sm:$0xff] }
 0x27e   : > { %v2568_v5 = vadd.f32 %v2498_v62, %v9584_v51  ;;  %6923 = vmatmul.mubr.f32.gmra.mrb[148].mxu0 %v2663_v14  ;;  %v2537_v12 = vpop.f32.mrb[127].mxu0  ;;  %v4120_v62 = vld [vmem:[#allocation7 + $0x708] sm:$0xff] }
 0x27f   : > { %v2277_v18 = vpop.f32.mrb[142].mxu1  ;;  %7605 = vmatprep.subr.bf16.mxu0 %v7604_v21 }
 0x280   : > { %v2664_v52 = vmax.f32 %v2568_v5, 0.0  ;;  %v2503_v25 = vadd.f32 %v6847_v63, %v2277_v18  ;;  %v2279_v60 = vpop.f32.mrb[143].mxu1  ;;  %7607 = vmatpush3.bf16.msra.mxu0 %v7604_v21  ;;  %v4121_v5 = vld [vmem:[#allocation7 + $0x710] sm:$0xff]  ;;  %v4088_v18 = vld [vmem:[#allocation7 + $0x608] sm:$0xff] }
 0x281   : > { %v4090_v60 = vld [vmem:[#allocation7 + $0x618] sm:$0xff] }
 0x282   : > { %v2569_v31 = vadd.f32 %v2503_v25, %v9581_v23  ;;  %6925 = vmatprep.mubr.f32.mxu0 %v2664_v52  ;;  %v4089_v25 = vld [vmem:[#allocation7 + $0x610] sm:$0xff] }
 0x283   : > { %v2282_v57 = vpop.f32.mrb[144].mxu1 }
 0x284   : > { %v2665_v41 = vmax.f32 %v2569_v31, 0.0  ;;  %v2508_v3 = vadd.f32 %v2507_v13, %v2282_v57  ;;  %v2284_v16 = vpop.f32.mrb[145].mxu1  ;;  %v4123_v31 = vld [vmem:[#allocation7 + $0x720] sm:$0xff]  ;;  %v4124_v57 = vld [vmem:[#allocation7 + $0x728] sm:$0xff] }
 0x285   : > { %v4091_v16 = vld [vmem:[#allocation7 + $0x620] sm:$0xff] }
 0x286   : > { %v2570_v22 = vadd.f32 %v2508_v3, %v9596_v61  ;;  %6926 = vmatmul.mubr.f32.gmra.mrb[150].mxu0 %v2665_v41  ;;  %v7616_v41 = vpack.c.bf16 %v4090_v60, %v4089_v25  ;;  %v7668_v3 = vpack.c.bf16 %v4124_v57, %v4123_v31  ;;  %v7895_v31 = vld [vmem:[%s8302_s28 + $0x8] sm:$0xff] }
 0x287   : > { %v2287_v10 = vpop.f32.mrb[146].mxu1 }
 0x288   : > { %v2666_v27 = vmax.f32 %v2570_v22, 0.0  ;;  %v2513_v50 = vadd.f32 %v6850_v29, %v2287_v10  ;;  %v2289_v51 = vpop.f32.mrb[147].mxu1  ;;  %v3474_v29 = vld [vmem:[#allocation7 + $0x5f0] sm:$0xff]  ;;  %v4092_v22 = vld [vmem:[#allocation7 + $0x628] sm:$0xff] }
 0x289   : > { %v7608_v17 = vpack.c.bf16 %v3475_v49, %v3474_v29  ;;  %v7619_v10 = vpack.c.bf16 %v4092_v22, %v4091_v16  ;;  %v4127_v29 = vld [vmem:[#allocation7 + $0x740] sm:$0xff]  ;;  %v4128_v49 = vld [vmem:[#allocation7 + $0x748] sm:$0xff] }
 0x28a   : > { %v2571_v11 = vadd.f32 %v2513_v50, %v9593_v4  ;;  %6928 = vmatprep.mubr.f32.mxu0 %v2666_v27  ;;  %v4093_v27 = vld [vmem:[#allocation7 + $0x630] sm:$0xff]  ;;  %v4094_v50 = vld [vmem:[#allocation7 + $0x638] sm:$0xff] }
 0x28b   : > { %v2292_v58 = vpop.f32.mrb[148].mxu1  ;;  %7609 = vmatprep.subr.bf16.mxu0 %v7608_v17  ;;  %v7622_v51 = vpack.c.bf16 %v4094_v50, %v4093_v27  ;;  %v7897_v50 = vld [vmem:[%s8302_s28 + $0x18] sm:$0xff] }
 0x28c   : > { %v2667_v56 = vmax.f32 %v2571_v11, 0.0  ;;  %v2518_v44 = vadd.f32 %v2517_v45, %v2292_v58  ;;  %v2294_v26 = vpop.f32.mrb[149].mxu1  ;;  %7611 = vmatpush3.bf16.msra.mxu0 %v7608_v17  ;;  %v4095_v11 = vld [vmem:[#allocation7 + $0x640] sm:$0xff]  ;;  %v4096_v58 = vld [vmem:[#allocation7 + $0x648] sm:$0xff]  ;;  %v4109_v17 = vld [vmem:[#allocation7 + $0x6b0] sm:$0xff] }
 0x28d   : > { %7612 = vmatprep.subr.bf16.mxu0 %v11411_v28  ;;  %v4098_v26 = vld [vmem:[#allocation7 + $0x658] sm:$0xff] }
 0x28e   : > { %v2572_v23 = vadd.f32 %v2518_v44, %v9607_v38  ;;  %6929 = vmatmul.mubr.f32.gmra.mrb[152].mxu0 %v2667_v56  ;;  %v7625_v56 = vpack.c.bf16 %v4096_v58, %v4095_v11  ;;  %v4097_v44 = vld [vmem:[#allocation7 + $0x650] sm:$0xff] }
 0x28f   : > { %v2297_v1 = vpop.f32.mrb[150].mxu1 }
 0x290   : > { %v2668_v24 = vmax.f32 %v2572_v23, 0.0  ;;  %v2523_v46 = vadd.f32 %v6853_v15, %v2297_v1  ;;  %v2299_v37 = vpop.f32.mrb[151].mxu1  ;;  %v4125_v23 = vld [vmem:[#allocation7 + $0x730] sm:$0xff]  ;;  %v4126_v1 = vld [vmem:[#allocation7 + $0x738] sm:$0xff] }
 0x291   : > { %v4099_v37 = vld [vmem:[#allocation7 + $0x660] sm:$0xff] }
 0x292   : > { %v2573_v61 = vadd.f32 %v2523_v46, %v9604_v9  ;;  %6931 = vmatprep.mubr.f32.mxu0 %v2668_v24  ;;  %v3458_v9 = vld [vmem:[#allocation7 + $0x570] sm:$0xff]  ;;  %v7628_v24 = vpack.c.bf16 %v4098_v26, %v4097_v44  ;;  %v7672_v46 = vpack.c.bf16 %v4126_v1, %v4125_v23 }
 0x293   : > { %v2302_v63 = vpop.f32.mrb[152].mxu1  ;;  %v7578_v15 = vpack.c.bf16 %v3459_v7, %v3458_v9  ;;  %v4108_v9 = vld [vmem:[#allocation7 + $0x6a8] sm:$0xff]  ;;  %v7898_v44 = vld [vmem:[%s8302_s28 + $0x10] sm:$0xff] }
 0x294   : > { %v2669_v53 = vmax.f32 %v2573_v61, 0.0  ;;  %v2528_v4 = vadd.f32 %v2527_v32, %v2302_v63  ;;  %v2304_v19 = vpop.f32.mrb[153].mxu1  ;;  %v4100_v61 = vld [vmem:[#allocation7 + $0x668] sm:$0xff] }
 0x295   : > { %7579 = vmatpush1.bf16.msra.mxu1 %v7578_v15  ;;  %v7631_v63 = vpack.c.bf16 %v4100_v61, %v4099_v37  ;;  %v4104_v19 = vld [vmem:[#allocation7 + $0x688] sm:$0xff]  ;;  %v4110_v15 = vld [vmem:[#allocation7 + $0x6b8] sm:$0xff] }
 0x296   : > { %v2574_v34 = vadd.f32 %v2528_v4, %v9618_v6  ;;  %6932 = vmatmul.mubr.f32.gmra.mrb[154].mxu0 %v2669_v53  ;;  %v7634_v53 = vpack.c.bf16 %v4102_v33, %v4101_v30  ;;  %v4103_v4 = vld [vmem:[#allocation7 + $0x680] sm:$0xff]  ;;  %v7899_v33 = vld [vmem:[%s8302_s28 + $0x28] sm:$0xff] }
 0x297   : > { %v2307_v38 = vpop.f32.mrb[154].mxu1  ;;  %v7637_v21 = vpack.c.bf16 %v4104_v19, %v4103_v4 }
 0x298   : > { %v2670_v13 = vmax.f32 %v2574_v34, 0.0  ;;  %v2533_v40 = vadd.f32 %v6856_v35, %v2307_v38  ;;  %v2309_v55 = vpop.f32.mrb[155].mxu1  ;;  %3541 = vmatmul.mubr.f32.vlgmr.msra.gmra.mrb[160].mxu1 %v11417_v48  ;;  %v4105_v34 = vld [vmem:[#allocation7 + $0x690] sm:$0xff]  ;;  %v4106_v38 = vld [vmem:[#allocation7 + $0x698] sm:$0xff] }
 0x299   : > { %3545 = vmatprep.mubr.f32.mxu1 %v11417_v48  ;;  %v4107_v55 = vld [vmem:[#allocation7 + $0x6a0] sm:$0xff] }
 0x29a   : > { %v2575_v42 = vadd.f32 %v2533_v40, %v9615_v47  ;;  %6934 = vmatprep.mubr.f32.mxu0 %v2670_v13  ;;  %v7640_v13 = vpack.c.bf16 %v4106_v38, %v4105_v34  ;;  %v7676_v40 = vpack.c.bf16 %v4128_v49, %v4127_v29  ;;  %v7643_v7 = vpack.c.bf16 %v4108_v9, %v4107_v55  ;;  %v7900_v34 = vld [vmem:[%s8302_s28 + $0x20] sm:$0xff] }
 0x29b   : > { %v2312_v45 = vpop.f32.mrb[156].mxu1 }
 0x29c   : > { %v2671_v6 = vmax.f32 %v2575_v42, 0.0  ;;  %v2538_v2 = vadd.f32 %v2537_v12, %v2312_v45  ;;  %v2314_v0 = vpop.f32.mrb[157].mxu1  ;;  %3546 = vmatmul.mubr.f32.gmra.mrb[162].mxu1 %v11417_v48  ;;  %v4122_v12 = vld [vmem:[#allocation7 + $0x718] sm:$0xff]  ;;  %v7646_v42 = vpack.c.bf16 %v4110_v15, %v4109_v17  ;;  %v4111_v45 = vld [vmem:[#allocation7 + $0x6c0] sm:$0xff] }
 0x29d   : > { %v4113_v0 = vld [vmem:[#allocation7 + $0x6d0] sm:$0xff]  ;;  %v7901_v15 = vld [vmem:[%s8302_s28 + $0x38] sm:$0xff] }
 0x29e   : > { %v2576_v39 = vadd.f32 %v2538_v2, %v9629_v59  ;;  %6935 = vmatmul.mubr.f32.gmra.mrb[156].mxu0 %v2671_v6  ;;  %v4119_v59 = vld [vmem:[#allocation7 + $0x700] sm:$0xff]  ;;  %v4112_v6 = vld [vmem:[#allocation7 + $0x6c8] sm:$0xff] }
 0x29f   : > { %v2317_v35 = vpop.f32.mrb[158].mxu1  ;;  %v7660_v20 = vpack.c.bf16 %v4120_v62, %v4119_v59  ;;  %v7649_v2 = vpack.c.bf16 %v4112_v6, %v4111_v45  ;;  %v4117_v62 = vld [vmem:[#allocation7 + $0x6f0] sm:$0xff] }
 0x2a0   : > { %v2672_v36 = vmax.f32 %v2576_v39, 0.0  ;;  %v2543_v47 = vadd.f32 %v9677_v54, %v2317_v35  ;;  %v2319_v32 = vpop.f32.mrb[159].mxu1  ;;  %v7664_v54 = vpack.c.bf16 %v4122_v12, %v4121_v5  ;;  %v4114_v39 = vld [vmem:[#allocation7 + $0x6d8] sm:$0xff]  ;;  %v4129_v35 = vld [vmem:[#allocation7 + $0x750] sm:$0xff]  ;;  %v4131_v12 = vld [vmem:[#allocation7 + $0x760] sm:$0xff] }
 0x2a1   : > { %7661 = vmatprep.subr.bf16.mxu1 %v7660_v20 }
 0x2a2   : > { %v2577_v43 = vadd.f32 %v2543_v47, %v9626_v8  ;;  %6937 = vmatprep.mubr.f32.mxu0 %v2672_v36  ;;  %7663 = vmatpush3.bf16.msra.mxu1 %v7660_v20  ;;  %v4087_v8 = vld [vmem:[#allocation7 + $0x600] sm:$0xff]  ;;  %v4130_v36 = vld [vmem:[#allocation7 + $0x758] sm:$0xff]  ;;  %v7652_v47 = vpack.c.bf16 %v4114_v39, %v4113_v0  ;;  %v7902_v0 = vld [vmem:[%s8302_s28 + $0x30] sm:$0xff] }
 0x2a3   : > { %7665 = vmatprep.subr.bf16.mxu1 %v7664_v54  ;;  %v7613_v52 = vpack.c.bf16 %v4088_v18, %v4087_v8  ;;  %v7680_v32 = vpack.c.bf16 %v4130_v36, %v4129_v35  ;;  %v4118_v20 = vld [vmem:[#allocation7 + $0x6f8] sm:$0xff]  ;;  %v4133_v18 = vld [vmem:[#allocation7 + $0x770] sm:$0xff] }
 0x2a4   : > { %v2673_v14 = vmax.f32 %v2577_v43, 0.0  ;;  %v4115_v43 = vld [vmem:[#allocation7 + $0x6e0] sm:$0xff]  ;;  %v7658_v5 = vpack.c.bf16 %v4118_v20, %v4117_v62  ;;  %v7903_v20 = vld [vmem:[%s8302_s28 + $0x48] sm:$0xff] }
 0x2a6   : > { %6938 = vmatmul.mubr.f32.gmra.mrb[158].mxu0 %v2673_v14  ;;  %7667 = vmatpush3.bf16.msra.mxu1 %v7664_v54  ;;  %v4116_v14 = vld [vmem:[#allocation7 + $0x6e8] sm:$0xff] }
 0x2a7   : > { %6972 = vmatprep.mubr.f32.mxu0 %v11417_v48  ;;  %7669 = vmatprep.subr.bf16.mxu1 %v7668_v3  ;;  %v7655_v59 = vpack.c.bf16 %v4116_v14, %v4115_v43  ;;  %v4132_v54 = vld [vmem:[#allocation7 + $0x768] sm:$0xff] }
 0x2a8   : > { %v7684_v8 = vpack.c.bf16 %v4132_v54, %v4131_v12 }
 0x2aa   : > { %6973 = vmatmul.mubr.f32.vlgmr.msra.gmra.mrb[160].mxu0 %v11417_v48  ;;  %7671 = vmatpush3.bf16.msra.mxu1 %v7668_v3  ;;  %v7896_v3 = vld [vmem:[%s8302_s28] sm:$0xff]  ;;  %v7915_v48 = vld [vmem:[%s8302_s28 + $0xa8] sm:$0xff] }
 0x2ab   : > { %7614 = vmatpush1.bf16.msra.mxu0 %v7613_v52  ;;  %7673 = vmatprep.subr.bf16.mxu1 %v7672_v46  ;;  %v4134_v52 = vld [vmem:[#allocation7 + $0x778] sm:$0xff] }
 0x2ac   : > { %7615 = vmatprep.subr.bf16.mxu0 %v11411_v28  ;;  %v7688_v25 = vpack.c.bf16 %v4134_v52, %v4133_v18 }
 0x2ae   : > { %7675 = vmatpush3.bf16.msra.mxu1 %v7672_v46 }
 0x2af   : > { %7617 = vmatpush1.bf16.msra.mxu0 %v7616_v41  ;;  %7677 = vmatprep.subr.bf16.mxu1 %v7676_v40 }
 0x2b0   : > { %7618 = vmatprep.subr.bf16.mxu0 %v11411_v28 }
 0x2b2   : > { %7679 = vmatpush3.bf16.msra.mxu1 %v7676_v40 }
 0x2b3   : > { %7620 = vmatpush1.bf16.msra.mxu0 %v7619_v10  ;;  %7681 = vmatprep.subr.bf16.mxu1 %v7680_v32 }
 0x2b4   : > { %7621 = vmatprep.subr.bf16.mxu0 %v11411_v28 }
 0x2b6   : > { %7683 = vmatpush3.bf16.msra.mxu1 %v7680_v32 }
 0x2b7   : > { %7623 = vmatpush1.bf16.msra.mxu0 %v7622_v51  ;;  %7685 = vmatprep.subr.bf16.mxu1 %v7684_v8 }
 0x2b8   : > { %7624 = vmatprep.subr.bf16.mxu0 %v11411_v28 }
 0x2ba   : > { %7687 = vmatpush3.bf16.msra.mxu1 %v7684_v8  ;;  %v7904_v8 = vld [vmem:[%s8302_s28 + $0x40] sm:$0xff] }
 0x2bb   : > { %7626 = vmatpush1.bf16.msra.mxu0 %v7625_v56  ;;  %7689 = vmatprep.subr.bf16.mxu1 %v7688_v25 }
 0x2bc   : > { %7627 = vmatprep.subr.bf16.mxu0 %v11411_v28 }
 0x2be   : > { %7691 = vmatpush3.bf16.msra.mxu1 %v7688_v25  ;;  %v4810_v25 = vld [vmem:[#allocation7 + $0x880] sm:$0xff] }
 0x2bf   : > { %7629 = vmatpush1.bf16.msra.mxu0 %v7628_v24  ;;  %7692 = vmatprep.subr.bf16.mxu1 %v11411_v28 }
 0x2c0   : > { %7630 = vmatprep.subr.bf16.mxu0 %v11411_v28 }
 0x2c3   : > { %7632 = vmatpush1.bf16.msra.mxu0 %v7631_v63 }
 0x2c4   : > { %7633 = vmatprep.subr.bf16.mxu0 %v11411_v28 }
 0x2c7   : > { %7635 = vmatpush1.bf16.msra.mxu0 %v7634_v53 }
 0x2c8   : > { %7636 = vmatprep.subr.bf16.mxu0 %v11411_v28 }
 0x2cb   : > { %7638 = vmatpush1.bf16.msra.mxu0 %v7637_v21 }
 0x2cc   : > { %7639 = vmatprep.subr.bf16.mxu0 %v11411_v28 }
 0x2cf   : > { %7641 = vmatpush1.bf16.msra.mxu0 %v7640_v13 }
 0x2d0   : > { %7642 = vmatprep.subr.bf16.mxu0 %v11411_v28 }
 0x2d3   : > { %7644 = vmatpush1.bf16.msra.mxu0 %v7643_v7 }
 0x2d4   : > { %7645 = vmatprep.subr.bf16.mxu0 %v11411_v28 }
 0x2d7   : > { %7647 = vmatpush1.bf16.msra.mxu0 %v7646_v42 }
 0x2d8   : > { %7648 = vmatprep.subr.bf16.mxu0 %v11411_v28 }
 0x2db   : > { %7650 = vmatpush1.bf16.msra.mxu0 %v7649_v2 }
 0x2dc   : > { %7651 = vmatprep.subr.bf16.mxu0 %v11411_v28 }
 0x2df   : > { %7653 = vmatpush1.bf16.msra.mxu0 %v7652_v47 }
 0x2e0   : > { %7654 = vmatprep.subr.bf16.mxu0 %v11411_v28 }
 0x2e3   : > { %7656 = vmatpush1.bf16.msra.mxu0 %v7655_v59 }
 0x2e4   : > { %7657 = vmatprep.subr.bf16.mxu0 %v11411_v28 }
 0x2e7   : > { %7659 = vmatpush1.bf16.msra.mxu0 %v7658_v5 }
 0x31d   : > { %v6894_v60 = vpop.f32.mrb[128].mxu0 }
 0x31e   : > { %v9713_v57 = vadd.f32 %v7895_v31, %v6894_v60  ;;  %v2756_v41 = vpop.f32.mrb[129].mxu0  ;;  %v4811_v60 = vld [vmem:[#allocation7 + $0x888] sm:$0xff] }
 0x31f   : > { %v9716_v16 = vadd.f32 %v7896_v3, %v2756_v41 }
 0x320   : > { %11418 = vst [vmem:[#allocation29_spill] sm:$0xff] %v9713_v57  ;;  %v9719_v22 = vmax.f32 %v9713_v57, 0.0 }
 0x321   : > { %11419 = vst [vmem:[#allocation30_spill] sm:$0xff] %v9716_v16  ;;  %v6897_v10 = vpop.f32.mrb[130].mxu0  ;;  %v9722_v27 = vmax.f32 %v9716_v16, 0.0 }
 0x322   : > { %v9725_v51 = vadd.f32 %v7897_v50, %v6897_v10  ;;  %v2766_v11 = vpop.f32.mrb[131].mxu0  ;;  %v3059_v58 = vrot.slane %v9719_v22, 7  ;;  %v3155_v56 = vrot.slane %v9719_v22, 1  ;;  %v9845_v10 = vpack.c.bf16 %v4811_v60, %v4810_v25 }
 0x323   : > { %v9730_v26 = vadd.f32 %v7898_v44, %v2766_v11  ;;  %3550 = vmatprep.mubr.f32.mxu1 %v9722_v27  ;;  %v3043_v23 = vrot.slane %v9722_v27, 7  ;;  %v3139_v1 = vrot.slane %v9722_v27, 1 }
 0x324   : > { %11420 = vst [vmem:[#allocation32_spill] sm:$0xff] %v9725_v51  ;;  %v9736_v24 = vmax.f32 %v9725_v51, 0.0  ;;  %7741 = vmatprep.subr.bf16.mxu0 %v9845_v10 }
 0x325   : > { %11421 = vst [vmem:[#allocation33_spill] sm:$0xff] %v9730_v26  ;;  %v6900_v46 = vpop.f32.mrb[132].mxu0  ;;  %v9740_v61 = vsel %vm334_vm2, %v3059_v58, %v3043_v23  ;;  %v9744_v63 = vsel %vm435_vm0, %v3139_v1, %v3155_v56  ;;  %v9748_v30 = vsel %vm435_vm0, %v3155_v56, %v3139_v1  ;;  %v9758_v19 = vmax.f32 %v9730_v26, 0.0 }
 0x326   : > { %v9751_v53 = vadd.f32 %v7899_v33, %v6900_v46  ;;  %v2776_v4 = vpop.f32.mrb[133].mxu0  ;;  %6053 = vmatmul.mubr.msk.f32.gmra.mrb[164].mxu1 %vm7852_vm3, %v9740_v61  ;;  %6975 = vmatprep.mubr.f32.mxu0 %v9744_v63  ;;  %v3156_v21 = vrot.slane %v9736_v24, 1  ;;  %v9774_v55 = vsel %vm334_vm2, %v3043_v23, %v3059_v58  ;;  %v3060_v7 = vrot.slane %v9736_v24, 7  ;;  %v7905_v23 = vld [vmem:[%s8302_s28 + $0x58] sm:$0xff] }
 0x327   : > { %v9762_v38 = vadd.f32 %v7900_v34, %v2776_v4  ;;  %3555 = vmatprep.mubr.f32.mxu1 %v9719_v22  ;;  %6976 = vmatmul.mubr.msk.f32.gmra.mrb[162].mxu0 %vm7853_vm1, %v9748_v30  ;;  %v3140_v49 = vrot.slane %v9758_v19, 1  ;;  %v3044_v9 = vrot.slane %v9758_v19, 7  ;;  %v7906_v4 = vld [vmem:[%s8302_s28 + $0x50] sm:$0xff] }
 0x328   : > { %11423 = vst [vmem:[#allocation35_spill] sm:$0xff] %v9751_v53  ;;  %v9770_v13 = vmax.f32 %v9751_v53, 0.0 }
 0x329   : > { %11424 = vst [vmem:[#allocation37_spill] sm:$0xff] %v9762_v38  ;;  %v6903_v40 = vpop.f32.mrb[134].mxu0  ;;  %v9779_v17 = vmax.f32 %v9762_v38, 0.0  ;;  %v9787_v6 = vsel %vm435_vm0, %v3140_v49, %v3156_v21  ;;  %v9791_v2 = vsel %vm435_vm0, %v3156_v21, %v3140_v49  ;;  %v9808_v43 = vsel %vm334_vm2, %v3060_v7, %v3044_v9  ;;  %v7913_v38 = vld [vmem:[%s8302_s28 + $0x98] sm:$0xff] }
 0x32a   : > { %v9782_v42 = vadd.f32 %v7901_v15, %v6903_v40  ;;  %v2786_v45 = vpop.f32.mrb[135].mxu0  ;;  %3556 = vmatmul.mubr.f32.gmra.mrb[166].mxu1 %v9774_v55  ;;  %6978 = vmatprep.mubr.f32.mxu0 %v9787_v6  ;;  %v3157_v36 = vrot.slane %v9770_v13, 1  ;;  %v9839_v31 = vsel %vm334_vm2, %v3044_v9, %v3060_v7  ;;  %v3061_v56 = vrot.slane %v9770_v13, 7 }
 0x32b   : > { %v9794_v39 = vadd.f32 %v7902_v0, %v2786_v45  ;;  %3560 = vmatprep.mubr.f32.mxu1 %v9758_v19  ;;  %v3141_v35 = vrot.slane %v9779_v17, 1  ;;  %6979 = vmatmul.mubr.msk.f32.gmra.mrb[164].mxu0 %vm7853_vm1, %v9791_v2  ;;  %v3045_v41 = vrot.slane %v9779_v17, 7  ;;  %v7907_v0 = vld [vmem:[%s8302_s28 + $0x68] sm:$0xff] }
 0x32c   : > { %11426 = vst [vmem:[#allocation39_spill] sm:$0xff] %v9782_v42  ;;  %v9804_v47 = vmax.f32 %v9782_v42, 0.0 }
 0x32d   : > { %11427 = vst [vmem:[#allocation40_spill] sm:$0xff] %v9794_v39  ;;  %v6906_v32 = vpop.f32.mrb[136].mxu0  ;;  %v9812_v14 = vsel %vm435_vm0, %v3141_v35, %v3157_v36  ;;  %v9816_v59 = vsel %vm435_vm0, %v3157_v36, %v3141_v35  ;;  %v9819_v62 = vmax.f32 %v9794_v39, 0.0  ;;  %v9879_v9 = vsel %vm334_vm2, %v3061_v56, %v3045_v41 }
 0x32e   : > { %v9822_v5 = vadd.f32 %v7903_v20, %v6906_v32  ;;  %v2796_v12 = vpop.f32.mrb[137].mxu0  ;;  %6055 = vmatmul.mubr.msk.f32.gmra.mrb[168].mxu1 %vm7852_vm3, %v9808_v43  ;;  %6981 = vmatprep.mubr.f32.mxu0 %v9812_v14  ;;  %v3158_v54 = vrot.slane %v9804_v47, 1  ;;  %11434 = vst [vmem:[#allocation18_spill] sm:$0xff] %v9879_v9  ;;  %v7908_v20 = vld [vmem:[%s8302_s28 + $0x60] sm:$0xff] }
 0x32f   : > { %v9830_v18 = vadd.f32 %v7904_v8, %v2796_v12  ;;  %3565 = vmatprep.mubr.f32.mxu1 %v9736_v24  ;;  %v3142_v52 = vrot.slane %v9819_v62, 1  ;;  %6982 = vmatmul.mubr.msk.f32.gmra.mrb[166].mxu0 %vm7853_vm1, %v9816_v59  ;;  %v9910_v8 = vsel %vm334_vm2, %v3045_v41, %v3061_v56  ;;  %v7909_v41 = vld [vmem:[%s8302_s28 + $0x78] sm:$0xff] }
 0x330   : > { %11428 = vst [vmem:[#allocation43_spill] sm:$0xff] %v9822_v5  ;;  %v9843_v3 = vmax.f32 %v9822_v5, 0.0 }
 0x331   : > { %11429 = vst [vmem:[#allocation45_spill] sm:$0xff] %v9830_v18  ;;  %v6909_v50 = vpop.f32.mrb[138].mxu0  ;;  %v9849_v11 = vsel %vm435_vm0, %v3142_v52, %v3158_v54  ;;  %v9853_v58 = vsel %vm435_vm0, %v3158_v54, %v3142_v52  ;;  %v9857_v44 = vmax.f32 %v9830_v18, 0.0  ;;  %v3046_v52 = vrot.slane %v9819_v62, 7 }
 0x332   : > { %11430 = vst [vmem:[#allocation48_spill] sm:$0xff] %v9849_v11  ;;  %11431 = vst [vmem:[#allocation16_spill] sm:$0xff] %v9853_v58  ;;  %v9860_v1 = vadd.f32 %v7905_v23, %v6909_v50  ;;  %v2806_v46 = vpop.f32.mrb[139].mxu0  ;;  %3566 = vmatmul.mubr.f32.gmra.mrb[170].mxu1 %v9839_v31  ;;  %6984 = vmatprep.mubr.f32.mxu0 %v9849_v11  ;;  %v3159_v33 = vrot.slane %v9843_v3, 1 }
 0x333   : > { %v9866_v21 = vadd.f32 %v7906_v4, %v2806_v46  ;;  %3570 = vmatprep.mubr.f32.mxu1 %v9779_v17  ;;  %v3143_v34 = vrot.slane %v9857_v44, 1  ;;  %6985 = vmatmul.mubr.msk.f32.gmra.mrb[168].mxu0 %vm7853_vm1, %v9853_v58  ;;  %v3062_v46 = vrot.slane %v9804_v47, 7 }
 0x334   : > { %11432 = vst [vmem:[#allocation47_spill] sm:$0xff] %v9860_v1  ;;  %v9875_v49 = vmax.f32 %v9860_v1, 0.0 }
 0x335   : > { %11433 = vst [vmem:[#allocation49_spill] sm:$0xff] %v9866_v21  ;;  %v6912_v40 = vpop.f32.mrb[140].mxu0  ;;  %v9883_v7 = vsel %vm435_vm0, %v3143_v34, %v3159_v33  ;;  %v9887_v15 = vsel %vm435_vm0, %v3159_v33, %v3143_v34  ;;  %v9890_v45 = vmax.f32 %v9866_v21, 0.0  ;;  %v7911_v21 = vld [vmem:[%s8302_s28 + $0x88] sm:$0xff] }
 0x336   : > { %11435 = vst [vmem:[#allocation50_spill] sm:$0xff] %v9883_v7  ;;  %11436 = vst [vmem:[#allocation21_spill] sm:$0xff] %v9887_v15  ;;  %v9893_v35 = vadd.f32 %v7907_v0, %v6912_v40  ;;  %v2816_v36 = vpop.f32.mrb[141].mxu0  ;;  %6057 = vmatmul.mubr.msk.f32.gmra.mrb[172].mxu1 %vm7852_vm3, %v9879_v9  ;;  %6987 = vmatprep.mubr.f32.mxu0 %v9883_v7  ;;  %v3160_v32 = vrot.slane %v9875_v49, 1  ;;  %v7910_v40 = vld [vmem:[%s8302_s28 + $0x70] sm:$0xff]  ;;  %v3064_v42 = vrot.slane %v9875_v49, 7 }
 0x337   : > { %v9901_v12 = vadd.f32 %v7908_v20, %v2816_v36  ;;  %3575 = vmatprep.mubr.f32.mxu1 %v9770_v13  ;;  %v3144_v54 = vrot.slane %v9890_v45, 1  ;;  %6988 = vmatmul.mubr.msk.f32.gmra.mrb[170].mxu0 %vm7853_vm1, %v9887_v15  ;;  %v9947_v20 = vsel %vm334_vm2, %v3062_v46, %v3046_v52  ;;  %v3048_v39 = vrot.slane %v9890_v45, 7 }
 0x338   : > { %11437 = vst [vmem:[#allocation51_spill] sm:$0xff] %v9893_v35  ;;  %v9914_v25 = vmax.f32 %v9893_v35, 0.0  ;;  %v3063_v35 = vrot.slane %v9843_v3, 7 }
 0x339   : > { %11438 = vst [vmem:[#allocation23_spill] sm:$0xff] %v9901_v12  ;;  %v6915_v60 = vpop.f32.mrb[142].mxu0  ;;  %v9918_v50 = vsel %vm435_vm0, %v3144_v54, %v3160_v32  ;;  %v9922_v23 = vsel %vm435_vm0, %v3160_v32, %v3144_v54  ;;  %v9926_v33 = vmax.f32 %v9901_v12, 0.0  ;;  %v3047_v12 = vrot.slane %v9857_v44, 7 }
 0x33a   : > { %11439 = vst [vmem:[#allocation31_spill] sm:$0xff] %v9914_v25  ;;  %11440 = vst [vmem:[#allocation52_spill] sm:$0xff] %v9918_v50  ;;  %v9929_v56 = vadd.f32 %v7909_v41, %v6915_v60  ;;  %v2826_v4 = vpop.f32.mrb[143].mxu0  ;;  %3576 = vmatmul.mubr.f32.gmra.mrb[174].mxu1 %v9910_v8  ;;  %6990 = vmatprep.mubr.f32.mxu0 %v9918_v50  ;;  %v3161_v34 = vrot.slane %v9914_v25, 1  ;;  %v3065_v57 = vrot.slane %v9914_v25, 7 }
 0x33b   : > { %11441 = vst [vmem:[#allocation34_spill] sm:$0xff] %v9922_v23  ;;  %v9935_v0 = vadd.f32 %v7910_v40, %v2826_v4  ;;  %3580 = vmatprep.mubr.f32.mxu1 %v9819_v62  ;;  %v3145_v36 = vrot.slane %v9926_v33, 1  ;;  %6991 = vmatmul.mubr.msk.f32.gmra.mrb[172].mxu0 %vm7853_vm1, %v9922_v23  ;;  %v3049_v16 = vrot.slane %v9926_v33, 7 }
 0x33c   : > { %11442 = vst [vmem:[#allocation36_spill] sm:$0xff] %v9929_v56  ;;  %v9943_v32 = vmax.f32 %v9929_v56, 0.0 }
 0x33d   : > { %11443 = vst [vmem:[#allocation53_spill] sm:$0xff] %v9935_v0  ;;  %v9951_v54 = vsel %vm435_vm0, %v3145_v36, %v3161_v34  ;;  %v9955_v60 = vsel %vm435_vm0, %v3161_v34, %v3145_v36  ;;  %v9958_v41 = vmax.f32 %v9935_v0, 0.0  ;;  %v9972_v34 = vsel %vm334_vm2, %v3046_v52, %v3062_v46  ;;  %v7912_v52 = vld [vmem:[%s8302_s28 + $0x80] sm:$0xff] }
 0x33e   : > { %11444 = vst [vmem:[#allocation38_spill] sm:$0xff] %v9943_v32  ;;  %11445 = vst [vmem:[#allocation54_spill] sm:$0xff] %v9951_v54  ;;  %6059 = vmatmul.mubr.msk.f32.gmra.mrb[176].mxu1 %vm7852_vm3, %v9947_v20  ;;  %6993 = vmatprep.mubr.f32.mxu0 %v9951_v54  ;;  %v3162_v4 = vrot.slane %v9943_v32, 1 }
 0x33f   : > { %11446 = vst [vmem:[#allocation41_spill] sm:$0xff] %v9955_v60  ;;  %11447 = vst [vmem:[#allocation55_spill] sm:$0xff] %v9958_v41  ;;  %3585 = vmatprep.mubr.f32.mxu1 %v9804_v47  ;;  %v3146_v40 = vrot.slane %v9958_v41, 1  ;;  %6994 = vmatmul.mubr.msk.f32.gmra.mrb[174].mxu0 %vm7853_vm1, %v9955_v60 }
 0x341   : > { %v6918_v36 = vpop.f32.mrb[144].mxu0  ;;  %v9976_v0 = vsel %vm435_vm0, %v3146_v40, %v3162_v4  ;;  %v9980_v56 = vsel %vm435_vm0, %v3162_v4, %v3146_v40 }
 0x342   : > { %11448 = vst [vmem:[#allocation42_spill] sm:$0xff] %v9976_v0  ;;  %11449 = vst [vmem:[#allocation56_spill] sm:$0xff] %v9980_v56  ;;  %v9985_v1 = vadd.f32 %v7911_v21, %v6918_v36  ;;  %v2836_v18 = vpop.f32.mrb[145].mxu0  ;;  %3586 = vmatmul.mubr.f32.gmra.mrb[178].mxu1 %v9972_v34  ;;  %6996 = vmatprep.mubr.f32.mxu0 %v9976_v0  ;;  %v10001_v21 = vsel %vm334_vm2, %v3063_v35, %v3047_v12  ;;  %v7917_v0 = vld [vmem:[%s8302_s28 + $0xb8] sm:$0xff] }
 0x343   : > { %v9990_v46 = vadd.f32 %v7912_v52, %v2836_v18  ;;  %3590 = vmatprep.mubr.f32.mxu1 %v9857_v44  ;;  %6997 = vmatmul.mubr.msk.f32.gmra.mrb[176].mxu0 %vm7853_vm1, %v9980_v56  ;;  %v10014_v52 = vsel %vm334_vm2, %v3047_v12, %v3063_v35  ;;  %v7914_v35 = vld [vmem:[%s8302_s28 + $0x90] sm:$0xff]  ;;  %v3066_v56 = vrot.slane %v9943_v32, 7 }
 0x344   : > { %11450 = vst [vmem:[#allocation44_spill] sm:$0xff] %v9985_v1  ;;  %v9997_v4 = vmax.f32 %v9985_v1, 0.0 }
 0x345   : > { %11451 = vst [vmem:[#allocation46_spill] sm:$0xff] %v9990_v46  ;;  %v10004_v40 = vmax.f32 %v9990_v46, 0.0 }
 0x346   : > { %11452 = vst [vmem:[#allocation17_spill] sm:$0xff] %v9997_v4  ;;  %6061 = vmatmul.mubr.msk.f32.gmra.mrb[180].mxu1 %vm7852_vm3, %v10001_v21  ;;  %v3163_v18 = vrot.slane %v9997_v4, 1 }
 0x347   : > { %11453 = vst [vmem:[#allocation20_spill] sm:$0xff] %v10004_v40  ;;  %3595 = vmatprep.mubr.f32.mxu1 %v9843_v3  ;;  %v3147_v36 = vrot.slane %v10004_v40, 1 }
 0x349   : > { %v6921_v1 = vpop.f32.mrb[146].mxu0  ;;  %v10018_v46 = vsel %vm435_vm0, %v3147_v36, %v3163_v18  ;;  %v10022_v5 = vsel %vm435_vm0, %v3163_v18, %v3147_v36 }
 0x34a   : > { %11454 = vst [vmem:[#allocation19_spill] sm:$0xff] %v10018_v46  ;;  %11455 = vst [vmem:[#allocation22_spill] sm:$0xff] %v10022_v5  ;;  %v10027_v53 = vadd.f32 %v7913_v38, %v6921_v1  ;;  %v2846_v26 = vpop.f32.mrb[147].mxu0  ;;  %6999 = vmatprep.mubr.f32.mxu0 %v10018_v46  ;;  %3596 = vmatmul.mubr.f32.gmra.mrb[182].mxu1 %v10014_v52  ;;  %v10043_v38 = vsel %vm334_vm2, %v3064_v42, %v3048_v39 }
 0x34b   : > { %v10032_v12 = vadd.f32 %v7914_v35, %v2846_v26  ;;  %7000 = vmatmul.mubr.msk.f32.gmra.mrb[178].mxu0 %vm7853_vm1, %v10022_v5  ;;  %3600 = vmatprep.mubr.f32.mxu1 %v9890_v45  ;;  %v10056_v35 = vsel %vm334_vm2, %v3048_v39, %v3064_v42  ;;  %v7916_v42 = vld [vmem:[%s8302_s28 + $0xa0] sm:$0xff] }
 0x34c   : > { %11456 = vst [vmem:[#allocation25_spill] sm:$0xff] %v10027_v53  ;;  %v10039_v18 = vmax.f32 %v10027_v53, 0.0 }
 0x34d   : > { %11457 = vst [vmem:[#allocation24_spill] sm:$0xff] %v10032_v12  ;;  %v10046_v1 = vmax.f32 %v10032_v12, 0.0 }
 0x34e   : > { %11458 = vst [vmem:[#allocation27_spill] sm:$0xff] %v10039_v18  ;;  %6063 = vmatmul.mubr.msk.f32.gmra.mrb[184].mxu1 %vm7852_vm3, %v10043_v38  ;;  %v3164_v26 = vrot.slane %v10039_v18, 1 }
 0x34f   : > { %11459 = vst [vmem:[#allocation26_spill] sm:$0xff] %v10046_v1  ;;  %3605 = vmatprep.mubr.f32.mxu1 %v9875_v49  ;;  %v3148_v36 = vrot.slane %v10046_v1, 1 }
 0x351   : > { %v6924_v53 = vpop.f32.mrb[148].mxu0  ;;  %v10060_v12 = vsel %vm435_vm0, %v3148_v36, %v3164_v26  ;;  %v10064_v51 = vsel %vm435_vm0, %v3164_v26, %v3148_v36 }
 0x352   : > { %11460 = vst [vmem:[#allocation28_spill] sm:$0xff] %v10060_v12  ;;  %11461 = vst [vmem:[#allocation14_spill] sm:$0xff] %v10064_v51  ;;  %v10069_v5 = vadd.f32 %v7915_v48, %v6924_v53  ;;  %v2856_v46 = vpop.f32.mrb[149].mxu0  ;;  %7002 = vmatprep.mubr.f32.mxu0 %v10060_v12  ;;  %3606 = vmatmul.mubr.f32.gmra.mrb[186].mxu1 %v10056_v35  ;;  %v10085_v48 = vsel %vm334_vm2, %v3065_v57, %v3049_v16  ;;  %v3050_v12 = vrot.slane %v9958_v41, 7 }
 0x353   : > { %v10074_v39 = vadd.f32 %v7916_v42, %v2856_v46  ;;  %7003 = vmatmul.mubr.msk.f32.gmra.mrb[180].mxu0 %vm7853_vm1, %v10064_v51  ;;  %3610 = vmatprep.mubr.f32.mxu1 %v9926_v33  ;;  %11465 = vst [vmem:[#allocation59_spill] sm:$0xff] %v10085_v48  ;;  %v10098_v42 = vsel %vm334_vm2, %v3049_v16, %v3065_v57  ;;  %v7918_v57 = vld [vmem:[%s8302_s28 + $0xb0] sm:$0xff] }
 0x354   : > { %11462 = vst [vmem:[#allocation15_spill] sm:$0xff] %v10069_v5  ;;  %v10081_v26 = vmax.f32 %v10069_v5, 0.0  ;;  %11467 = vst [vmem:[#allocation61_spill] sm:$0xff] %v10098_v42 }
 0x355   : > { %11463 = vst [vmem:[#allocation57_spill] sm:$0xff] %v10074_v39  ;;  %v10088_v53 = vmax.f32 %v10074_v39, 0.0 }
 0x356   : > { %11464 = vst [vmem:[#allocation58_spill] sm:$0xff] %v10081_v26  ;;  %6065 = vmatmul.mubr.msk.f32.gmra.mrb[188].mxu1 %vm7852_vm3, %v10085_v48  ;;  %v3165_v46 = vrot.slane %v10081_v26, 1 }
 0x357   : > { %11466 = vst [vmem:[#allocation60_spill] sm:$0xff] %v10088_v53  ;;  %3615 = vmatprep.mubr.f32.mxu1 %v9914_v25  ;;  %v3149_v36 = vrot.slane %v10088_v53, 1 }
 0x359   : > { %v6927_v5 = vpop.f32.mrb[150].mxu0  ;;  %v10102_v39 = vsel %vm435_vm0, %v3149_v36, %v3165_v46  ;;  %v10106_v51 = vsel %vm435_vm0, %v3165_v46, %v3149_v36 }
 0x35a   : > { %11468 = vst [vmem:[#allocation62_spill] sm:$0xff] %v10102_v39  ;;  %11469 = vst [vmem:[#allocation63_spill] sm:$0xff] %v10106_v51  ;;  %v10111_v60 = vadd.f32 %v7917_v0, %v6927_v5  ;;  %v2866_v54 = vpop.f32.mrb[151].mxu0  ;;  %7005 = vmatprep.mubr.f32.mxu0 %v10102_v39  ;;  %3616 = vmatmul.mubr.f32.gmra.mrb[190].mxu1 %v10098_v42  ;;  %v10127_v5 = vsel %vm334_vm2, %v3066_v56, %v3050_v12  ;;  %v3051_v39 = vrot.slane %v10004_v40, 7 }
 0x35b   : > { %v10116_v16 = vadd.f32 %v7918_v57, %v2866_v54  ;;  %7006 = vmatmul.mubr.msk.f32.gmra.mrb[182].mxu0 %vm7853_vm1, %v10106_v51  ;;  %3620 = vmatprep.mubr.f32.mxu1 %v9958_v41  ;;  %11472 = vst [vmem:[#allocation66_spill] sm:$0xff] %v10127_v5  ;;  %v10140_v57 = vsel %vm334_vm2, %v3050_v12, %v3066_v56  ;;  %v7920_v56 = vld [vmem:[%s8302_s28 + $0xc0] sm:$0xff] }
 0x35c   : > { %11470 = vst [vmem:[#allocation64_spill] sm:$0xff] %v10111_v60  ;;  %v10123_v46 = vmax.f32 %v10111_v60, 0.0  ;;  %11473 = vst [vmem:[#allocation67_spill] sm:$0xff] %v10140_v57 }
 0x35d   : > { %11471 = vst [vmem:[#allocation65_spill] sm:$0xff] %v10116_v16  ;;  %v10130_v0 = vmax.f32 %v10116_v16, 0.0 }
 0x35e   : > { %6067 = vmatmul.mubr.msk.f32.gmra.mrb[192].mxu1 %vm7852_vm3, %v10127_v5  ;;  %v3166_v54 = vrot.slane %v10123_v46, 1  ;;  %v3067_v5 = vrot.slane %v9997_v4, 7 }
 0x35f   : > { %3625 = vmatprep.mubr.f32.mxu1 %v9943_v32  ;;  %v3150_v36 = vrot.slane %v10130_v0, 1  ;;  %v7919_v32 = vld [vmem:[%s8302_s28 + $0xc8] sm:$0xff] }
 0x361   : > { %v6930_v60 = vpop.f32.mrb[152].mxu0  ;;  %v10144_v16 = vsel %vm435_vm0, %v3150_v36, %v3166_v54  ;;  %v10148_v51 = vsel %vm435_vm0, %v3166_v54, %v3150_v36 }
 0x362   : > { %11474 = vst [vmem:[#allocation68_spill] sm:$0xff] %v10144_v16  ;;  %11475 = vst [vmem:[#allocation69_spill] sm:$0xff] %v10148_v51  ;;  %v10153_v41 = vadd.f32 %v7919_v32, %v6930_v60  ;;  %v2876_v42 = vpop.f32.mrb[153].mxu0  ;;  %7008 = vmatprep.mubr.f32.mxu0 %v10144_v16  ;;  %3626 = vmatmul.mubr.f32.gmra.mrb[194].mxu1 %v10140_v57  ;;  %v10169_v32 = vsel %vm334_vm2, %v3067_v5, %v3051_v39  ;;  %v3052_v16 = vrot.slane %v10046_v1, 7 }
 0x363   : > { %v10158_v12 = vadd.f32 %v7920_v56, %v2876_v42  ;;  %7009 = vmatmul.mubr.msk.f32.gmra.mrb[184].mxu0 %vm7853_vm1, %v10148_v51  ;;  %3630 = vmatprep.mubr.f32.mxu1 %v10004_v40  ;;  %11478 = vst [vmem:[#allocation72_spill] sm:$0xff] %v10169_v32  ;;  %v10182_v56 = vsel %vm334_vm2, %v3051_v39, %v3067_v5  ;;  %v7922_v39 = vld [vmem:[%s8302_s28 + $0xd0] sm:$0xff] }
 0x364   : > { %11476 = vst [vmem:[#allocation70_spill] sm:$0xff] %v10153_v41  ;;  %v10165_v54 = vmax.f32 %v10153_v41, 0.0  ;;  %11479 = vst [vmem:[#allocation73_spill] sm:$0xff] %v10182_v56 }
 0x365   : > { %11477 = vst [vmem:[#allocation71_spill] sm:$0xff] %v10158_v12  ;;  %v10172_v60 = vmax.f32 %v10158_v12, 0.0 }
 0x366   : > { %6069 = vmatmul.mubr.msk.f32.gmra.mrb[196].mxu1 %vm7852_vm3, %v10169_v32  ;;  %v3167_v42 = vrot.slane %v10165_v54, 1  ;;  %v3068_v32 = vrot.slane %v10039_v18, 7 }
 0x367   : > { %3635 = vmatprep.mubr.f32.mxu1 %v9997_v4  ;;  %v3151_v36 = vrot.slane %v10172_v60, 1  ;;  %v7921_v4 = vld [vmem:[%s8302_s28 + $0xd8] sm:$0xff] }
 0x369   : > { %v6933_v41 = vpop.f32.mrb[154].mxu0  ;;  %v10186_v12 = vsel %vm435_vm0, %v3151_v36, %v3167_v42  ;;  %v10190_v51 = vsel %vm435_vm0, %v3167_v42, %v3151_v36 }
 0x36a   : > { %11480 = vst [vmem:[#allocation74_spill] sm:$0xff] %v10186_v12  ;;  %11481 = vst [vmem:[#allocation75_spill] sm:$0xff] %v10190_v51  ;;  %v10195_v40 = vadd.f32 %v7921_v4, %v6933_v41  ;;  %v2886_v57 = vpop.f32.mrb[155].mxu0  ;;  %7011 = vmatprep.mubr.f32.mxu0 %v10186_v12  ;;  %3636 = vmatmul.mubr.f32.gmra.mrb[198].mxu1 %v10182_v56  ;;  %v10211_v41 = vsel %vm334_vm2, %v3068_v32, %v3052_v16  ;;  %v3053_v12 = vrot.slane %v10088_v53, 7 }
 0x36b   : > { %v10200_v5 = vadd.f32 %v7922_v39, %v2886_v57  ;;  %7012 = vmatmul.mubr.msk.f32.gmra.mrb[186].mxu0 %vm7853_vm1, %v10190_v51  ;;  %3640 = vmatprep.mubr.f32.mxu1 %v10046_v1  ;;  %11485 = vst [vmem:[#allocation79_spill] sm:$0xff] %v10211_v41  ;;  %v10224_v39 = vsel %vm334_vm2, %v3052_v16, %v3068_v32  ;;  %v7923_v1 = vld [vmem:[%s8302_s28 + $0xe8] sm:$0xff]  ;;  %v7924_v32 = vld [vmem:[%s8302_s28 + $0xe0] sm:$0xff] }
 0x36c   : > { %11482 = vst [vmem:[#allocation76_spill] sm:$0xff] %v10195_v40  ;;  %v10207_v42 = vmax.f32 %v10195_v40, 0.0  ;;  %11486 = vst [vmem:[#allocation80_spill] sm:$0xff] %v10224_v39 }
 0x36d   : > { %11483 = vst [vmem:[#allocation77_spill] sm:$0xff] %v10200_v5  ;;  %v10214_v4 = vmax.f32 %v10200_v5, 0.0 }
 0x36e   : > { %11484 = vst [vmem:[#allocation78_spill] sm:$0xff] %v10207_v42  ;;  %6071 = vmatmul.mubr.msk.f32.gmra.mrb[200].mxu1 %vm7852_vm3, %v10211_v41  ;;  %v3168_v57 = vrot.slane %v10207_v42, 1  ;;  %v3069_v41 = vrot.slane %v10081_v26, 7 }
 0x36f   : > { %3645 = vmatprep.mubr.f32.mxu1 %v10039_v18  ;;  %v3152_v36 = vrot.slane %v10214_v4, 1  ;;  %v3542_v18 = vpop.f32.mrb[160].mxu1 }
 0x370   : > { %v3544_v16 = vpop.f32.mrb[161].mxu1 }
 0x371   : > { %v6936_v40 = vpop.f32.mrb[156].mxu0  ;;  %v10228_v5 = vsel %vm435_vm0, %v3152_v36, %v3168_v57  ;;  %v10232_v51 = vsel %vm435_vm0, %v3168_v57, %v3152_v36  ;;  %v3547_v36 = vpop.f32.mrb[162].mxu1 }
 0x372   : > { %11487 = vst [vmem:[#allocation81_spill] sm:$0xff] %v10228_v5  ;;  %11488 = vst [vmem:[#allocation82_spill] sm:$0xff] %v10232_v51  ;;  %v10237_v56 = vadd.f32 %v7923_v1, %v6936_v40  ;;  %v2896_v23 = vpop.f32.mrb[157].mxu0  ;;  %7014 = vmatprep.mubr.f32.mxu0 %v10228_v5  ;;  %3646 = vmatmul.mubr.f32.gmra.mrb[202].mxu1 %v10224_v39  ;;  %v10253_v40 = vsel %vm334_vm2, %v3069_v41, %v3053_v12  ;;  %v3549_v16 = vpop.f32.mrb[163].mxu1 }
 0x373   : > { %v10242_v25 = vadd.f32 %v7924_v32, %v2896_v23  ;;  %7015 = vmatmul.mubr.msk.f32.gmra.mrb[188].mxu0 %vm7853_vm1, %v10232_v51  ;;  %3650 = vmatprep.mubr.f32.mxu1 %v10088_v53  ;;  %11491 = vst [vmem:[#allocation85_spill] sm:$0xff] %v10253_v40  ;;  %v3054_v16 = vrot.slane %v10130_v0, 7 }
 0x374   : > { %11489 = vst [vmem:[#allocation83_spill] sm:$0xff] %v10237_v56  ;;  %v10249_v57 = vmax.f32 %v10237_v56, 0.0  ;;  %v10266_v56 = vsel %vm334_vm2, %v3053_v12, %v3069_v41  ;;  %v4812_v12 = vld [vmem:[#allocation7 + $0x890] sm:$0xff]  ;;  %v4813_v41 = vld [vmem:[#allocation7 + $0x898] sm:$0xff] }
 0x375   : > { %11490 = vst [vmem:[#allocation84_spill] sm:$0xff] %v10242_v25  ;;  %v10256_v1 = vmax.f32 %v10242_v25, 0.0  ;;  %11492 = vst [vmem:[#allocation86_spill] sm:$0xff] %v10266_v56 }
 0x376   : > { %6073 = vmatmul.mubr.msk.f32.gmra.mrb[204].mxu1 %vm7852_vm3, %v10253_v40  ;;  %v3169_v23 = vrot.slane %v10249_v57, 1 }
 0x377   : > { %3655 = vmatprep.mubr.f32.mxu1 %v10081_v26  ;;  %v3153_v32 = vrot.slane %v10256_v1, 1  ;;  %v3070_v26 = vrot.slane %v10123_v46, 7 }
 0x379   : > { %v10268_v51 = vpop.f32.mrb[158].mxu0  ;;  %v10272_v25 = vsel %vm435_vm0, %v3153_v32, %v3169_v23  ;;  %v10276_v5 = vsel %vm435_vm0, %v3169_v23, %v3153_v32  ;;  %v10291_v23 = vsel %vm334_vm2, %v3070_v26, %v3054_v16  ;;  %v10293_v32 = vpack.c.bf16 %v4813_v41, %v4812_v12 }
 0x37a   : > { %11493 = vst [vmem:[#allocation87_spill] sm:$0xff] %v10272_v25  ;;  %v10280_v40 = vpop.f32.mrb[159].mxu0  ;;  %7017 = vmatprep.mubr.f32.mxu0 %v10272_v25  ;;  %3656 = vmatmul.mubr.f32.gmra.mrb[206].mxu1 %v10266_v56  ;;  %v4814_v25 = vld [vmem:[#allocation7 + $0x8a0] sm:$0xff]  ;;  %v4815_v56 = vld [vmem:[#allocation7 + $0x8a8] sm:$0xff]  ;;  %v10310_v12 = vsel %vm334_vm2, %v3054_v16, %v3070_v26  ;;  %v3055_v41 = vrot.slane %v10172_v60, 7  ;;  %v3072_v16 = vrot.slane %v10207_v42, 7 }
 0x37b   : > { %11494 = vst [vmem:[#allocation88_spill] sm:$0xff] %v10280_v40  ;;  %7018 = vmatmul.mubr.msk.f32.gmra.mrb[190].mxu0 %vm7853_vm1, %v10276_v5  ;;  %3660 = vmatprep.mubr.f32.mxu1 %v10130_v0  ;;  %v4818_v26 = vld [vmem:[#allocation7 + $0x8c0] sm:$0xff] }
 0x37c   : > { %4199 = vmatprep.mubr.f32.mxu0 %v9722_v27 }
 0x37d   : > { %v6974_v53 = vpop.f32.mrb[160].mxu0 }
 0x37e   : > { %6075 = vmatmul.mubr.msk.f32.gmra.mrb[208].mxu1 %vm7852_vm3, %v10291_v23  ;;  %v3767_v39 = vpop.f32.mrb[161].mxu0  ;;  %v10298_v40 = vadd.f32 %v6974_v53, %v3547_v36  ;;  %v3071_v53 = vrot.slane %v10165_v54, 7  ;;  %v10315_v36 = vpack.c.bf16 %v4815_v56, %v4814_v25 }
 0x37f   : > { %6113 = vmatmul.mubr.msk.f32.vlgmr.msra.gmra.mrb[192].mxu0 %vm7852_vm3, %v9740_v61  ;;  %3665 = vmatprep.mubr.f32.mxu1 %v10123_v46  ;;  %v10304_v27 = vadd.f32 %v3767_v39, %v3542_v18  ;;  %v4816_v61 = vld [vmem:[#allocation7 + $0x8b0] sm:$0xff]  ;;  %v4817_v18 = vld [vmem:[#allocation7 + $0x8b8] sm:$0xff]  ;;  %v3056_v39 = vrot.slane %v10214_v4, 7 }
 0x380   : > { %11495 = vst [vmem:[#allocation89_spill] sm:$0xff] %v10298_v40  ;;  %4204 = vmatprep.mubr.f32.mxu0 %v9719_v22  ;;  %7743 = vmatpush3.bf16.msra.mxu0 %v9845_v10  ;;  %v10324_v22 = vsel %vm334_vm2, %v3071_v53, %v3055_v41  ;;  %v10327_v25 = vpack.c.bf16 %v4817_v18, %v4816_v61  ;;  %v4820_v18 = vld [vmem:[#allocation7 + $0x8d0] sm:$0xff]  ;;  %v3073_v40 = vrot.slane %v10249_v57, 7 }
 0x381   : > { %11496 = vst [vmem:[#allocation90_spill] sm:$0xff] %v10304_v27  ;;  %7745 = vmatprep.subr.bf16.mxu0 %v10293_v32  ;;  %v10340_v56 = vsel %vm334_vm2, %v3055_v41, %v3071_v53  ;;  %v4821_v27 = vld [vmem:[#allocation7 + $0x8d8] sm:$0xff]  ;;  %v10354_v41 = vsel %vm334_vm2, %v3072_v16, %v3056_v39 }
 0x382   : > { %3666 = vmatmul.mubr.f32.gmra.mrb[210].mxu1 %v10310_v12  ;;  %11497 = vst [vmem:[#allocation91_spill] sm:$0xff] %v10327_v25  ;;  %v10357_v53 = vpack.c.bf16 %v4821_v27, %v4820_v18  ;;  %v10370_v27 = vsel %vm334_vm2, %v3056_v39, %v3072_v16  ;;  %v3057_v18 = vrot.slane %v10256_v1, 7 }
 0x383   : > { %4205 = vmatmul.mubr.f32.gmra.mrb[194].mxu0 %v9774_v55  ;;  %3670 = vmatprep.mubr.f32.mxu1 %v10172_v60  ;;  %v4819_v55 = vld [vmem:[#allocation7 + $0x8c8] sm:$0xff] }
 0x384   : > { %4209 = vmatprep.mubr.f32.mxu0 %v9758_v19  ;;  %7747 = vmatpush3.bf16.msra.mxu0 %v10293_v32  ;;  %v10345_v61 = vpack.c.bf16 %v4819_v55, %v4818_v26  ;;  %11498 = vst [vmem:[#allocation92_spill] sm:$0xff] %v10357_v53  ;;  %v4822_v26 = vld [vmem:[#allocation7 + $0x8e0] sm:$0xff]  ;;  %v4823_v55 = vld [vmem:[#allocation7 + $0x8e8] sm:$0xff]  ;;  %v10384_v39 = vsel %vm334_vm2, %v3073_v40, %v3057_v18 }
 0x385   : > { %7749 = vmatprep.subr.bf16.mxu0 %v10315_v36 }
 0x386   : > { %6077 = vmatmul.mubr.msk.f32.gmra.mrb[212].mxu1 %vm7852_vm3, %v10324_v22 }
 0x387   : > { %6115 = vmatmul.mubr.msk.f32.gmra.mrb[196].mxu0 %vm7852_vm3, %v9808_v43  ;;  %3675 = vmatprep.mubr.f32.mxu1 %v10165_v54 }
 0x388   : > { %4214 = vmatprep.mubr.f32.mxu0 %v9736_v24  ;;  %7751 = vmatpush3.bf16.msra.mxu0 %v10315_v36 }
 0x389   : > { %7753 = vmatprep.subr.bf16.mxu0 %v10327_v25 }
 0x38a   : > { %3676 = vmatmul.mubr.f32.gmra.mrb[214].mxu1 %v10340_v56 }
 0x38b   : > { %4215 = vmatmul.mubr.f32.gmra.mrb[198].mxu0 %v9839_v31  ;;  %3680 = vmatprep.mubr.f32.mxu1 %v10214_v4 }
 0x38c   : > { %4219 = vmatprep.mubr.f32.mxu0 %v9779_v17  ;;  %7755 = vmatpush3.bf16.msra.mxu0 %v10327_v25  ;;  %v10375_v25 = vpack.c.bf16 %v4823_v55, %v4822_v26  ;;  %v10400_v26 = vsel %vm334_vm2, %v3057_v18, %v3073_v40  ;;  %v4782_v40 = vld [vmem:[#allocation7 + $0x7a0] sm:$0xff]  ;;  %v4783_v18 = vld [vmem:[#allocation7 + $0x7a8] sm:$0xff] }
 0x38d   : > { %7757 = vmatprep.subr.bf16.mxu0 %v10345_v61 }
 0x38e   : > { %6079 = vmatmul.mubr.msk.f32.gmra.mrb[216].mxu1 %vm7852_vm3, %v10354_v41  ;;  %11499 = vst [vmem:[#allocation93_spill] sm:$0xff] %v10375_v25 }
 0x38f   : > { %6117 = vmatmul.mubr.msk.f32.gmra.mrb[200].mxu0 %vm7852_vm3, %v9879_v9  ;;  %3685 = vmatprep.mubr.f32.mxu1 %v10207_v42  ;;  %v4824_v9 = vld [vmem:[#allocation7 + $0x8f0] sm:$0xff]  ;;  %v4825_v42 = vld [vmem:[#allocation7 + $0x8f8] sm:$0xff] }
 0x390   : > { %4224 = vmatprep.mubr.f32.mxu0 %v9770_v13  ;;  %7759 = vmatpush3.bf16.msra.mxu0 %v10345_v61  ;;  %v10387_v16 = vpack.c.bf16 %v4825_v42, %v4824_v9  ;;  %v4778_v9 = vld [vmem:[#allocation7 + $0x780] sm:$0xff]  ;;  %v4779_v42 = vld [vmem:[#allocation7 + $0x788] sm:$0xff] }
 0x391   : > { %7761 = vmatprep.subr.bf16.mxu0 %v10357_v53  ;;  %v7693_v55 = vpack.c.bf16 %v4779_v42, %v4778_v9  ;;  %v4784_v9 = vld [vmem:[#allocation7 + $0x7b0] sm:$0xff]  ;;  %v4786_v42 = vld [vmem:[#allocation7 + $0x7c0] sm:$0xff] }
 0x392   : > { %3686 = vmatmul.mubr.f32.gmra.mrb[218].mxu1 %v10370_v27 }
 0x393   : > { %4225 = vmatmul.mubr.f32.gmra.mrb[202].mxu0 %v9910_v8  ;;  %3690 = vmatprep.mubr.f32.mxu1 %v10256_v1 }
 0x394   : > { %4229 = vmatprep.mubr.f32.mxu0 %v9819_v62  ;;  %7763 = vmatpush3.bf16.msra.mxu0 %v10357_v53  ;;  %v4781_v53 = vld [vmem:[#allocation7 + $0x798] sm:$0xff] }
 0x395   : > { %7765 = vmatprep.subr.bf16.mxu0 %v10375_v25 }
 0x396   : > { %6081 = vmatmul.mubr.msk.f32.gmra.mrb[220].mxu1 %vm7852_vm3, %v10384_v39 }
 0x397   : > { %6119 = vmatmul.mubr.msk.f32.gmra.mrb[204].mxu0 %vm7852_vm3, %v9947_v20  ;;  %3695 = vmatprep.mubr.f32.mxu1 %v10249_v57 }
 0x398   : > { %4234 = vmatprep.mubr.f32.mxu0 %v9804_v47  ;;  %7767 = vmatpush3.bf16.msra.mxu0 %v10375_v25  ;;  %v4780_v25 = vld [vmem:[#allocation7 + $0x790] sm:$0xff] }
 0x399   : > { %7769 = vmatprep.subr.bf16.mxu0 %v10387_v16 }
 0x39a   : > { %3696 = vmatmul.mubr.f32.gmra.mrb[222].mxu1 %v10400_v26 }
 0x39b   : > { %4235 = vmatmul.mubr.f32.gmra.mrb[206].mxu0 %v9972_v34  ;;  %7052 = vmatprep.mubr.f32.mxu1 %v9744_v63  ;;  %v7696_v63 = vpack.c.bf16 %v4781_v53, %v4780_v25  ;;  %v4785_v25 = vld [vmem:[#allocation7 + $0x7b8] sm:$0xff] }
 0x39c   : > { %4239 = vmatprep.mubr.f32.mxu0 %v9857_v44  ;;  %7771 = vmatpush3.bf16.msra.mxu0 %v10387_v16  ;;  %v7702_v53 = vpack.c.bf16 %v4785_v25, %v4784_v9  ;;  %v4790_v25 = vld [vmem:[#allocation7 + $0x7e0] sm:$0xff] }
 0x39e   : > { %7053 = vmatmul.mubr.msk.f32.vlgmr.msra.gmra.mrb[224].mxu1 %vm7853_vm1, %v9748_v30  ;;  %v7699_v30 = vpack.c.bf16 %v4783_v18, %v4782_v40  ;;  %v4788_v40 = vld [vmem:[#allocation7 + $0x7d0] sm:$0xff]  ;;  %v4789_v18 = vld [vmem:[#allocation7 + $0x7d8] sm:$0xff] }
 0x39f   : > { %6121 = vmatmul.mubr.msk.f32.gmra.mrb[208].mxu0 %vm7852_vm3, %v10001_v21  ;;  %7055 = vmatprep.mubr.f32.mxu1 %v9787_v6  ;;  %v7708_v9 = vpack.c.bf16 %v4789_v18, %v4788_v40  ;;  %v4793_v40 = vld [vmem:[#allocation7 + $0x7f8] sm:$0xff] }
 0x3a0   : > { %4244 = vmatprep.mubr.f32.mxu0 %v9843_v3  ;;  %7694 = vmatpush1.bf16.msra.mxu1 %v7693_v55  ;;  %v4787_v55 = vld [vmem:[#allocation7 + $0x7c8] sm:$0xff]  ;;  %v11505_v18 = vld [vmem:[#allocation41_spill] sm:$0xff] }
 0x3a1   : > { %7695 = vmatprep.subr.bf16.mxu1 %v11411_v28 }
 0x3a2   : > { %7056 = vmatmul.mubr.msk.f32.gmra.mrb[226].mxu1 %vm7853_vm1, %v9791_v2 }
 0x3a3   : > { %4245 = vmatmul.mubr.f32.gmra.mrb[210].mxu0 %v10014_v52  ;;  %7058 = vmatprep.mubr.f32.mxu1 %v9812_v14 }
 0x3a4   : > { %4249 = vmatprep.mubr.f32.mxu0 %v9890_v45  ;;  %7697 = vmatpush1.bf16.msra.mxu1 %v7696_v63  ;;  %v7705_v63 = vpack.c.bf16 %v4787_v55, %v4786_v42  ;;  %v11501_v42 = vld [vmem:[#allocation34_spill] sm:$0xff]  ;;  %v11502_v55 = vld [vmem:[#allocation61_spill] sm:$0xff] }
 0x3a5   : > { %7698 = vmatprep.subr.bf16.mxu1 %v11411_v28 }
 0x3a6   : > { %7059 = vmatmul.mubr.msk.f32.gmra.mrb[228].mxu1 %vm7853_vm1, %v9816_v59 }
 0x3a7   : > { %6123 = vmatmul.mubr.msk.f32.gmra.mrb[212].mxu0 %vm7852_vm3, %v10043_v38  ;;  %7061 = vmatprep.mubr.f32.mxu1 %v9849_v11  ;;  %v11528_v11 = vld [vmem:[#allocation69_spill] sm:$0xff] }
 0x3a8   : > { %4254 = vmatprep.mubr.f32.mxu0 %v9875_v49  ;;  %7700 = vmatpush1.bf16.msra.mxu1 %v7699_v30  ;;  %v11500_v30 = vld [vmem:[#allocation31_spill] sm:$0xff] }
 0x3a9   : > { %7701 = vmatprep.subr.bf16.mxu1 %v11411_v28 }
 0x3aa   : > { %7062 = vmatmul.mubr.msk.f32.gmra.mrb[230].mxu1 %vm7853_vm1, %v9853_v58  ;;  %v11512_v58 = vld [vmem:[#allocation20_spill] sm:$0xff] }
 0x3ab   : > { %4255 = vmatmul.mubr.f32.gmra.mrb[214].mxu0 %v10056_v35  ;;  %7064 = vmatprep.mubr.f32.mxu1 %v9883_v7  ;;  %v11504_v7 = vld [vmem:[#allocation55_spill] sm:$0xff] }
 0x3ac   : > { %4259 = vmatprep.mubr.f32.mxu0 %v9926_v33  ;;  %7703 = vmatpush1.bf16.msra.mxu1 %v7702_v53  ;;  %v4791_v53 = vld [vmem:[#allocation7 + $0x7e8] sm:$0xff] }
 0x3ad   : > { %7704 = vmatprep.subr.bf16.mxu1 %v11411_v28 }
 0x3ae   : > { %7065 = vmatmul.mubr.msk.f32.gmra.mrb[232].mxu1 %vm7853_vm1, %v9887_v15  ;;  %v11503_v15 = vld [vmem:[#allocation54_spill] sm:$0xff] }
 0x3af   : > { %6125 = vmatmul.mubr.msk.f32.gmra.mrb[216].mxu0 %vm7852_vm3, %v10085_v48  ;;  %7067 = vmatprep.mubr.f32.mxu1 %v9918_v50  ;;  %v7711_v50 = vpack.c.bf16 %v4791_v53, %v4790_v25  ;;  %v4795_v25 = vld [vmem:[#allocation7 + $0x808] sm:$0xff]  ;;  %v11509_v53 = vld [vmem:[#allocation56_spill] sm:$0xff] }
 0x3b0   : > { %4264 = vmatprep.mubr.f32.mxu0 %v11500_v30  ;;  %7706 = vmatpush1.bf16.msra.mxu1 %v7705_v63  ;;  %v4792_v63 = vld [vmem:[#allocation7 + $0x7f0] sm:$0xff]  ;;  %v11506_v30 = vld [vmem:[#allocation66_spill] sm:$0xff] }
 0x3b1   : > { %7707 = vmatprep.subr.bf16.mxu1 %v11411_v28 }
 0x3b2   : > { %7068 = vmatmul.mubr.msk.f32.gmra.mrb[234].mxu1 %vm7853_vm1, %v11501_v42  ;;  %v11507_v42 = vld [vmem:[#allocation42_spill] sm:$0xff] }
 0x3b3   : > { %4265 = vmatmul.mubr.f32.gmra.mrb[218].mxu0 %v11502_v55  ;;  %7070 = vmatprep.mubr.f32.mxu1 %v11503_v15  ;;  %v11508_v55 = vld [vmem:[#allocation38_spill] sm:$0xff]  ;;  %v7714_v15 = vpack.c.bf16 %v4793_v40, %v4792_v63  ;;  %v4797_v63 = vld [vmem:[#allocation7 + $0x818] sm:$0xff] }
 0x3b4   : > { %4269 = vmatprep.mubr.f32.mxu0 %v11504_v7  ;;  %7709 = vmatpush1.bf16.msra.mxu1 %v7708_v9  ;;  %v4794_v9 = vld [vmem:[#allocation7 + $0x800] sm:$0xff]  ;;  %v11510_v7 = vld [vmem:[#allocation67_spill] sm:$0xff] }
 0x3b5   : > { %7710 = vmatprep.subr.bf16.mxu1 %v11411_v28  ;;  %v11513_v40 = vld [vmem:[#allocation22_spill] sm:$0xff] }
 0x3b6   : > { %7071 = vmatmul.mubr.msk.f32.gmra.mrb[236].mxu1 %vm7853_vm1, %v11505_v18  ;;  %v11511_v18 = vld [vmem:[#allocation19_spill] sm:$0xff] }
 0x3b7   : > { %6127 = vmatmul.mubr.msk.f32.gmra.mrb[220].mxu0 %vm7852_vm3, %v11506_v30  ;;  %7073 = vmatprep.mubr.f32.mxu1 %v11507_v42  ;;  %v7717_v42 = vpack.c.bf16 %v4795_v25, %v4794_v9  ;;  %v4799_v9 = vld [vmem:[#allocation7 + $0x828] sm:$0xff]  ;;  %v11517_v25 = vld [vmem:[#allocation14_spill] sm:$0xff] }
 0x3b8   : > { %4274 = vmatprep.mubr.f32.mxu0 %v11508_v55  ;;  %7712 = vmatpush1.bf16.msra.mxu1 %v7711_v50  ;;  %v4796_v50 = vld [vmem:[#allocation7 + $0x810] sm:$0xff]  ;;  %v11520_v30 = vld [vmem:[#allocation26_spill] sm:$0xff] }
 0x3b9   : > { %7713 = vmatprep.subr.bf16.mxu1 %v11411_v28  ;;  %v11514_v55 = vld [vmem:[#allocation72_spill] sm:$0xff] }
 0x3ba   : > { %7074 = vmatmul.mubr.msk.f32.gmra.mrb[238].mxu1 %vm7853_vm1, %v11509_v53  ;;  %v11515_v53 = vld [vmem:[#allocation28_spill] sm:$0xff] }
 0x3bb   : > { %4275 = vmatmul.mubr.f32.gmra.mrb[222].mxu0 %v11510_v7  ;;  %7076 = vmatprep.mubr.f32.mxu1 %v11511_v18  ;;  %v11516_v7 = vld [vmem:[#allocation17_spill] sm:$0xff]  ;;  %v7720_v18 = vpack.c.bf16 %v4797_v63, %v4796_v50  ;;  %v11521_v63 = vld [vmem:[#allocation63_spill] sm:$0xff] }
 0x3bc   : > { %4279 = vmatprep.mubr.f32.mxu0 %v11512_v58  ;;  %7715 = vmatpush1.bf16.msra.mxu1 %v7714_v15  ;;  %v4798_v15 = vld [vmem:[#allocation7 + $0x820] sm:$0xff]  ;;  %v11518_v58 = vld [vmem:[#allocation73_spill] sm:$0xff] }
 0x3bd   : > { %7716 = vmatprep.subr.bf16.mxu1 %v11411_v28  ;;  %v4801_v50 = vld [vmem:[#allocation7 + $0x838] sm:$0xff] }
 0x3be   : > { %7077 = vmatmul.mubr.msk.f32.gmra.mrb[240].mxu1 %vm7853_vm1, %v11513_v40  ;;  %v11519_v40 = vld [vmem:[#allocation62_spill] sm:$0xff] }
 0x3bf   : > { %6129 = vmatmul.mubr.msk.f32.gmra.mrb[224].mxu0 %vm7852_vm3, %v11514_v55  ;;  %7079 = vmatprep.mubr.f32.mxu1 %v11515_v53  ;;  %v7723_v53 = vpack.c.bf16 %v4799_v9, %v4798_v15  ;;  %v4802_v15 = vld [vmem:[#allocation7 + $0x840] sm:$0xff]  ;;  %v4803_v9 = vld [vmem:[#allocation7 + $0x848] sm:$0xff]  ;;  %v7926_v55 = vld [vmem:[%s8302_s28 + $0xf0] sm:$0xff] }
 0x3c0   : > { %4284 = vmatprep.mubr.f32.mxu0 %v11516_v7  ;;  %7718 = vmatpush1.bf16.msra.mxu1 %v7717_v42  ;;  %v4800_v42 = vld [vmem:[#allocation7 + $0x830] sm:$0xff]  ;;  %v11522_v7 = vld [vmem:[#allocation79_spill] sm:$0xff] }
 0x3c1   : > { %7719 = vmatprep.subr.bf16.mxu1 %v11411_v28 }
 0x3c2   : > { %7080 = vmatmul.mubr.msk.f32.gmra.mrb[242].mxu1 %vm7853_vm1, %v11517_v25  ;;  %v11523_v25 = vld [vmem:[#allocation68_spill] sm:$0xff] }
 0x3c3   : > { %4285 = vmatmul.mubr.f32.gmra.mrb[226].mxu0 %v11518_v58  ;;  %7082 = vmatprep.mubr.f32.mxu1 %v11519_v40  ;;  %v11524_v40 = vld [vmem:[#allocation27_spill] sm:$0xff] }
 0x3c4   : > { %4289 = vmatprep.mubr.f32.mxu0 %v11520_v30  ;;  %7721 = vmatpush1.bf16.msra.mxu1 %v7720_v18  ;;  %v7726_v18 = vpack.c.bf16 %v4801_v50, %v4800_v42  ;;  %v7925_v30 = vld [vmem:[%s8302_s28 + $0xf8] sm:$0xff]  ;;  %v11531_v42 = vld [vmem:[#allocation60_spill] sm:$0xff]  ;;  %v7729_v50 = vpack.c.bf16 %v4803_v9, %v4802_v15  ;;  %v11535_v15 = vld [vmem:[#allocation58_spill] sm:$0xff] }
 0x3c5   : > { %7722 = vmatprep.subr.bf16.mxu1 %v11411_v28  ;;  %v10499_v58 = vadd.f32 %v7925_v30, %v10268_v51  ;;  %v4804_v51 = vld [vmem:[#allocation7 + $0x850] sm:$0xff]  ;;  %v4805_v30 = vld [vmem:[#allocation7 + $0x858] sm:$0xff] }
 0x3c6   : > { %7083 = vmatmul.mubr.msk.f32.gmra.mrb[244].mxu1 %vm7853_vm1, %v11521_v63  ;;  %v11526_v63 = vld [vmem:[#allocation88_spill] sm:$0xff]  ;;  %v7732_v9 = vpack.c.bf16 %v4805_v30, %v4804_v51  ;;  %v4809_v30 = vld [vmem:[#allocation7 + $0x878] sm:$0xff] }
 0x3c7   : > { %6131 = vmatmul.mubr.msk.f32.gmra.mrb[228].mxu0 %vm7852_vm3, %v11522_v7  ;;  %7085 = vmatprep.mubr.f32.mxu1 %v11523_v25  ;;  %11525 = vst [vmem:[#allocation79_spill] sm:$0xff] %v10499_v58  ;;  %v10503_v48 = vadd.f32 %v7926_v55, %v11526_v63  ;;  %v11529_v25 = vld [vmem:[#allocation80_spill] sm:$0xff]  ;;  %v10519_v63 = vmax.f32 %v10499_v58, 0.0 }
 0x3c8   : > { %4294 = vmatprep.mubr.f32.mxu0 %v11524_v40  ;;  %7724 = vmatpush1.bf16.msra.mxu1 %v7723_v53  ;;  %v11530_v53 = vld [vmem:[#allocation74_spill] sm:$0xff]  ;;  %v11532_v40 = vld [vmem:[#allocation75_spill] sm:$0xff]  ;;  %v4808_v51 = vld [vmem:[#allocation7 + $0x870] sm:$0xff] }
 0x3c9   : > { %7725 = vmatprep.subr.bf16.mxu1 %v11411_v28  ;;  %11527 = vst [vmem:[#allocation88_spill] sm:$0xff] %v10503_v48  ;;  %v10516_v55 = vmax.f32 %v10503_v48, 0.0  ;;  %v3170_v58 = vrot.slane %v10519_v63, 1 }
 0x3ca   : > { %7086 = vmatmul.mubr.msk.f32.gmra.mrb[246].mxu1 %vm7853_vm1, %v11528_v11  ;;  %v11533_v11 = vld [vmem:[#allocation85_spill] sm:$0xff] }
 0x3cb   : > { %4295 = vmatmul.mubr.f32.gmra.mrb[230].mxu0 %v11529_v25  ;;  %7088 = vmatprep.mubr.f32.mxu1 %v11530_v53  ;;  %v4806_v53 = vld [vmem:[#allocation7 + $0x860] sm:$0xff]  ;;  %v3154_v48 = vrot.slane %v10516_v55, 1 }
 0x3cc   : > { %4299 = vmatprep.mubr.f32.mxu0 %v11531_v42  ;;  %7727 = vmatpush1.bf16.msra.mxu1 %v7726_v18  ;;  %v11534_v18 = vld [vmem:[#allocation81_spill] sm:$0xff]  ;;  %v11536_v42 = vld [vmem:[#allocation82_spill] sm:$0xff] }
 0x3cd   : > { %7728 = vmatprep.subr.bf16.mxu1 %v11411_v28  ;;  %v11537_v25 = vld [vmem:[#allocation86_spill] sm:$0xff] }
 0x3ce   : > { %7089 = vmatmul.mubr.msk.f32.gmra.mrb[248].mxu1 %vm7853_vm1, %v11532_v40  ;;  %v4807_v40 = vld [vmem:[#allocation7 + $0x868] sm:$0xff] }
 0x3cf   : > { %6133 = vmatmul.mubr.msk.f32.gmra.mrb[232].mxu0 %vm7852_vm3, %v11533_v11  ;;  %7091 = vmatprep.mubr.f32.mxu1 %v11534_v18  ;;  %v11538_v11 = vld [vmem:[#allocation87_spill] sm:$0xff] }
 0x3d0   : > { %4304 = vmatprep.mubr.f32.mxu0 %v11535_v15  ;;  %7730 = vmatpush1.bf16.msra.mxu1 %v7729_v50  ;;  %v7735_v50 = vpack.c.bf16 %v4807_v40, %v4806_v53  ;;  %v7738_v40 = vpack.c.bf16 %v4809_v30, %v4808_v51  ;;  %v10550_v53 = vsel %vm435_vm0, %v3170_v58, %v3154_v48  ;;  %v11548_v51 = vld [vmem:[#allocation50_spill] sm:$0xff] }
 0x3d1   : > { %7731 = vmatprep.subr.bf16.mxu1 %v11411_v28 }
 0x3d2   : > { %7092 = vmatmul.mubr.msk.f32.gmra.mrb[250].mxu1 %vm7853_vm1, %v11536_v42  ;;  %v10541_v42 = vsel %vm435_vm0, %v3154_v48, %v3170_v58 }
 0x3d3   : > { %4305 = vmatmul.mubr.f32.gmra.mrb[234].mxu0 %v11537_v25  ;;  %7094 = vmatprep.mubr.f32.mxu1 %v11538_v11 }
 0x3d4   : > { %4309 = vmatprep.mubr.f32.mxu0 %v10130_v0  ;;  %7733 = vmatpush1.bf16.msra.mxu1 %v7732_v9  ;;  %v11545_v9 = vld [vmem:[#allocation59_spill] sm:$0xff] }
 0x3d5   : > { %7734 = vmatprep.subr.bf16.mxu1 %v11411_v28 }
 0x3d6   : > { %7095 = vmatmul.mubr.msk.f32.gmra.mrb[252].mxu1 %vm7853_vm1, %v10276_v5 }
 0x3d7   : > { %6135 = vmatmul.mubr.msk.f32.gmra.mrb[236].mxu0 %vm7852_vm3, %v10291_v23  ;;  %7097 = vmatprep.mubr.f32.mxu1 %v10541_v42 }
 0x3d8   : > { %4314 = vmatprep.mubr.f32.mxu0 %v10123_v46  ;;  %7736 = vmatpush1.bf16.msra.mxu1 %v7735_v50  ;;  %v11546_v50 = vld [vmem:[#allocation16_spill] sm:$0xff] }
 0x3d9   : > { %7737 = vmatprep.subr.bf16.mxu1 %v11411_v28  ;;  %v11539_v28 = vld [vmem:[#allocation18_spill] sm:$0xff] }
 0x3da   : > { %7098 = vmatmul.mubr.msk.f32.gmra.mrb[254].mxu1 %vm7853_vm1, %v10550_v53 }
 0x3db   : > { %4315 = vmatmul.mubr.f32.gmra.mrb[238].mxu0 %v10310_v12  ;;  %4890 = vmatprep.mubr.f32.mxu1 %v9758_v19  ;;  %v11541_v19 = vld [vmem:[#allocation91_spill] sm:$0xff] }
 0x3dc   : > { %4319 = vmatprep.mubr.f32.mxu0 %v10172_v60  ;;  %7739 = vmatpush1.bf16.msra.mxu1 %v7738_v40 }
 0x3dd   : > { %7804 = vmatprep.subr.bf16.mxu1 %v9845_v10 }
 0x3df   : > { %6137 = vmatmul.mubr.msk.f32.gmra.mrb[240].mxu0 %vm7852_vm3, %v10324_v22  ;;  %6177 = vmatmul.mubr.msk.f32.vlgmr.msra.gmra.mrb[0].mxu1 %vm7852_vm3, %v9808_v43  ;;  %v11542_v43 = vld [vmem:[#allocation92_spill] sm:$0xff] }
 0x3e0   : > { %4324 = vmatprep.mubr.f32.mxu0 %v10165_v54  ;;  %4895 = vmatprep.mubr.f32.mxu1 %v9736_v24  ;;  %v11540_v24 = vld [vmem:[#allocation78_spill] sm:$0xff] }
 0x3e1   : > { %7812 = vmatpush3.bf16.msra.mxu1 %v9845_v10 }
 0x3e2   : > { %7805 = vmatprep.subr.bf16.mxu1 %v10293_v32 }
 0x3e3   : > { %4325 = vmatmul.mubr.f32.gmra.mrb[242].mxu0 %v10340_v56  ;;  %4896 = vmatmul.mubr.f32.gmra.mrb[2].mxu1 %v9839_v31 }
 0x3e4   : > { %4329 = vmatprep.mubr.f32.mxu0 %v10214_v4  ;;  %4900 = vmatprep.mubr.f32.mxu1 %v9779_v17  ;;  %v3074_v17 = vrot.slane %v10519_v63, 7 }
 0x3e5   : > { %7813 = vmatpush3.bf16.msra.mxu1 %v10293_v32 }
 0x3e6   : > { %7806 = vmatprep.subr.bf16.mxu1 %v10315_v36 }
 0x3e7   : > { %6139 = vmatmul.mubr.msk.f32.gmra.mrb[244].mxu0 %vm7852_vm3, %v10354_v41  ;;  %6179 = vmatmul.mubr.msk.f32.gmra.mrb[4].mxu1 %vm7852_vm3, %v11539_v28 }
 0x3e8   : > { %4334 = vmatprep.mubr.f32.mxu0 %v11540_v24  ;;  %4905 = vmatprep.mubr.f32.mxu1 %v9770_v13  ;;  %v3058_v13 = vrot.slane %v10516_v55, 7 }
 0x3e9   : > { %7814 = vmatpush3.bf16.msra.mxu1 %v10315_v36 }
 0x3ea   : > { %7807 = vmatprep.subr.bf16.mxu1 %v11541_v19 }
 0x3eb   : > { %4335 = vmatmul.mubr.f32.gmra.mrb[246].mxu0 %v10370_v27  ;;  %4906 = vmatmul.mubr.f32.gmra.mrb[6].mxu1 %v9910_v8 }
 0x3ec   : > { %4339 = vmatprep.mubr.f32.mxu0 %v10256_v1  ;;  %4910 = vmatprep.mubr.f32.mxu1 %v9819_v62  ;;  %v11543_v62 = vld [vmem:[#allocation93_spill] sm:$0xff] }
 0x3ed   : > { %7815 = vmatpush3.bf16.msra.mxu1 %v11541_v19  ;;  %v11549_v19 = vld [vmem:[#allocation61_spill] sm:$0xff] }
 0x3ee   : > { %7808 = vmatprep.subr.bf16.mxu1 %v10345_v61 }
 0x3ef   : > { %6141 = vmatmul.mubr.msk.f32.gmra.mrb[248].mxu0 %vm7852_vm3, %v10384_v39  ;;  %6181 = vmatmul.mubr.msk.f32.gmra.mrb[8].mxu1 %vm7852_vm3, %v9947_v20 }
 0x3f0   : > { %4344 = vmatprep.mubr.f32.mxu0 %v10249_v57  ;;  %4915 = vmatprep.mubr.f32.mxu1 %v9804_v47  ;;  %v10611_v47 = vsel %vm334_vm2, %v3074_v17, %v3058_v13 }
 0x3f1   : > { %7816 = vmatpush3.bf16.msra.mxu1 %v10345_v61 }
 0x3f2   : > { %7809 = vmatprep.subr.bf16.mxu1 %v11542_v43 }
 0x3f3   : > { %4345 = vmatmul.mubr.f32.gmra.mrb[250].mxu0 %v10400_v26  ;;  %4916 = vmatmul.mubr.f32.gmra.mrb[10].mxu1 %v9972_v34 }
 0x3f4   : > { %4349 = vmatprep.mubr.f32.mxu0 %v10516_v55  ;;  %4920 = vmatprep.mubr.f32.mxu1 %v9857_v44  ;;  %v10625_v44 = vsel %vm334_vm2, %v3058_v13, %v3074_v17  ;;  %v11550_v13 = vld [vmem:[#allocation21_spill] sm:$0xff] }
 0x3f5   : > { %7817 = vmatpush3.bf16.msra.mxu1 %v11542_v43  ;;  %v11551_v43 = vld [vmem:[#allocation55_spill] sm:$0xff] }
 0x3f6   : > { %7810 = vmatprep.subr.bf16.mxu1 %v11543_v62 }
 0x3f7   : > { %6143 = vmatmul.mubr.msk.f32.gmra.mrb[252].mxu0 %vm7852_vm3, %v10611_v47  ;;  %6183 = vmatmul.mubr.msk.f32.gmra.mrb[12].mxu1 %vm7852_vm3, %v10001_v21 }
 0x3f8   : > { %4354 = vmatprep.mubr.f32.mxu0 %v10519_v63  ;;  %4925 = vmatprep.mubr.f32.mxu1 %v9843_v3 }
 0x3f9   : > { %v3552_v31 = vpop.f32.mrb[164].mxu1  ;;  %7818 = vmatpush3.bf16.msra.mxu1 %v11543_v62  ;;  %v11552_v62 = vld [vmem:[#allocation52_spill] sm:$0xff] }
 0x3fa   : > { %v3554_v10 = vpop.f32.mrb[165].mxu1  ;;  %v6977_v58 = vpop.f32.mrb[162].mxu0  ;;  %7811 = vmatprep.subr.bf16.mxu1 %v10387_v16 }
 0x3fb   : > { %4355 = vmatmul.mubr.f32.gmra.mrb[254].mxu0 %v10625_v44  ;;  %4926 = vmatmul.mubr.f32.gmra.mrb[14].mxu1 %v10014_v52  ;;  %v3777_v8 = vpop.f32.mrb[163].mxu0 }
 0x3fc   : > { %v10630_v20 = vadd.f32 %v3777_v8, %v3552_v31  ;;  %4930 = vmatprep.mubr.f32.mxu1 %v9890_v45  ;;  %7132 = vmatprep.mubr.f32.mxu0 %v9787_v6 }
 0x3fd   : > { %v3557_v3 = vpop.f32.mrb[166].mxu1  ;;  %7819 = vmatpush3.bf16.msra.mxu1 %v10387_v16 }
 0x3fe   : > { %v10635_v34 = vadd.f32 %v6977_v58, %v3557_v3  ;;  %v3559_v21 = vpop.f32.mrb[167].mxu1  ;;  %v6980_v48 = vpop.f32.mrb[164].mxu0  ;;  %v11553_v3 = vld [vmem:[#allocation66_spill] sm:$0xff] }
 0x3ff   : > { %6185 = vmatmul.mubr.msk.f32.gmra.mrb[16].mxu1 %vm7852_vm3, %v10043_v38  ;;  %7133 = vmatmul.mubr.msk.f32.vlgmr.msra.gmra.mrb[0].mxu0 %vm7853_vm1, %v9791_v2  ;;  %v3787_v52 = vpop.f32.mrb[165].mxu0  ;;  %v11544_v2 = vld [vmem:[#allocation48_spill] sm:$0xff]  ;;  %v11554_v21 = vld [vmem:[#allocation34_spill] sm:$0xff] }
 0x400   : > { %4935 = vmatprep.mubr.f32.mxu1 %v9875_v49  ;;  %7135 = vmatprep.mubr.f32.mxu0 %v9812_v14 }
 0x401   : > { %v3562_v6 = vpop.f32.mrb[168].mxu1 }
 0x402   : > { %v10645_v45 = vadd.f32 %v3787_v52, %v3562_v6  ;;  %v3564_v32 = vpop.f32.mrb[169].mxu1  ;;  %v6983_v36 = vpop.f32.mrb[166].mxu0  ;;  %v11555_v52 = vld [vmem:[#allocation38_spill] sm:$0xff] }
 0x403   : > { %4936 = vmatmul.mubr.f32.gmra.mrb[18].mxu1 %v10056_v35  ;;  %7136 = vmatmul.mubr.msk.f32.gmra.mrb[2].mxu0 %vm7853_vm1, %v9816_v59  ;;  %v3797_v38 = vpop.f32.mrb[167].mxu0  ;;  %v11547_v59 = vld [vmem:[#allocation31_spill] sm:$0xff]  ;;  %v11556_v6 = vld [vmem:[#allocation54_spill] sm:$0xff] }
 0x404   : > { %4940 = vmatprep.mubr.f32.mxu1 %v9926_v33  ;;  %7138 = vmatprep.mubr.f32.mxu0 %v11544_v2 }
 0x405   : > { %v3567_v61 = vpop.f32.mrb[170].mxu1 }
 0x406   : > { %v10653_v49 = vadd.f32 %v6980_v48, %v3567_v61  ;;  %v3569_v14 = vpop.f32.mrb[171].mxu1  ;;  %v6986_v16 = vpop.f32.mrb[168].mxu0  ;;  %v11557_v61 = vld [vmem:[#allocation67_spill] sm:$0xff] }
 0x407   : > { %6187 = vmatmul.mubr.msk.f32.gmra.mrb[20].mxu1 %vm7852_vm3, %v11545_v9  ;;  %7139 = vmatmul.mubr.msk.f32.gmra.mrb[4].mxu0 %vm7853_vm1, %v11546_v50  ;;  %v3807_v35 = vpop.f32.mrb[169].mxu0  ;;  %v11558_v14 = vld [vmem:[#allocation41_spill] sm:$0xff]  ;;  %v11559_v50 = vld [vmem:[#allocation20_spill] sm:$0xff] }
 0x408   : > { %4945 = vmatprep.mubr.f32.mxu1 %v11547_v59  ;;  %7141 = vmatprep.mubr.f32.mxu0 %v11548_v51  ;;  %v11560_v59 = vld [vmem:[#allocation42_spill] sm:$0xff] }
 0x409   : > { %v3572_v33 = vpop.f32.mrb[172].mxu1 }
 0x40a   : > { %v10663_v30 = vadd.f32 %v3797_v38, %v3572_v33  ;;  %v3574_v40 = vpop.f32.mrb[173].mxu1  ;;  %v6989_v28 = vpop.f32.mrb[170].mxu0 }
 0x40b   : > { %4946 = vmatmul.mubr.f32.gmra.mrb[22].mxu1 %v11549_v19  ;;  %7142 = vmatmul.mubr.msk.f32.gmra.mrb[6].mxu0 %vm7853_vm1, %v11550_v13  ;;  %v3817_v17 = vpop.f32.mrb[171].mxu0  ;;  %v11562_v13 = vld [vmem:[#allocation56_spill] sm:$0xff] }
 0x40c   : > { %4950 = vmatprep.mubr.f32.mxu1 %v11551_v43  ;;  %7144 = vmatprep.mubr.f32.mxu0 %v11552_v62  ;;  %v11563_v62 = vld [vmem:[#allocation17_spill] sm:$0xff] }
 0x40d   : > { %v3577_v31 = vpop.f32.mrb[174].mxu1 }
 0x40e   : > { %v10671_v10 = vadd.f32 %v6983_v36, %v3577_v31  ;;  %v3579_v58 = vpop.f32.mrb[175].mxu1  ;;  %v6992_v8 = vpop.f32.mrb[172].mxu0  ;;  %v11564_v31 = vld [vmem:[#allocation19_spill] sm:$0xff] }
 0x40f   : > { %6189 = vmatmul.mubr.msk.f32.gmra.mrb[24].mxu1 %vm7852_vm3, %v11553_v3  ;;  %7145 = vmatmul.mubr.msk.f32.gmra.mrb[8].mxu0 %vm7853_vm1, %v11554_v21  ;;  %v3827_v48 = vpop.f32.mrb[173].mxu0  ;;  %v11565_v21 = vld [vmem:[#allocation73_spill] sm:$0xff] }
 0x410   : > { %4955 = vmatprep.mubr.f32.mxu1 %v11555_v52  ;;  %7147 = vmatprep.mubr.f32.mxu0 %v11556_v6  ;;  %v11566_v52 = vld [vmem:[#allocation22_spill] sm:$0xff] }
 0x411   : > { %v3582_v32 = vpop.f32.mrb[176].mxu1  ;;  %v11567_v6 = vld [vmem:[#allocation26_spill] sm:$0xff] }
 0x412   : > { %v10681_v38 = vadd.f32 %v3807_v35, %v3582_v32  ;;  %v3584_v36 = vpop.f32.mrb[177].mxu1  ;;  %v6995_v2 = vpop.f32.mrb[174].mxu0  ;;  %v11561_v35 = vld [vmem:[#allocation72_spill] sm:$0xff] }
 0x413   : > { %4956 = vmatmul.mubr.f32.gmra.mrb[26].mxu1 %v11557_v61  ;;  %7148 = vmatmul.mubr.msk.f32.gmra.mrb[10].mxu0 %vm7853_vm1, %v11558_v14  ;;  %v3837_v9 = vpop.f32.mrb[175].mxu0  ;;  %v11568_v32 = vld [vmem:[#allocation28_spill] sm:$0xff] }
 0x414   : > { %4960 = vmatprep.mubr.f32.mxu1 %v11559_v50  ;;  %7150 = vmatprep.mubr.f32.mxu0 %v11560_v59 }
 0x415   : > { %v3587_v51 = vpop.f32.mrb[178].mxu1 }
 0x416   : > { %v10689_v33 = vadd.f32 %v6986_v16, %v3587_v51  ;;  %v3589_v40 = vpop.f32.mrb[179].mxu1  ;;  %v6998_v19 = vpop.f32.mrb[176].mxu0  ;;  %v11570_v51 = vld [vmem:[#allocation27_spill] sm:$0xff] }
 0x417   : > { %6191 = vmatmul.mubr.msk.f32.gmra.mrb[28].mxu1 %vm7852_vm3, %v11561_v35  ;;  %7151 = vmatmul.mubr.msk.f32.gmra.mrb[12].mxu0 %vm7853_vm1, %v11562_v13  ;;  %v3847_v43 = vpop.f32.mrb[177].mxu0  ;;  %v11571_v40 = vld [vmem:[#allocation62_spill] sm:$0xff] }
 0x418   : > { %4965 = vmatprep.mubr.f32.mxu1 %v11563_v62  ;;  %7153 = vmatprep.mubr.f32.mxu0 %v11564_v31  ;;  %v11572_v62 = vld [vmem:[#allocation80_spill] sm:$0xff]  ;;  %v11573_v31 = vld [vmem:[#allocation63_spill] sm:$0xff] }
 0x419   : > { %v3592_v58 = vpop.f32.mrb[180].mxu1 }
 0x41a   : > { %v10699_v3 = vadd.f32 %v3817_v17, %v3592_v58  ;;  %v3594_v16 = vpop.f32.mrb[181].mxu1  ;;  %v11569_v17 = vld [vmem:[#allocation14_spill] sm:$0xff]  ;;  %v11574_v58 = vld [vmem:[#allocation60_spill] sm:$0xff] }
 0x41b   : > { %4966 = vmatmul.mubr.f32.gmra.mrb[30].mxu1 %v11565_v21  ;;  %7154 = vmatmul.mubr.msk.f32.gmra.mrb[14].mxu0 %vm7853_vm1, %v11566_v52 }
 0x41c   : > { %4970 = vmatprep.mubr.f32.mxu1 %v11567_v6  ;;  %7156 = vmatprep.mubr.f32.mxu0 %v11568_v32 }
 0x41d   : > { %v3597_v36 = vpop.f32.mrb[182].mxu1 }
 0x41e   : > { %v10707_v61 = vadd.f32 %v6989_v28, %v3597_v36  ;;  %v7001_v14 = vpop.f32.mrb[178].mxu0  ;;  %v3599_v50 = vpop.f32.mrb[183].mxu1  ;;  %v11577_v36 = vld [vmem:[#allocation69_spill] sm:$0xff] }
 0x41f   : > { %v3857_v59 = vpop.f32.mrb[179].mxu0  ;;  %6193 = vmatmul.mubr.msk.f32.gmra.mrb[32].mxu1 %vm7852_vm3, %v11522_v7  ;;  %7157 = vmatmul.mubr.msk.f32.gmra.mrb[16].mxu0 %vm7853_vm1, %v11569_v17  ;;  %v11575_v7 = vld [vmem:[#allocation68_spill] sm:$0xff]  ;;  %v11578_v50 = vld [vmem:[#allocation74_spill] sm:$0xff] }
 0x420   : > { %4975 = vmatprep.mubr.f32.mxu1 %v11570_v51  ;;  %7159 = vmatprep.mubr.f32.mxu0 %v11571_v40  ;;  %v11579_v40 = vld [vmem:[#allocation75_spill] sm:$0xff] }
 0x421   : > { %v3602_v35 = vpop.f32.mrb[184].mxu1 }
 0x422   : > { %v10717_v13 = vadd.f32 %v3827_v48, %v3602_v35  ;;  %v3604_v28 = vpop.f32.mrb[185].mxu1  ;;  %v11576_v48 = vld [vmem:[#allocation85_spill] sm:$0xff] }
 0x423   : > { %4976 = vmatmul.mubr.f32.gmra.mrb[34].mxu1 %v11572_v62  ;;  %7160 = vmatmul.mubr.msk.f32.gmra.mrb[18].mxu0 %vm7853_vm1, %v11573_v31 }
 0x424   : > { %4980 = vmatprep.mubr.f32.mxu1 %v11574_v58  ;;  %7162 = vmatprep.mubr.f32.mxu0 %v11575_v7 }
 0x425   : > { %v3607_v16 = vpop.f32.mrb[186].mxu1 }
 0x426   : > { %v10725_v21 = vadd.f32 %v6992_v8, %v3607_v16  ;;  %v10727_v52 = vpop.f32.mrb[180].mxu0  ;;  %v3609_v6 = vpop.f32.mrb[187].mxu1 }
 0x427   : > { %v3867_v32 = vpop.f32.mrb[181].mxu0  ;;  %6195 = vmatmul.mubr.msk.f32.gmra.mrb[36].mxu1 %vm7852_vm3, %v11576_v48  ;;  %7163 = vmatmul.mubr.msk.f32.gmra.mrb[20].mxu0 %vm7853_vm1, %v11577_v36  ;;  %v5407_v36 = vld [vmem:[#allocation9 + $0x90] sm:$0xff] }
 0x428   : > { %4985 = vmatprep.mubr.f32.mxu1 %v11535_v15  ;;  %7165 = vmatprep.mubr.f32.mxu0 %v11578_v50  ;;  %v5408_v50 = vld [vmem:[#allocation9 + $0x98] sm:$0xff] }
 0x429   : > { %v3612_v17 = vpop.f32.mrb[188].mxu1 }
 0x42a   : > { %v10737_v51 = vadd.f32 %v3837_v9, %v3612_v17  ;;  %v3614_v8 = vpop.f32.mrb[189].mxu1 }
 0x42b   : > { %4986 = vmatmul.mubr.f32.gmra.mrb[38].mxu1 %v11537_v25  ;;  %7166 = vmatmul.mubr.msk.f32.gmra.mrb[22].mxu0 %vm7853_vm1, %v11579_v40  ;;  %v7776_v8 = vpack.c.bf16 %v5408_v50, %v5407_v36 }
 0x42c   : > { %4990 = vmatprep.mubr.f32.mxu1 %v10130_v0 }
 0x42d   : > { %v3617_v35 = vpop.f32.mrb[190].mxu1 }
 0x42e   : > { %v10744_v28 = vadd.f32 %v6995_v2, %v3617_v35  ;;  %v10746_v62 = vpop.f32.mrb[182].mxu0  ;;  %v3619_v15 = vpop.f32.mrb[191].mxu1 }
 0x42f   : > { %v3877_v31 = vpop.f32.mrb[183].mxu0  ;;  %6197 = vmatmul.mubr.msk.f32.gmra.mrb[40].mxu1 %vm7852_vm3, %v10291_v23  ;;  %v5405_v23 = vld [vmem:[#allocation9 + $0x80] sm:$0xff] }
 0x430   : > { %4995 = vmatprep.mubr.f32.mxu1 %v10123_v46 }
 0x431   : > { %v3622_v25 = vpop.f32.mrb[192].mxu1 }
 0x432   : > { %v10752_v9 = vadd.f32 %v3847_v43, %v3622_v25  ;;  %v3624_v58 = vpop.f32.mrb[193].mxu1  ;;  %v5406_v43 = vld [vmem:[#allocation9 + $0x88] sm:$0xff] }
 0x433   : > { %4996 = vmatmul.mubr.f32.gmra.mrb[42].mxu1 %v10310_v12  ;;  %v7772_v48 = vpack.c.bf16 %v5406_v43, %v5405_v23  ;;  %v5411_v58 = vld [vmem:[#allocation9 + $0xb0] sm:$0xff]  ;;  %v5414_v23 = vld [vmem:[#allocation9 + $0xc8] sm:$0xff] }
 0x434   : > { %5000 = vmatprep.mubr.f32.mxu1 %v10172_v60 }
 0x435   : > { %v3627_v0 = vpop.f32.mrb[194].mxu1  ;;  %7773 = vmatprep.subr.bf16.mxu0 %v7772_v48 }
 0x436   : > { %v10756_v2 = vadd.f32 %v6998_v19, %v3627_v0  ;;  %v10758_v7 = vpop.f32.mrb[184].mxu0  ;;  %v3629_v16 = vpop.f32.mrb[195].mxu1  ;;  %7775 = vmatpush3.bf16.msra.mxu0 %v7772_v48 }
 0x437   : > { %v10760_v6 = vpop.f32.mrb[185].mxu0  ;;  %6199 = vmatmul.mubr.msk.f32.gmra.mrb[44].mxu1 %vm7852_vm3, %v10324_v22  ;;  %7777 = vmatprep.subr.bf16.mxu0 %v7776_v8 }
 0x438   : > { %5005 = vmatprep.mubr.f32.mxu1 %v10165_v54 }
 0x439   : > { %v3632_v46 = vpop.f32.mrb[196].mxu1 }
 0x43a   : > { %v10766_v12 = vadd.f32 %v3857_v59, %v3632_v46  ;;  %v3634_v60 = vpop.f32.mrb[197].mxu1  ;;  %7779 = vmatpush3.bf16.msra.mxu0 %v7776_v8  ;;  %v5410_v59 = vld [vmem:[#allocation9 + $0xa8] sm:$0xff] }
 0x43b   : > { %5006 = vmatmul.mubr.f32.gmra.mrb[46].mxu1 %v10340_v56  ;;  %v5409_v56 = vld [vmem:[#allocation9 + $0xa0] sm:$0xff]  ;;  %v5418_v8 = vld [vmem:[#allocation9 + $0xe8] sm:$0xff] }
 0x43c   : > { %5010 = vmatprep.mubr.f32.mxu1 %v10214_v4  ;;  %v7780_v15 = vpack.c.bf16 %v5410_v59, %v5409_v56 }
 0x43d   : > { %v3637_v19 = vpop.f32.mrb[198].mxu1 }
 0x43e   : > { %v10770_v17 = vadd.f32 %v7001_v14, %v3637_v19  ;;  %v10772_v22 = vpop.f32.mrb[186].mxu0  ;;  %v3639_v54 = vpop.f32.mrb[199].mxu1  ;;  %7781 = vmatprep.subr.bf16.mxu0 %v7780_v15  ;;  %v5415_v19 = vld [vmem:[#allocation9 + $0xd0] sm:$0xff] }
 0x43f   : > { %v10774_v40 = vpop.f32.mrb[187].mxu0  ;;  %6201 = vmatmul.mubr.msk.f32.gmra.mrb[48].mxu1 %vm7852_vm3, %v10354_v41  ;;  %7783 = vmatpush3.bf16.msra.mxu0 %v7780_v15  ;;  %v5412_v41 = vld [vmem:[#allocation9 + $0xb8] sm:$0xff]  ;;  %v11580_v15 = vmov 0.0  }
 0x440   : > { %5015 = vmatprep.mubr.f32.mxu1 %v11540_v24  ;;  %v7784_v46 = vpack.c.bf16 %v5412_v41, %v5411_v58 }
 0x441   : > { %v3642_v4 = vpop.f32.mrb[200].mxu1 }
 0x442   : > { %v10780_v35 = vadd.f32 %v3867_v32, %v3642_v4  ;;  %v3644_v14 = vpop.f32.mrb[201].mxu1  ;;  %7785 = vmatprep.subr.bf16.mxu0 %v7784_v46 }
 0x443   : > { %5016 = vmatmul.mubr.f32.gmra.mrb[50].mxu1 %v10370_v27  ;;  %7787 = vmatpush3.bf16.msra.mxu0 %v7784_v46  ;;  %v5413_v27 = vld [vmem:[#allocation9 + $0xc0] sm:$0xff] }
 0x444   : > { %5020 = vmatprep.mubr.f32.mxu1 %v10256_v1  ;;  %v7788_v60 = vpack.c.bf16 %v5414_v23, %v5413_v27 }
 0x445   : > { %v3647_v25 = vpop.f32.mrb[202].mxu1 }
 0x446   : > { %v10785_v24 = vadd.f32 %v10727_v52, %v3647_v25  ;;  %v10787_v0 = vpop.f32.mrb[188].mxu0  ;;  %v3649_v16 = vpop.f32.mrb[203].mxu1  ;;  %7789 = vmatprep.subr.bf16.mxu0 %v7788_v60 }
 0x447   : > { %v10789_v32 = vpop.f32.mrb[189].mxu0  ;;  %6203 = vmatmul.mubr.msk.f32.gmra.mrb[52].mxu1 %vm7852_vm3, %v10384_v39  ;;  %7791 = vmatpush3.bf16.msra.mxu0 %v7788_v60  ;;  %v5416_v39 = vld [vmem:[#allocation9 + $0xd8] sm:$0xff] }
 0x448   : > { %5025 = vmatprep.mubr.f32.mxu1 %v10249_v57  ;;  %v7792_v54 = vpack.c.bf16 %v5416_v39, %v5415_v19  ;;  %v11581_v39 = vld [vmem:[#allocation82_spill] sm:$0xff] }
 0x449   : > { %v3652_v1 = vpop.f32.mrb[204].mxu1 }
 0x44a   : > { %v10795_v43 = vadd.f32 %v3877_v31, %v3652_v1  ;;  %v3654_v52 = vpop.f32.mrb[205].mxu1  ;;  %7793 = vmatprep.subr.bf16.mxu0 %v7792_v54 }
 0x44b   : > { %5026 = vmatmul.mubr.f32.gmra.mrb[54].mxu1 %v10400_v26  ;;  %7795 = vmatpush3.bf16.msra.mxu0 %v7792_v54 }
 0x44c   : > { %5030 = vmatprep.mubr.f32.mxu1 %v10516_v55  ;;  %v5417_v55 = vld [vmem:[#allocation9 + $0xe0] sm:$0xff] }
 0x44d   : > { %v3657_v48 = vpop.f32.mrb[206].mxu1  ;;  %v7796_v59 = vpack.c.bf16 %v5418_v8, %v5417_v55 }
 0x44e   : > { %v10800_v57 = vadd.f32 %v10746_v62, %v3657_v48  ;;  %v10802_v36 = vpop.f32.mrb[190].mxu0  ;;  %v3659_v50 = vpop.f32.mrb[207].mxu1 }
 0x44f   : > { %v3917_v31 = vpop.f32.mrb[191].mxu0  ;;  %6205 = vmatmul.mubr.msk.f32.gmra.mrb[56].mxu1 %vm7852_vm3, %v10611_v47  ;;  %7797 = vmatprep.subr.bf16.mxu0 %v7796_v59  ;;  %v5420_v47 = vld [vmem:[#allocation9 + $0xf8] sm:$0xff] }
 0x450   : > { %5035 = vmatprep.mubr.f32.mxu1 %v10519_v63  ;;  %7799 = vmatpush3.bf16.msra.mxu0 %v7796_v59  ;;  %v5419_v63 = vld [vmem:[#allocation9 + $0xf0] sm:$0xff] }
 0x451   : > { %v3662_v26 = vpop.f32.mrb[208].mxu1  ;;  %v7800_v41 = vpack.c.bf16 %v5420_v47, %v5419_v63 }
 0x452   : > { %v10809_v4 = vadd.f32 %v10760_v6, %v3662_v26  ;;  %v10811_v62 = vpop.f32.mrb[192].mxu0  ;;  %v3664_v56 = vpop.f32.mrb[209].mxu1 }
 0x453   : > { %v4203_v14 = vpop.f32.mrb[193].mxu0  ;;  %5036 = vmatmul.mubr.f32.gmra.mrb[58].mxu1 %v10625_v44  ;;  %7801 = vmatprep.subr.bf16.mxu0 %v7800_v41 }
 0x454   : > { %5040 = vmatprep.mubr.f32.mxu1 %v11580_v15  ;;  %7803 = vmatpush3.bf16.msra.mxu0 %v7800_v41 }
 0x455   : > { %v3667_v37 = vpop.f32.mrb[210].mxu1 }
 0x456   : > { %v10816_v25 = vadd.f32 %v10758_v7, %v3667_v37  ;;  %v4206_v58 = vpop.f32.mrb[194].mxu0  ;;  %v3669_v6 = vpop.f32.mrb[211].mxu1 }
 0x457   : > { %v4208_v16 = vpop.f32.mrb[195].mxu0  ;;  %5041 = vmatmul.mubr.f32.gmra.mrb[60].mxu1 %v11580_v15 }
 0x458   : > { %5045 = vmatprep.mubr.f32.mxu1 %v11580_v15 }
 0x459   : > { %v3672_v44 = vpop.f32.mrb[212].mxu1 }
 0x45a   : > { %v10821_v46 = vadd.f32 %v10774_v40, %v3672_v44  ;;  %v4211_v1 = vpop.f32.mrb[196].mxu0  ;;  %v3674_v27 = vpop.f32.mrb[213].mxu1 }
 0x45b   : > { %v4213_v23 = vpop.f32.mrb[197].mxu0  ;;  %5046 = vmatmul.mubr.f32.gmra.mrb[62].mxu1 %v11580_v15  ;;  %v11582_v27 = vld [vmem:[#allocation89_spill] sm:$0xff] }
 0x45c   : > { %7168 = vmatprep.mubr.f32.mxu1 %v11534_v18 }
 0x45d   : > { %v3677_v7 = vpop.f32.mrb[214].mxu1 }
 0x45e   : > { %v10826_v52 = vadd.f32 %v10772_v22, %v3677_v7  ;;  %v4216_v60 = vpop.f32.mrb[198].mxu0  ;;  %v3679_v48 = vpop.f32.mrb[215].mxu1  ;;  %v11583_v7 = vld [vmem:[#allocation90_spill] sm:$0xff] }
 0x45f   : > { %v4218_v19 = vpop.f32.mrb[199].mxu0  ;;  %7169 = vmatmul.mubr.msk.f32.vlgmr.msra.gmra.mrb[64].mxu1 %vm7853_vm1, %v11581_v39 }
 0x460   : > { %7171 = vmatprep.mubr.f32.mxu1 %v11538_v11 }
 0x461   : > { %v3682_v40 = vpop.f32.mrb[216].mxu1 }
 0x462   : > { %v10833_v50 = vadd.f32 %v10789_v32, %v3682_v40  ;;  %v4221_v54 = vpop.f32.mrb[200].mxu0  ;;  %v3684_v26 = vpop.f32.mrb[217].mxu1 }
 0x463   : > { %v4223_v18 = vpop.f32.mrb[201].mxu0  ;;  %7172 = vmatmul.mubr.msk.f32.gmra.mrb[66].mxu1 %vm7853_vm1, %v10276_v5 }
 0x464   : > { %7174 = vmatprep.mubr.f32.mxu1 %v10541_v42 }
 0x465   : > { %v3687_v22 = vpop.f32.mrb[218].mxu1 }
 0x466   : > { %v10840_v55 = vadd.f32 %v10787_v0, %v3687_v22  ;;  %v4226_v8 = vpop.f32.mrb[202].mxu0  ;;  %v3689_v56 = vpop.f32.mrb[219].mxu1 }
 0x467   : > { %v4228_v11 = vpop.f32.mrb[203].mxu0  ;;  %7175 = vmatmul.mubr.msk.f32.gmra.mrb[68].mxu1 %vm7853_vm1, %v10550_v53 }
 0x468   : > { %7177 = vmatprep.mubr.f32.mxu1 %v11580_v15 }
 0x469   : > { %v3692_v32 = vpop.f32.mrb[220].mxu1 }
 0x46a   : > { %v10846_v59 = vadd.f32 %v3917_v31, %v3692_v32  ;;  %v4231_v14 = vpop.f32.mrb[204].mxu0  ;;  %v3694_v5 = vpop.f32.mrb[221].mxu1 }
 0x46b   : > { %v4233_v37 = vpop.f32.mrb[205].mxu0  ;;  %7178 = vmatmul.mubr.f32.gmra.mrb[70].mxu1 %v11580_v15 }
 0x46d   : > { %v3697_v42 = vpop.f32.mrb[222].mxu1 }
 0x46e   : > { %v10850_v0 = vadd.f32 %v10802_v36, %v3697_v42  ;;  %v4236_v63 = vpop.f32.mrb[206].mxu0  ;;  %v3699_v47 = vpop.f32.mrb[223].mxu1 }
 0x46f   : > { %v4238_v6 = vpop.f32.mrb[207].mxu0 }
 0x471   : > { %v7054_v41 = vpop.f32.mrb[224].mxu1 }
 0x472   : > { %v4241_v29 = vpop.f32.mrb[208].mxu0  ;;  %v4432_v53 = vadd.f32 %v7054_v41, %v4206_v58  ;;  %v4426_v16 = vpop.f32.mrb[225].mxu1 }
 0x473   : > { %v4243_v44 = vpop.f32.mrb[209].mxu0  ;;  %v4427_v31 = vadd.f32 %v4426_v16, %v10811_v62 }
 0x474   : > { %v10854_v23 = vadd.f32 %v4432_v53, %v11582_v27 }
 0x475   : > { %v10857_v48 = vadd.f32 %v4427_v31, %v11583_v7  ;;  %v7057_v15 = vpop.f32.mrb[226].mxu1 }
 0x476   : > { %v4246_v19 = vpop.f32.mrb[210].mxu0  ;;  %v4442_v36 = vadd.f32 %v7057_v15, %v4216_v60  ;;  %v4436_v39 = vpop.f32.mrb[227].mxu1 }
 0x477   : > { %v4248_v40 = vpop.f32.mrb[211].mxu0  ;;  %v4437_v26 = vadd.f32 %v4436_v39, %v4211_v1 }
 0x478   : > { %v10860_v18 = vadd.f32 %v4442_v36, %v10635_v34 }
 0x479   : > { %v10863_v58 = vadd.f32 %v4437_v26, %v10630_v20  ;;  %v7060_v22 = vpop.f32.mrb[228].mxu1 }
 0x47a   : > { %v4251_v62 = vpop.f32.mrb[212].mxu0  ;;  %v4452_v56 = vadd.f32 %v7060_v22, %v4226_v8  ;;  %v4446_v11 = vpop.f32.mrb[229].mxu1 }
 0x47b   : > { %v4253_v32 = vpop.f32.mrb[213].mxu0  ;;  %v4447_v5 = vadd.f32 %v4446_v11, %v4221_v54 }
 0x47c   : > { %v10866_v37 = vadd.f32 %v4452_v56, %v10653_v49 }
 0x47d   : > { %v10869_v60 = vadd.f32 %v4447_v5, %v10645_v45  ;;  %v7063_v42 = vpop.f32.mrb[230].mxu1 }
 0x47e   : > { %v4256_v1 = vpop.f32.mrb[214].mxu0  ;;  %v4462_v47 = vadd.f32 %v7063_v42, %v4236_v63  ;;  %v4456_v34 = vpop.f32.mrb[231].mxu1 }
 0x47f   : > { %v4258_v6 = vpop.f32.mrb[215].mxu0  ;;  %v4457_v41 = vadd.f32 %v4456_v34, %v4231_v14 }
 0x480   : > { %v10872_v20 = vadd.f32 %v4462_v47, %v10671_v10 }
 0x481   : > { %v10875_v8 = vadd.f32 %v4457_v41, %v10663_v30  ;;  %v7066_v53 = vpop.f32.mrb[232].mxu1 }
 0x482   : > { %v4261_v54 = vpop.f32.mrb[216].mxu0  ;;  %v4472_v16 = vadd.f32 %v7066_v53, %v4246_v19  ;;  %v4466_v49 = vpop.f32.mrb[233].mxu1 }
 0x483   : > { %v4263_v44 = vpop.f32.mrb[217].mxu0  ;;  %v4467_v31 = vadd.f32 %v4466_v49, %v4241_v29 }
 0x484   : > { %v10878_v45 = vadd.f32 %v4472_v16, %v10689_v33 }
 0x485   : > { %v10881_v63 = vadd.f32 %v4467_v31, %v10681_v38  ;;  %v7069_v27 = vpop.f32.mrb[234].mxu1 }
 0x486   : > { %v4266_v14 = vpop.f32.mrb[218].mxu0  ;;  %v4482_v7 = vadd.f32 %v7069_v27, %v4256_v1  ;;  %v4476_v10 = vpop.f32.mrb[235].mxu1 }
 0x487   : > { %v4268_v15 = vpop.f32.mrb[219].mxu0  ;;  %v4477_v36 = vadd.f32 %v4476_v10, %v4251_v62 }
 0x488   : > { %v10884_v30 = vadd.f32 %v4482_v7, %v10707_v61 }
 0x489   : > { %v10887_v19 = vadd.f32 %v4477_v36, %v10699_v3  ;;  %v7072_v39 = vpop.f32.mrb[236].mxu1 }
 0x48a   : > { %v4271_v29 = vpop.f32.mrb[220].mxu0  ;;  %v4492_v40 = vadd.f32 %v7072_v39, %v4266_v14  ;;  %v4486_v33 = vpop.f32.mrb[237].mxu1 }
 0x48b   : > { %v4273_v26 = vpop.f32.mrb[221].mxu0  ;;  %v4487_v22 = vadd.f32 %v4486_v33, %v4261_v54 }
 0x48c   : > { %v10890_v38 = vadd.f32 %v4492_v40, %v10725_v21 }
 0x48d   : > { %v10893_v56 = vadd.f32 %v4487_v22, %v10717_v13  ;;  %v7075_v11 = vpop.f32.mrb[238].mxu1 }
 0x48e   : > { %v4276_v62 = vpop.f32.mrb[222].mxu0  ;;  %v4496_v32 = vpop.f32.mrb[239].mxu1 }
 0x48f   : > { %v4502_v61 = vadd.f32 %v7075_v11, %v4276_v62  ;;  %v4278_v5 = vpop.f32.mrb[223].mxu0  ;;  %v4497_v42 = vadd.f32 %v4496_v32, %v4271_v29 }
 0x491   : > { %v10896_v3 = vadd.f32 %v4502_v61, %v10744_v28  ;;  %v10899_v1 = vadd.f32 %v4497_v42, %v10737_v51  ;;  %v7078_v47 = vpop.f32.mrb[240].mxu1 }
 0x492   : > { %v4281_v34 = vpop.f32.mrb[224].mxu0  ;;  %v4506_v6 = vpop.f32.mrb[241].mxu1 }
 0x493   : > { %v4283_v21 = vpop.f32.mrb[225].mxu0  ;;  %v4507_v41 = vadd.f32 %v4506_v6, %v4281_v34 }
 0x495   : > { %v10902_v13 = vadd.f32 %v4507_v41, %v10752_v9  ;;  %v7081_v53 = vpop.f32.mrb[242].mxu1 }
 0x496   : > { %v4286_v54 = vpop.f32.mrb[226].mxu0  ;;  %v4516_v16 = vpop.f32.mrb[243].mxu1 }
 0x497   : > { %v4512_v49 = vadd.f32 %v7078_v47, %v4286_v54  ;;  %v4288_v44 = vpop.f32.mrb[227].mxu0 }
 0x499   : > { %v10905_v31 = vadd.f32 %v4512_v49, %v10756_v2  ;;  %v7084_v28 = vpop.f32.mrb[244].mxu1 }
 0x49a   : > { %v4291_v27 = vpop.f32.mrb[228].mxu0  ;;  %v4526_v51 = vpop.f32.mrb[245].mxu1 }
 0x49b   : > { %v4517_v14 = vadd.f32 %v4516_v16, %v4291_v27  ;;  %v4293_v7 = vpop.f32.mrb[229].mxu0 }
 0x49d   : > { %v10908_v10 = vadd.f32 %v4517_v14, %v10766_v12  ;;  %v7087_v15 = vpop.f32.mrb[246].mxu1 }
 0x49e   : > { %v4296_v36 = vpop.f32.mrb[230].mxu0  ;;  %v4536_v9 = vpop.f32.mrb[247].mxu1 }
 0x49f   : > { %v4522_v39 = vadd.f32 %v7081_v53, %v4296_v36  ;;  %v4298_v29 = vpop.f32.mrb[231].mxu0 }
 0x4a1   : > { %v10911_v40 = vadd.f32 %v4522_v39, %v10770_v17  ;;  %v7090_v33 = vpop.f32.mrb[248].mxu1 }
 0x4a2   : > { %v4301_v26 = vpop.f32.mrb[232].mxu0  ;;  %v4546_v2 = vpop.f32.mrb[249].mxu1 }
 0x4a3   : > { %v4527_v22 = vadd.f32 %v4526_v51, %v4301_v26  ;;  %v4303_v11 = vpop.f32.mrb[233].mxu0 }
 0x4a5   : > { %v10914_v62 = vadd.f32 %v4527_v22, %v10780_v35  ;;  %v7093_v32 = vpop.f32.mrb[250].mxu1 }
 0x4a6   : > { %v4306_v61 = vpop.f32.mrb[234].mxu0  ;;  %v4556_v12 = vpop.f32.mrb[251].mxu1 }
 0x4a7   : > { %v4532_v5 = vadd.f32 %v7084_v28, %v4306_v61  ;;  %v4308_v42 = vpop.f32.mrb[235].mxu0 }
 0x4a9   : > { %v10917_v47 = vadd.f32 %v4532_v5, %v10785_v24  ;;  %v7096_v34 = vpop.f32.mrb[252].mxu1 }
 0x4aa   : > { %v4311_v6 = vpop.f32.mrb[236].mxu0  ;;  %v4566_v17 = vpop.f32.mrb[253].mxu1 }
 0x4ab   : > { %v4537_v21 = vadd.f32 %v4536_v9, %v4311_v6  ;;  %v4313_v41 = vpop.f32.mrb[237].mxu0 }
 0x4ad   : > { %v10920_v53 = vadd.f32 %v4537_v21, %v10795_v43  ;;  %v7099_v54 = vpop.f32.mrb[254].mxu1 }
 0x4ae   : > { %v4316_v16 = vpop.f32.mrb[238].mxu0  ;;  %v4576_v35 = vpop.f32.mrb[255].mxu1 }
 0x4af   : > { %v4542_v49 = vadd.f32 %v7087_v15, %v4316_v16  ;;  %v4318_v44 = vpop.f32.mrb[239].mxu0 }
 0x4b1   : > { %v10923_v27 = vadd.f32 %v4542_v49, %v10800_v57 }
 0x4b2   : > { %v4321_v28 = vpop.f32.mrb[240].mxu0  ;;  %v4892_v51 = vpop.f32.mrb[0].mxu1 }
 0x4b3   : > { %v4547_v24 = vadd.f32 %v4546_v2, %v4321_v28  ;;  %v4323_v14 = vpop.f32.mrb[241].mxu0  ;;  %v4894_v7 = vpop.f32.mrb[1].mxu1 }
 0x4b5   : > { %v10926_v36 = vadd.f32 %v4547_v24, %v10809_v4 }
 0x4b6   : > { %v4326_v9 = vpop.f32.mrb[242].mxu0  ;;  %v4897_v39 = vpop.f32.mrb[2].mxu1 }
 0x4b7   : > { %v4552_v43 = vadd.f32 %v7090_v33, %v4326_v9  ;;  %v4328_v29 = vpop.f32.mrb[243].mxu0  ;;  %v4899_v26 = vpop.f32.mrb[3].mxu1 }
 0x4b9   : > { %v10929_v22 = vadd.f32 %v4552_v43, %v10816_v25 }
 0x4ba   : > { %v4331_v15 = vpop.f32.mrb[244].mxu0  ;;  %v4902_v11 = vpop.f32.mrb[4].mxu1 }
 0x4bb   : > { %v4557_v57 = vadd.f32 %v4556_v12, %v4331_v15  ;;  %v4333_v61 = vpop.f32.mrb[245].mxu0  ;;  %v4904_v5 = vpop.f32.mrb[5].mxu1 }
 0x4bd   : > { %v10932_v2 = vadd.f32 %v4557_v57, %v10821_v46 }
 0x4be   : > { %v4336_v42 = vpop.f32.mrb[246].mxu0  ;;  %v4907_v6 = vpop.f32.mrb[6].mxu1 }
 0x4bf   : > { %v4562_v4 = vadd.f32 %v7093_v32, %v4336_v42  ;;  %v4338_v21 = vpop.f32.mrb[247].mxu0  ;;  %v4909_v41 = vpop.f32.mrb[7].mxu1 }
 0x4c1   : > { %v10935_v33 = vadd.f32 %v4562_v4, %v10826_v52 }
 0x4c2   : > { %v4341_v16 = vpop.f32.mrb[248].mxu0  ;;  %v4912_v49 = vpop.f32.mrb[8].mxu1 }
 0x4c3   : > { %v4567_v25 = vadd.f32 %v4566_v17, %v4341_v16  ;;  %v4343_v44 = vpop.f32.mrb[249].mxu0  ;;  %v4914_v28 = vpop.f32.mrb[9].mxu1 }
 0x4c5   : > { %v10938_v12 = vadd.f32 %v4567_v25, %v10833_v50 }
 0x4c6   : > { %v4346_v24 = vpop.f32.mrb[250].mxu0  ;;  %v4917_v14 = vpop.f32.mrb[10].mxu1 }
 0x4c7   : > { %v4572_v46 = vadd.f32 %v7096_v34, %v4346_v24  ;;  %v4348_v7 = vpop.f32.mrb[251].mxu0  ;;  %v4919_v9 = vpop.f32.mrb[11].mxu1 }
 0x4c9   : > { %v10941_v32 = vadd.f32 %v4572_v46, %v10840_v55 }
 0x4ca   : > { %v4351_v43 = vpop.f32.mrb[252].mxu0  ;;  %v4922_v29 = vpop.f32.mrb[12].mxu1 }
 0x4cb   : > { %v4577_v52 = vadd.f32 %v4576_v35, %v4351_v43  ;;  %v4353_v26 = vpop.f32.mrb[253].mxu0  ;;  %v4924_v15 = vpop.f32.mrb[13].mxu1 }
 0x4cd   : > { %v10944_v17 = vadd.f32 %v4577_v52, %v10846_v59 }
 0x4ce   : > { %v4356_v57 = vpop.f32.mrb[254].mxu0  ;;  %v4927_v61 = vpop.f32.mrb[14].mxu1 }
 0x4cf   : > { %v4582_v50 = vadd.f32 %v7099_v54, %v4356_v57  ;;  %v4358_v5 = vpop.f32.mrb[255].mxu0  ;;  %v4929_v42 = vpop.f32.mrb[15].mxu1 }
 0x4d1   : > { %v10947_v34 = vadd.f32 %v4582_v50, %v10850_v0 }
 0x4d2   : > { %v4932_v4 = vpop.f32.mrb[16].mxu1  ;;  %v7134_v21 = vpop.f32.mrb[0].mxu0 }
 0x4d3   : > { %v5123_v55 = vadd.f32 %v7134_v21, %v4897_v39  ;;  %v4934_v41 = vpop.f32.mrb[17].mxu1  ;;  %v5117_v16 = vpop.f32.mrb[1].mxu0 }
 0x4d4   : > { %v5118_v25 = vadd.f32 %v5117_v16, %v4892_v51 }
 0x4d5   : > { %v5277_v35 = vadd.f32 %v5123_v55, %v10854_v23 }
 0x4d6   : > { %v5276_v44 = vadd.f32 %v5118_v25, %v10857_v48  ;;  %v4937_v59 = vpop.f32.mrb[18].mxu1  ;;  %v7137_v28 = vpop.f32.mrb[2].mxu0 }
 0x4d7   : > { %v5133_v24 = vadd.f32 %v7137_v28, %v4907_v6  ;;  %v4939_v46 = vpop.f32.mrb[19].mxu1  ;;  %v5127_v54 = vpop.f32.mrb[3].mxu0  ;;  %v5373_v43 = vmax.f32 %v5277_v35, 0.0 }
 0x4d8   : > { %v5372_v7 = vmax.f32 %v5276_v44, 0.0  ;;  %v5128_v9 = vadd.f32 %v5127_v54, %v4902_v11 }
 0x4d9   : > { %v5279_v0 = vadd.f32 %v5133_v24, %v10860_v18 }
 0x4da   : > { %v5278_v52 = vadd.f32 %v5128_v9, %v10863_v58  ;;  %v4942_v39 = vpop.f32.mrb[20].mxu1  ;;  %v7140_v26 = vpop.f32.mrb[4].mxu0  ;;  %7212 = vmatprep.mubr.f32.mxu0 %v5372_v7 }
 0x4db   : > { %v5143_v51 = vadd.f32 %v7140_v26, %v4917_v14  ;;  %v4944_v15 = vpop.f32.mrb[21].mxu1  ;;  %v5137_v23 = vpop.f32.mrb[5].mxu0  ;;  %7213 = vmatmul.mubr.f32.vlgmr.msra.gmra.mrb[24].mxu0 %v5373_v43  ;;  %v5375_v50 = vmax.f32 %v5279_v0, 0.0 }
 0x4dc   : > { %v5374_v48 = vmax.f32 %v5278_v52, 0.0  ;;  %v5138_v57 = vadd.f32 %v5137_v23, %v4912_v49 }
 0x4dd   : > { %v5281_v6 = vadd.f32 %v5143_v51, %v10866_v37 }
 0x4de   : > { %v5280_v5 = vadd.f32 %v5138_v57, %v10869_v60  ;;  %v4947_v11 = vpop.f32.mrb[22].mxu1  ;;  %v7143_v42 = vpop.f32.mrb[6].mxu0  ;;  %7215 = vmatprep.mubr.f32.mxu0 %v5374_v48 }
 0x4df   : > { %v5153_v18 = vadd.f32 %v7143_v42, %v4927_v61  ;;  %v4949_v21 = vpop.f32.mrb[23].mxu1  ;;  %v5147_v58 = vpop.f32.mrb[7].mxu0  ;;  %7216 = vmatmul.mubr.f32.gmra.mrb[26].mxu0 %v5375_v50  ;;  %v5377_v14 = vmax.f32 %v5281_v6, 0.0 }
 0x4e0   : > { %v5376_v55 = vmax.f32 %v5280_v5, 0.0  ;;  %v5148_v41 = vadd.f32 %v5147_v58, %v4922_v29 }
 0x4e1   : > { %v5283_v16 = vadd.f32 %v5153_v18, %v10872_v20 }
 0x4e2   : > { %v5282_v25 = vadd.f32 %v5148_v41, %v10875_v8  ;;  %v4952_v49 = vpop.f32.mrb[24].mxu1  ;;  %v7146_v35 = vpop.f32.mrb[8].mxu0  ;;  %7218 = vmatprep.mubr.f32.mxu0 %v5376_v55 }
 0x4e3   : > { %v5163_v37 = vadd.f32 %v7146_v35, %v4937_v59  ;;  %v4954_v44 = vpop.f32.mrb[25].mxu1  ;;  %v5157_v60 = vpop.f32.mrb[9].mxu0  ;;  %7219 = vmatmul.mubr.f32.gmra.mrb[28].mxu0 %v5377_v14  ;;  %v5379_v61 = vmax.f32 %v5283_v16, 0.0 }
 0x4e4   : > { %v5378_v28 = vmax.f32 %v5282_v25, 0.0  ;;  %v5158_v24 = vadd.f32 %v5157_v60, %v4932_v4 }
 0x4e5   : > { %v5285_v46 = vadd.f32 %v5163_v37, %v10878_v45 }
 0x4e6   : > { %v5284_v54 = vadd.f32 %v5158_v24, %v10881_v63  ;;  %v4957_v29 = vpop.f32.mrb[26].mxu1  ;;  %v7149_v7 = vpop.f32.mrb[10].mxu0  ;;  %7221 = vmatprep.mubr.f32.mxu0 %v5378_v28 }
 0x4e7   : > { %v5173_v20 = vadd.f32 %v7149_v7, %v4947_v11  ;;  %v4959_v9 = vpop.f32.mrb[27].mxu1  ;;  %v5167_v8 = vpop.f32.mrb[11].mxu0  ;;  %7222 = vmatmul.mubr.f32.gmra.mrb[30].mxu0 %v5379_v61  ;;  %v5381_v59 = vmax.f32 %v5285_v46, 0.0 }
 0x4e8   : > { %v5380_v43 = vmax.f32 %v5284_v54, 0.0  ;;  %v5168_v0 = vadd.f32 %v5167_v8, %v4942_v39 }
 0x4e9   : > { %v5287_v52 = vadd.f32 %v5173_v20, %v10884_v30 }
 0x4ea   : > { %v5286_v26 = vadd.f32 %v5168_v0, %v10887_v19  ;;  %v4962_v4 = vpop.f32.mrb[28].mxu1  ;;  %v7152_v51 = vpop.f32.mrb[12].mxu0  ;;  %7224 = vmatprep.mubr.f32.mxu0 %v5380_v43 }
 0x4eb   : > { %v5183_v45 = vadd.f32 %v7152_v51, %v4957_v29  ;;  %v4964_v15 = vpop.f32.mrb[29].mxu1  ;;  %v5177_v63 = vpop.f32.mrb[13].mxu0  ;;  %7225 = vmatmul.mubr.f32.gmra.mrb[32].mxu0 %v5381_v59  ;;  %v5383_v57 = vmax.f32 %v5287_v52, 0.0 }
 0x4ec   : > { %v5382_v23 = vmax.f32 %v5286_v26, 0.0  ;;  %v5178_v48 = vadd.f32 %v5177_v63, %v4952_v49 }
 0x4ed   : > { %v5289_v50 = vadd.f32 %v5183_v45, %v10890_v38 }
 0x4ee   : > { %v5288_v6 = vadd.f32 %v5178_v48, %v10893_v56  ;;  %v4967_v39 = vpop.f32.mrb[30].mxu1  ;;  %v7155_v5 = vpop.f32.mrb[14].mxu0  ;;  %7227 = vmatprep.mubr.f32.mxu0 %v5382_v23 }
 0x4ef   : > { %v5193_v30 = vadd.f32 %v7155_v5, %v4967_v39  ;;  %v4969_v11 = vpop.f32.mrb[31].mxu1  ;;  %v5187_v19 = vpop.f32.mrb[15].mxu0  ;;  %7228 = vmatmul.mubr.f32.gmra.mrb[34].mxu0 %v5383_v57  ;;  %v5385_v21 = vmax.f32 %v5289_v50, 0.0 }
 0x4f0   : > { %v5384_v42 = vmax.f32 %v5288_v6, 0.0  ;;  %v5188_v18 = vadd.f32 %v5187_v19, %v4962_v4 }
 0x4f1   : > { %v5291_v58 = vadd.f32 %v5193_v30, %v10896_v3 }
 0x4f2   : > { %v5290_v55 = vadd.f32 %v5188_v18, %v10899_v1  ;;  %v4972_v41 = vpop.f32.mrb[32].mxu1  ;;  %v7158_v14 = vpop.f32.mrb[16].mxu0  ;;  %7230 = vmatprep.mubr.f32.mxu0 %v5384_v42 }
 0x4f3   : > { %v4974_v38 = vpop.f32.mrb[33].mxu1  ;;  %v5197_v16 = vpop.f32.mrb[17].mxu0  ;;  %7231 = vmatmul.mubr.f32.gmra.mrb[36].mxu0 %v5385_v21  ;;  %v5387_v49 = vmax.f32 %v5291_v58, 0.0 }
 0x4f4   : > { %v5386_v56 = vmax.f32 %v5290_v55, 0.0  ;;  %v5198_v25 = vadd.f32 %v5197_v16, %v4972_v41 }
 0x4f6   : > { %v5292_v35 = vadd.f32 %v5198_v25, %v10902_v13  ;;  %v4977_v37 = vpop.f32.mrb[34].mxu1  ;;  %v7161_v44 = vpop.f32.mrb[18].mxu0  ;;  %7233 = vmatprep.mubr.f32.mxu0 %v5386_v56 }
 0x4f7   : > { %v5203_v60 = vadd.f32 %v7158_v14, %v4977_v37  ;;  %v4979_v28 = vpop.f32.mrb[35].mxu1  ;;  %v5207_v24 = vpop.f32.mrb[19].mxu0  ;;  %7234 = vmatmul.mubr.f32.gmra.mrb[38].mxu0 %v5387_v49 }
 0x4f8   : > { %v5388_v3 = vmax.f32 %v5292_v35, 0.0 }
 0x4f9   : > { %v5293_v1 = vadd.f32 %v5203_v60, %v10905_v31 }
 0x4fa   : > { %v4982_v61 = vpop.f32.mrb[36].mxu1  ;;  %v7164_v46 = vpop.f32.mrb[20].mxu0  ;;  %7236 = vmatprep.mubr.f32.mxu0 %v5388_v3 }
 0x4fb   : > { %v5389_v54 = vmax.f32 %v5293_v1, 0.0  ;;  %v5208_v29 = vadd.f32 %v5207_v24, %v4982_v61  ;;  %v4984_v7 = vpop.f32.mrb[37].mxu1  ;;  %v5217_v20 = vpop.f32.mrb[21].mxu0 }
 0x4fd   : > { %v5294_v9 = vadd.f32 %v5208_v29, %v10908_v10  ;;  %7237 = vmatmul.mubr.f32.gmra.mrb[40].mxu0 %v5389_v54 }
 0x4fe   : > { %v4987_v13 = vpop.f32.mrb[38].mxu1  ;;  %v7167_v8 = vpop.f32.mrb[22].mxu0 }
 0x4ff   : > { %v5390_v43 = vmax.f32 %v5294_v9, 0.0  ;;  %v5213_v0 = vadd.f32 %v7161_v44, %v4987_v13  ;;  %v4989_v59 = vpop.f32.mrb[39].mxu1  ;;  %v5227_v52 = vpop.f32.mrb[23].mxu0 }
 0x501   : > { %v5295_v26 = vadd.f32 %v5213_v0, %v10911_v40  ;;  %7239 = vmatprep.mubr.f32.mxu0 %v5390_v43 }
 0x502   : > { %v4992_v31 = vpop.f32.mrb[40].mxu1 }
 0x503   : > { %v5391_v4 = vmax.f32 %v5295_v26, 0.0  ;;  %v5218_v51 = vadd.f32 %v5217_v20, %v4992_v31  ;;  %v4994_v45 = vpop.f32.mrb[41].mxu1 }
 0x505   : > { %v5296_v15 = vadd.f32 %v5218_v51, %v10914_v62  ;;  %7240 = vmatmul.mubr.f32.gmra.mrb[42].mxu0 %v5391_v4 }
 0x506   : > { %v4997_v63 = vpop.f32.mrb[42].mxu1 }
 0x507   : > { %v5392_v23 = vmax.f32 %v5296_v15, 0.0  ;;  %v5223_v10 = vadd.f32 %v7164_v46, %v4997_v63  ;;  %v4999_v48 = vpop.f32.mrb[43].mxu1 }
 0x509   : > { %v5297_v57 = vadd.f32 %v5223_v10, %v10917_v47  ;;  %7242 = vmatprep.mubr.f32.mxu0 %v5392_v23 }
 0x50a   : > { %v5002_v50 = vpop.f32.mrb[44].mxu1 }
 0x50b   : > { %v5393_v6 = vmax.f32 %v5297_v57, 0.0  ;;  %v5228_v39 = vadd.f32 %v5227_v52, %v5002_v50  ;;  %v5004_v5 = vpop.f32.mrb[45].mxu1 }
 0x50d   : > { %v5298_v40 = vadd.f32 %v5228_v39, %v10920_v53  ;;  %7243 = vmatmul.mubr.f32.gmra.mrb[44].mxu0 %v5393_v6  ;;  %v11585_v6 = vld [vmem:[#allocation30_spill] sm:$0xff] }
 0x50e   : > { %v5007_v30 = vpop.f32.mrb[46].mxu1 }
 0x50f   : > { %v5394_v11 = vmax.f32 %v5298_v40, 0.0  ;;  %v5233_v19 = vadd.f32 %v7167_v8, %v5007_v30  ;;  %v5009_v42 = vpop.f32.mrb[47].mxu1 }
 0x511   : > { %v5299_v62 = vadd.f32 %v5233_v19, %v10923_v27  ;;  %7245 = vmatprep.mubr.f32.mxu0 %v5394_v11  ;;  %v11587_v19 = vld [vmem:[#allocation33_spill] sm:$0xff] }
 0x512   : > { %v5012_v18 = vpop.f32.mrb[48].mxu1 }
 0x513   : > { %v5395_v21 = vmax.f32 %v5299_v62, 0.0  ;;  %v5014_v58 = vpop.f32.mrb[49].mxu1 }
 0x514   : > { %v11588_v58 = vld [vmem:[#allocation35_spill] sm:$0xff] }
 0x515   : > { %7246 = vmatmul.mubr.f32.gmra.mrb[46].mxu0 %v5395_v21 }
 0x516   : > { %v5017_v47 = vpop.f32.mrb[50].mxu1 }
 0x517   : > { %v5019_v55 = vpop.f32.mrb[51].mxu1 }
 0x51a   : > { %v5022_v41 = vpop.f32.mrb[52].mxu1 }
 0x51b   : > { %v5024_v14 = vpop.f32.mrb[53].mxu1 }
 0x51e   : > { %v5027_v38 = vpop.f32.mrb[54].mxu1 }
 0x51f   : > { %v5029_v16 = vpop.f32.mrb[55].mxu1 }
 0x522   : > { %v5032_v56 = vpop.f32.mrb[56].mxu1 }
 0x523   : > { %v5034_v53 = vpop.f32.mrb[57].mxu1 }
 0x524   : > { %v11590_v53 = vld [vmem:[#allocation39_spill] sm:$0xff] }
 0x526   : > { %v5037_v25 = vpop.f32.mrb[58].mxu1 }
 0x527   : > { %v5039_v49 = vpop.f32.mrb[59].mxu1 }
 0x52a   : > { %v5042_v35 = vpop.f32.mrb[60].mxu1 }
 0x52b   : > { %v5044_v37 = vpop.f32.mrb[61].mxu1 }
 0x52e   : > { %v5047_v44 = vpop.f32.mrb[62].mxu1 }
 0x52f   : > { %v5049_v60 = vpop.f32.mrb[63].mxu1 }
 0x532   : > { %v7170_v27 = vpop.f32.mrb[64].mxu1 }
 0x533   : > { %v5243_v28 = vadd.f32 %v7170_v27, %v5017_v47  ;;  %v5237_v24 = vpop.f32.mrb[65].mxu1 }
 0x534   : > { %v5238_v3 = vadd.f32 %v5237_v24, %v5012_v18 }
 0x535   : > { %v5301_v1 = vadd.f32 %v5243_v28, %v10929_v22  ;;  %v11592_v28 = vld [vmem:[#allocation43_spill] sm:$0xff] }
 0x536   : > { %v5300_v61 = vadd.f32 %v5238_v3, %v10926_v36  ;;  %v7173_v46 = vpop.f32.mrb[66].mxu1 }
 0x537   : > { %v5253_v54 = vadd.f32 %v7173_v46, %v5027_v38  ;;  %v5247_v29 = vpop.f32.mrb[67].mxu1  ;;  %v5397_v9 = vmax.f32 %v5301_v1, 0.0  ;;  %v11593_v1 = vld [vmem:[#allocation45_spill] sm:$0xff] }
 0x538   : > { %v5396_v7 = vmax.f32 %v5300_v61, 0.0  ;;  %v5248_v20 = vadd.f32 %v5247_v29, %v5022_v41  ;;  %v11589_v41 = vld [vmem:[#allocation37_spill] sm:$0xff] }
 0x539   : > { %v5303_v13 = vadd.f32 %v5253_v54, %v10935_v33 }
 0x53a   : > { %v5302_v8 = vadd.f32 %v5248_v20, %v10932_v2  ;;  %v7176_v43 = vpop.f32.mrb[68].mxu1  ;;  %7248 = vmatprep.mubr.f32.mxu0 %v5396_v7  ;;  %v11594_v7 = vld [vmem:[#allocation47_spill] sm:$0xff] }
 0x53b   : > { %v5263_v0 = vadd.f32 %v7176_v43, %v5037_v25  ;;  %v5257_v59 = vpop.f32.mrb[69].mxu1  ;;  %7249 = vmatmul.mubr.f32.gmra.mrb[48].mxu0 %v5397_v9  ;;  %v5399_v22 = vmax.f32 %v5303_v13, 0.0  ;;  %v11595_v13 = vld [vmem:[#allocation49_spill] sm:$0xff] }
 0x53c   : > { %v5398_v52 = vmax.f32 %v5302_v8, 0.0  ;;  %v5258_v26 = vadd.f32 %v5257_v59, %v5032_v56 }
 0x53d   : > { %v5305_v36 = vadd.f32 %v5263_v0, %v10941_v32  ;;  %v11584_v32 = vld [vmem:[#allocation29_spill] sm:$0xff] }
 0x53e   : > { %v5304_v31 = vadd.f32 %v5258_v26, %v10938_v12  ;;  %v7179_v4 = vpop.f32.mrb[70].mxu1  ;;  %7251 = vmatprep.mubr.f32.mxu0 %v5398_v52  ;;  %v11596_v52 = vld [vmem:[#allocation51_spill] sm:$0xff] }
 0x53f   : > { %v5273_v51 = vadd.f32 %v7179_v4, %v5047_v44  ;;  %v5267_v45 = vpop.f32.mrb[71].mxu1  ;;  %7252 = vmatmul.mubr.f32.gmra.mrb[50].mxu0 %v5399_v22  ;;  %v5401_v2 = vmax.f32 %v5305_v36, 0.0  ;;  %v11597_v36 = vld [vmem:[#allocation23_spill] sm:$0xff] }
 0x540   : > { %v5400_v33 = vmax.f32 %v5304_v31, 0.0  ;;  %v5268_v15 = vadd.f32 %v5267_v45, %v5042_v35  ;;  %v11591_v35 = vld [vmem:[#allocation40_spill] sm:$0xff] }
 0x541   : > { %v5307_v63 = vadd.f32 %v5273_v51, %v10947_v34 }
 0x542   : > { %v5306_v23 = vadd.f32 %v5268_v15, %v10944_v17  ;;  %7254 = vmatprep.mubr.f32.mxu0 %v5400_v33  ;;  %v11586_v17 = vld [vmem:[#allocation32_spill] sm:$0xff] }
 0x543   : > { %7255 = vmatmul.mubr.f32.gmra.mrb[52].mxu0 %v5401_v2  ;;  %v5403_v48 = vmax.f32 %v5307_v63, 0.0  ;;  %v11598_v33 = vld [vmem:[#allocation36_spill] sm:$0xff]  ;;  %v11599_v63 = vld [vmem:[#allocation53_spill] sm:$0xff] }
 0x544   : > { %v5402_v10 = vmax.f32 %v5306_v23, 0.0 }
 0x546   : > { %7257 = vmatprep.mubr.f32.mxu0 %v5402_v10 }
 0x547   : > { %7258 = vmatmul.mubr.f32.gmra.mrb[54].mxu0 %v5403_v48 }
 0x5ae   : > { %v7214_v12 = vpop.f32.mrb[24].mxu0 }
 0x5af   : > { %v5647_v57 = vadd.f32 %v7214_v12, %v11584_v32  ;;  %v5487_v50 = vpop.f32.mrb[25].mxu0  ;;  %v11600_v32 = vld [vmem:[#allocation44_spill] sm:$0xff] }
 0x5b0   : > { %v5646_v39 = vadd.f32 %v5487_v50, %v11585_v6  ;;  %v11601_v6 = vld [vmem:[#allocation46_spill] sm:$0xff] }
 0x5b1   : > { %v5679_v5 = vmax.f32 %v5647_v57, 0.0 }
 0x5b2   : > { %v5678_v40 = vmax.f32 %v5646_v39, 0.0  ;;  %v7217_v30 = vpop.f32.mrb[26].mxu0 }
 0x5b3   : > { %5711 = vst [vmem:[%s10985_s18 + $0x8] sm:$0xff] %v5679_v5  ;;  %v5649_v34 = vadd.f32 %v7217_v30, %v11586_v17  ;;  %v5497_v11 = vpop.f32.mrb[27].mxu0  ;;  %v11602_v17 = vld [vmem:[#allocation25_spill] sm:$0xff] }
 0x5b4   : > { %5710 = vst [vmem:[%s10985_s18] sm:$0xff] %v5678_v40  ;;  %v5648_v42 = vadd.f32 %v5497_v11, %v11587_v19  ;;  %v11603_v19 = vld [vmem:[#allocation24_spill] sm:$0xff] }
 0x5b5   : > { %v5681_v62 = vmax.f32 %v5649_v34, 0.0 }
 0x5b6   : > { %v5680_v18 = vmax.f32 %v5648_v42, 0.0  ;;  %v7220_v21 = vpop.f32.mrb[28].mxu0 }
 0x5b7   : > { %5713 = vst [vmem:[%s10985_s18 + $0x18] sm:$0xff] %v5681_v62  ;;  %v5651_v47 = vadd.f32 %v7220_v21, %v11588_v58  ;;  %v5507_v55 = vpop.f32.mrb[29].mxu0  ;;  %v11604_v58 = vld [vmem:[#allocation15_spill] sm:$0xff] }
 0x5b8   : > { %5712 = vst [vmem:[%s10985_s18 + $0x10] sm:$0xff] %v5680_v18  ;;  %v5650_v14 = vadd.f32 %v5507_v55, %v11589_v41  ;;  %v11605_v41 = vld [vmem:[#allocation57_spill] sm:$0xff] }
 0x5b9   : > { %v5683_v38 = vmax.f32 %v5651_v47, 0.0 }
 0x5ba   : > { %v5682_v16 = vmax.f32 %v5650_v14, 0.0  ;;  %v7223_v56 = vpop.f32.mrb[30].mxu0 }
 0x5bb   : > { %5715 = vst [vmem:[%s10985_s18 + $0x28] sm:$0xff] %v5683_v38  ;;  %v5653_v25 = vadd.f32 %v7223_v56, %v11590_v53  ;;  %v5517_v49 = vpop.f32.mrb[31].mxu0  ;;  %v11606_v53 = vld [vmem:[#allocation64_spill] sm:$0xff] }
 0x5bc   : > { %5714 = vst [vmem:[%s10985_s18 + $0x20] sm:$0xff] %v5682_v16  ;;  %v5652_v37 = vadd.f32 %v5517_v49, %v11591_v35  ;;  %v11607_v35 = vld [vmem:[#allocation65_spill] sm:$0xff] }
 0x5bd   : > { %v5685_v44 = vmax.f32 %v5653_v25, 0.0 }
 0x5be   : > { %v5684_v60 = vmax.f32 %v5652_v37, 0.0  ;;  %v7226_v27 = vpop.f32.mrb[32].mxu0 }
 0x5bf   : > { %5717 = vst [vmem:[%s10985_s18 + $0x38] sm:$0xff] %v5685_v44  ;;  %v5655_v24 = vadd.f32 %v7226_v27, %v11592_v28  ;;  %v5527_v3 = vpop.f32.mrb[33].mxu0  ;;  %v11608_v28 = vld [vmem:[#allocation70_spill] sm:$0xff] }
 0x5c0   : > { %5716 = vst [vmem:[%s10985_s18 + $0x30] sm:$0xff] %v5684_v60  ;;  %v5654_v61 = vadd.f32 %v5527_v3, %v11593_v1  ;;  %v11609_v1 = vld [vmem:[#allocation71_spill] sm:$0xff] }
 0x5c1   : > { %v5687_v46 = vmax.f32 %v5655_v24, 0.0 }
 0x5c2   : > { %v5686_v54 = vmax.f32 %v5654_v61, 0.0  ;;  %v7229_v29 = vpop.f32.mrb[34].mxu0 }
 0x5c3   : > { %5719 = vst [vmem:[%s10985_s18 + $0x48] sm:$0xff] %v5687_v46  ;;  %v5657_v20 = vadd.f32 %v7229_v29, %v11594_v7  ;;  %v5537_v9 = vpop.f32.mrb[35].mxu0  ;;  %v11610_v7 = vld [vmem:[#allocation76_spill] sm:$0xff] }
 0x5c4   : > { %5718 = vst [vmem:[%s10985_s18 + $0x40] sm:$0xff] %v5686_v54  ;;  %v5656_v8 = vadd.f32 %v5537_v9, %v11595_v13  ;;  %v11611_v13 = vld [vmem:[#allocation77_spill] sm:$0xff] }
 0x5c5   : > { %v5689_v43 = vmax.f32 %v5657_v20, 0.0 }
 0x5c6   : > { %v5688_v0 = vmax.f32 %v5656_v8, 0.0  ;;  %v7232_v59 = vpop.f32.mrb[36].mxu0 }
 0x5c7   : > { %5721 = vst [vmem:[%s10985_s18 + $0x58] sm:$0xff] %v5689_v43  ;;  %v5659_v26 = vadd.f32 %v7232_v59, %v11596_v52  ;;  %v5547_v22 = vpop.f32.mrb[37].mxu0  ;;  %v11612_v52 = vld [vmem:[#allocation83_spill] sm:$0xff] }
 0x5c8   : > { %5720 = vst [vmem:[%s10985_s18 + $0x50] sm:$0xff] %v5688_v0  ;;  %v5658_v31 = vadd.f32 %v5547_v22, %v11597_v36  ;;  %v11613_v36 = vld [vmem:[#allocation84_spill] sm:$0xff] }
 0x5c9   : > { %v5691_v4 = vmax.f32 %v5659_v26, 0.0 }
 0x5ca   : > { %v5690_v51 = vmax.f32 %v5658_v31, 0.0  ;;  %v7235_v45 = vpop.f32.mrb[38].mxu0 }
 0x5cb   : > { %5723 = vst [vmem:[%s10985_s18 + $0x68] sm:$0xff] %v5691_v4  ;;  %v5661_v15 = vadd.f32 %v7235_v45, %v11598_v33  ;;  %v5557_v2 = vpop.f32.mrb[39].mxu0  ;;  %v11614_v33 = vld [vmem:[#allocation79_spill] sm:$0xff] }
 0x5cc   : > { %5722 = vst [vmem:[%s10985_s18 + $0x60] sm:$0xff] %v5690_v51  ;;  %v5660_v23 = vadd.f32 %v5557_v2, %v11599_v63  ;;  %v11615_v63 = vld [vmem:[#allocation88_spill] sm:$0xff] }
 0x5cd   : > { %v5693_v10 = vmax.f32 %v5661_v15, 0.0 }
 0x5ce   : > { %v5692_v48 = vmax.f32 %v5660_v23, 0.0 }
 0x5cf   : > { %5725 = vst [vmem:[%s10985_s18 + $0x78] sm:$0xff] %v5693_v10 }
 0x5d0   : > { %5724 = vst [vmem:[%s10985_s18 + $0x70] sm:$0xff] %v5692_v48  ;;  %v7238_v12 = vpop.f32.mrb[40].mxu0 }
 0x5d1   : > { %v5663_v57 = vadd.f32 %v7238_v12, %v11600_v32  ;;  %v5567_v50 = vpop.f32.mrb[41].mxu0 }
 0x5d2   : > { %v5662_v39 = vadd.f32 %v5567_v50, %v11601_v6 }
 0x5d3   : > { %v5695_v5 = vmax.f32 %v5663_v57, 0.0 }
 0x5d4   : > { %v5694_v40 = vmax.f32 %v5662_v39, 0.0 }
 0x5d5   : > { %5727 = vst [vmem:[%s10985_s18 + $0x88] sm:$0xff] %v5695_v5 }
 0x5d6   : > { %5726 = vst [vmem:[%s10985_s18 + $0x80] sm:$0xff] %v5694_v40 }
 0x5d8   : > { %v7241_v30 = vpop.f32.mrb[42].mxu0 }
 0x5d9   : > { %v5665_v34 = vadd.f32 %v7241_v30, %v11602_v17  ;;  %v5577_v11 = vpop.f32.mrb[43].mxu0 }
 0x5da   : > { %v5664_v42 = vadd.f32 %v5577_v11, %v11603_v19 }
 0x5db   : > { %v5697_v62 = vmax.f32 %v5665_v34, 0.0 }
 0x5dc   : > { %v5696_v18 = vmax.f32 %v5664_v42, 0.0 }
 0x5dd   : > { %5729 = vst [vmem:[%s10985_s18 + $0x98] sm:$0xff] %v5697_v62 }
 0x5de   : > { %5728 = vst [vmem:[%s10985_s18 + $0x90] sm:$0xff] %v5696_v18 }
 0x5e0   : > { %v7244_v21 = vpop.f32.mrb[44].mxu0 }
 0x5e1   : > { %v5667_v47 = vadd.f32 %v7244_v21, %v11604_v58  ;;  %v5587_v55 = vpop.f32.mrb[45].mxu0 }
 0x5e2   : > { %v5666_v14 = vadd.f32 %v5587_v55, %v11605_v41 }
 0x5e3   : > { %v5699_v38 = vmax.f32 %v5667_v47, 0.0 }
 0x5e4   : > { %v5698_v16 = vmax.f32 %v5666_v14, 0.0 }
 0x5e5   : > { %5731 = vst [vmem:[%s10985_s18 + $0xa8] sm:$0xff] %v5699_v38 }
 0x5e6   : > { %5730 = vst [vmem:[%s10985_s18 + $0xa0] sm:$0xff] %v5698_v16 }
 0x5e8   : > { %v7247_v56 = vpop.f32.mrb[46].mxu0 }
 0x5e9   : > { %v5669_v25 = vadd.f32 %v7247_v56, %v11606_v53  ;;  %v5597_v49 = vpop.f32.mrb[47].mxu0 }
 0x5ea   : > { %v5668_v37 = vadd.f32 %v5597_v49, %v11607_v35 }
 0x5eb   : > { %v5701_v44 = vmax.f32 %v5669_v25, 0.0 }
 0x5ec   : > { %v5700_v60 = vmax.f32 %v5668_v37, 0.0 }
 0x5ed   : > { %5733 = vst [vmem:[%s10985_s18 + $0xb8] sm:$0xff] %v5701_v44 }
 0x5ee   : > { %5732 = vst [vmem:[%s10985_s18 + $0xb0] sm:$0xff] %v5700_v60 }
 0x60e   : > { %v7250_v27 = vpop.f32.mrb[48].mxu0 }
 0x60f   : > { %v5671_v24 = vadd.f32 %v7250_v27, %v11608_v28  ;;  %v5607_v3 = vpop.f32.mrb[49].mxu0 }
 0x610   : > { %v5670_v61 = vadd.f32 %v5607_v3, %v11609_v1 }
 0x611   : > { %v5703_v46 = vmax.f32 %v5671_v24, 0.0 }
 0x612   : > { %v5702_v54 = vmax.f32 %v5670_v61, 0.0  ;;  %v7253_v29 = vpop.f32.mrb[50].mxu0 }
 0x613   : > { %5735 = vst [vmem:[%s10985_s18 + $0xc8] sm:$0xff] %v5703_v46  ;;  %v5673_v20 = vadd.f32 %v7253_v29, %v11610_v7  ;;  %v5617_v9 = vpop.f32.mrb[51].mxu0 }
 0x614   : > { %5734 = vst [vmem:[%s10985_s18 + $0xc0] sm:$0xff] %v5702_v54  ;;  %v5672_v8 = vadd.f32 %v5617_v9, %v11611_v13 }
 0x615   : > { %v5705_v43 = vmax.f32 %v5673_v20, 0.0 }
 0x616   : > { %v5704_v0 = vmax.f32 %v5672_v8, 0.0  ;;  %v7256_v59 = vpop.f32.mrb[52].mxu0 }
 0x617   : > { %5737 = vst [vmem:[%s10985_s18 + $0xd8] sm:$0xff] %v5705_v43  ;;  %v5675_v26 = vadd.f32 %v7256_v59, %v11612_v52  ;;  %v5627_v22 = vpop.f32.mrb[53].mxu0 }
 0x618   : > { %5736 = vst [vmem:[%s10985_s18 + $0xd0] sm:$0xff] %v5704_v0  ;;  %v5674_v31 = vadd.f32 %v5627_v22, %v11613_v36 }
 0x619   : > { %v5707_v4 = vmax.f32 %v5675_v26, 0.0 }
 0x61a   : > { %v5706_v51 = vmax.f32 %v5674_v31, 0.0  ;;  %v7259_v45 = vpop.f32.mrb[54].mxu0 }
 0x61b   : > { %5739 = vst [vmem:[%s10985_s18 + $0xe8] sm:$0xff] %v5707_v4  ;;  %v5677_v15 = vadd.f32 %v7259_v45, %v11614_v33  ;;  %v5637_v2 = vpop.f32.mrb[55].mxu0 }
 0x61c   : > { %5738 = vst [vmem:[%s10985_s18 + $0xe0] sm:$0xff] %v5706_v51  ;;  %v5676_v23 = vadd.f32 %v5637_v2, %v11615_v63 }
 0x61d   : > { %v5709_v10 = vmax.f32 %v5677_v15, 0.0 }
 0x61e   : > { %v5708_v48 = vmax.f32 %v5676_v23, 0.0 }
 0x61f   : > { %5741 = vst [vmem:[%s10985_s18 + $0xf8] sm:$0xff] %v5709_v10 }
 0x620   : > { %5740 = vst [vmem:[%s10985_s18 + $0xf0] sm:$0xff] %v5708_v48 }
 0x621   : > { %8026 = shalt.err (!%p8023_p1)
}
 0x622   : > { %s8027_s10 = scalar_lea.hbm %s11052_s27, 4096  ;;  %s8031_s26 = scalar_lea.hbm %s11103_s3, 8192 }
 0x623   : > { %p8028_p13 = scmp.ne.s32.totalorder %s11052_s27, %s8027_s10  ;;  %p8032_p4 = scmp.lt.u32.totalorder %s11052_s27, %s11103_s3 }
 0x624   : > { %p8033_p5 = scmp.lt.u32.totalorder %s8031_s26, %s8027_s10  ;;  %p8035_p11 = scmp.lt.u32.totalorder %s8027_s10, %s11052_s27 }
 0x625   : > { %p8029_p6 = pnand %p8028_p13, %p11616_p0 }
 0x626   : > { %p8034_p8 = por %p8033_p5, %p8032_p4 }
 0x627   : > { %p8030_p10 = pneg %p8029_p6 }
 0x628   : > { %p8036_p2 = por %p8035_p11, %p8034_p8 }
 0x62a   : > { %p8037_p3 = pnand %p8036_p2, %p8030_p10 }
 0x62c   : > { %8040 = shalt.err (!%p8037_p3)
}
 0x62d   : > { %s8093_s28 = smov 128   ;;  %s8094_s18 = smov 8  }
 0x62e   : > { %7830 = dma.vmem_to_hbm [thread:$0]  (%p11616_p0), %s11054_s7, 4096, %s11052_s27, %s5743_s16, %s8093_s28, %s8093_s28, %s8094_s18  }
 0x62f PF: > { %s5771_s20 = sand.u32 1, %s8071_s12   ;;  %p11617_p7 = scmp.ne.s32.totalorder %s11303_s19, 0 }
 0x630   : > { %p11618_p9 = scmp.ge.s32.totalorder %s8083_s15, 2  ;;  %s5772_s8 = scalar_lea.sflag [#allocation6], %s5771_s20 }
 0x632   : > { %p7844_p12 = pnand %p11618_p9, %p11617_p7 }
 0x634   : > { %8066 = dma.done.wait (!%p7844_p12), %s5772_s8, 4096  }
 0x635   : > { %8068 = vsyncadd (!%p7844_p12), %s5772_s8, 4294963200  ;;  %p17_p1 = scmp.ge.s32.totalorder %s8231_s23, 4   ;;  %s11619_s12 = smov %s8075_s13 }
 0x636   : > { %s11620_s13 = smov %s8079_s14  ;;  %s11621_s14 = smov %s8247_s9 }
 0x637   : > { %s11622_s15 = smov %s8231_s23  ;;  %19 = sbr.rel (!%p17_p1) target bundleno = 6 (0x6), region = 94 }
 0x63e   :  { %5777 = vsyncpa [#allocation5], 1 }
 0x63f   :  { %5779 = vsyncpa [#allocation5 + $0x1], 1 }
 0x640   :  { %5780 = vsyncpa [#allocation8], 1 }
 0x641   :  { %5781 = vsyncpa [#allocation6], 1 }
 0x642   :  { %5783 = vsyncpa [#allocation6 + $0x1], 1 }

</bundles_post_ra>
